<compile_context>
chip_gen: v5e
topology: v5e:2x2
jax: 0.10.0
libtpu: 0.0.40
codegen_flags: <defaults>
</compile_context>

<pallas_src>
import functools

import jax
import jax.numpy as jnp
from jax.experimental import pallas as pl
from jax.experimental.pallas import tpu as pltpu


def _mlp_bert_kernel(hidden_layer_num, *refs):
    """refs = (token_feat, mask, w0, b0, ..., w_out, b_out, out, pooled_acc, denom_acc)."""
    token_feat_ref, mask_ref = refs[0], refs[1]
    param_refs = refs[2:-3]          # w0, b0, ..., w_{L-1}, b_{L-1}, w_out, b_out
    out_ref = refs[-3]
    pooled_acc, denom_acc = refs[-2], refs[-1]

    s_idx = pl.program_id(1)

    @pl.when(s_idx == 0)
    def _init():
        pooled_acc[...] = jnp.zeros_like(pooled_acc)
        denom_acc[...] = jnp.zeros_like(denom_acc)

    tf = token_feat_ref[...]                       # (TB, TS, D), native dtype (e.g. bf16)
    m = mask_ref[...]                              # (TB, TS)

    # Masked sum over this sequence tile on the MXU: (TB,1,TS) @ (TB,TS,D) -> (TB,1,D).
    m_mm = m.astype(tf.dtype)[:, None, :]
    pooled_part = jnp.einsum(
        'bqs,bsd->bqd', m_mm, tf, preferred_element_type=jnp.float32)[:, 0, :]
    pooled_acc[...] += pooled_part                                   # (TB, D) f32
    denom_acc[...] += jnp.sum(m.astype(jnp.float32), axis=1, keepdims=True)

    @pl.when(s_idx == pl.num_programs(1) - 1)
    def _finalize():
        denom = jnp.maximum(denom_acc[...], 1e-6)   # guard all-masked (padded) rows
        x = pooled_acc[...] * pl.reciprocal(denom, approx=True)      # EUP slot
        for i in range(hidden_layer_num):
            w = param_refs[2 * i][...]              # (in, out)
            b = param_refs[2 * i + 1][...]          # (1, out)
            x = jnp.maximum(
                jnp.dot(x, w, preferred_element_type=jnp.float32) + b, 0.0)
        w_out = param_refs[-2][...]                 # (hidden, NC_PAD)
        b_out = param_refs[-1][...]                 # (1, NC_PAD)
        out_ref[...] = (jnp.dot(x, w_out, preferred_element_type=jnp.float32)
                        + b_out).astype(out_ref.dtype)


def mlp_bert_forward(token_feat, attention_mask, hidden_weights, hidden_biases,
                     out_weight, out_bias, *, batch_tile=8, seq_tile=None):
    """token_feat: [B, S, D] (native dtype, e.g. bf16); attention_mask: [B, S];
    hidden_weights[i]: [in_i, out_i]; hidden_biases[i]: [out_i];
    out_weight: [hidden_dim, num_classes]; out_bias: [num_classes]."""
    B, S, D = token_feat.shape
    num_classes = out_weight.shape[1]
    hidden_layer_num = len(hidden_weights)

    # ---- Tile selection (fall back to full extents when a legal tile isn't possible).
    TB = min(int(batch_tile), B)
    if TB < B and TB % 8 != 0:        # sublane constraint on mask/output blocks
        TB = B
    if seq_tile is None:
        seq_tile = S if S <= 512 else 512
    TS = min(int(seq_tile), S)
    if TS < S and TS % 128 != 0:      # lane constraint on the mask block
        TS = S

    # ---- Pad batch / sequence up to tile multiples (zero mask => no contribution).
    Bp = ((B + TB - 1) // TB) * TB
    Sp = ((S + TS - 1) // TS) * TS
    if (Bp, Sp) != (B, S):
        token_feat = jnp.pad(token_feat, ((0, Bp - B), (0, Sp - S), (0, 0)))
        attention_mask = jnp.pad(attention_mask, ((0, Bp - B), (0, Sp - S)))

    # ---- Parameters: biases as (1, out); head padded to a lane-dense width.
    NC_PAD = max(128, ((num_classes + 127) // 128) * 128)
    params = []
    for w, b in zip(hidden_weights, hidden_biases):
        params.append(w.astype(jnp.float32))
        params.append(b.reshape(1, -1).astype(jnp.float32))
    params.append(jnp.pad(out_weight.astype(jnp.float32),
                          ((0, 0), (0, NC_PAD - num_classes))))
    params.append(jnp.pad(out_bias.reshape(1, -1).astype(jnp.float32),
                          ((0, 0), (0, NC_PAD - num_classes))))

    grid = (Bp // TB, Sp // TS)
    in_specs = [
        pl.BlockSpec((TB, TS, D), lambda b, s: (b, s, 0)),   # streamed activations
        pl.BlockSpec((TB, TS), lambda b, s: (b, s)),         # streamed mask
    ]
    # Weights/biases: same block every step -> VMEM-resident, no re-DMA.
    in_specs += [pl.BlockSpec(p.shape, lambda b, s: (0, 0)) for p in params]
    out_specs = pl.BlockSpec((TB, NC_PAD), lambda b, s: (b, 0))
    scratch_shapes = [pltpu.VMEM((TB, D), jnp.float32),      # pooled accumulator
                      pltpu.VMEM((TB, 1), jnp.float32)]      # mask-count accumulator

    # ---- Rough VMEM budget; raise the scoped limit only when the default is too small.
    # TODO(synk): re-derive tile sizes per generation (v7x has only 64 MiB physical VMEM).
    tile_bytes = (TB * TS * D * token_feat.dtype.itemsize
                  + TB * TS * attention_mask.dtype.itemsize)
    resident = (sum(int(p.size) for p in params) * 4
                + (TB * D + TB + 2 * TB * NC_PAD) * 4)
    need = 2 * tile_bytes + resident          # 2x for double-buffered streaming tiles
    vmem_limit = None
    if need > 32 * 1024 * 1024:
        vmem_limit = min(int(need * 1.25), 100 * 1024 * 1024)

    kernel = functools.partial(_mlp_bert_kernel, hidden_layer_num)
    out = pl.pallas_call(
        kernel,
        out_shape=jax.ShapeDtypeStruct((Bp, NC_PAD), jnp.float32),
        grid=grid,
        in_specs=in_specs,
        out_specs=out_specs,
        scratch_shapes=scratch_shapes,
        compiler_params=pltpu.CompilerParams(
            dimension_semantics=("parallel", "arbitrary"),
            vmem_limit_bytes=vmem_limit),
    )(token_feat, attention_mask, *params)

    return out[:B, :num_classes]


def _reference(token_feat, attention_mask, hidden_weights, hidden_biases,
               out_weight, out_bias):
    tf = token_feat.astype(jnp.float32)
    m = attention_mask.astype(jnp.float32)
    pooled = jnp.sum(tf * m[:, :, None], axis=1) / jnp.sum(m, axis=1, keepdims=True)
    x = pooled
    for w, b in zip(hidden_weights, hidden_biases):
        x = jnp.maximum(x @ w.astype(jnp.float32) + b.astype(jnp.float32), 0.0)
    return x @ out_weight.astype(jnp.float32) + out_bias.astype(jnp.float32)


if __name__ == "__main__":
    # Small shapes consistent with the module's forward (BERT hidden size 768 is fixed).
    B, S, D = 16, 256, 768
    hidden_dim = 128
    hidden_layer_num = 2
    num_classes = 4

    key = jax.random.PRNGKey(0)
    keys = jax.random.split(key, 3 + 2 * hidden_layer_num + 2)

    # Synthetic "bert output" token features kept in bf16 (native encoder dtype)
    # and a binary attention mask with at least one valid token per row.
    token_feat = jax.random.normal(
        keys[0], (B, S, D), dtype=jnp.float32).astype(jnp.bfloat16)
    attention_mask = (jax.random.uniform(keys[1], (B, S)) > 0.3).astype(jnp.float32)
    attention_mask = attention_mask.at[:, 0].set(1.0)

    # Deterministic parameter init (stored as [in, out], i.e. Linear.weight.T).
    hidden_weights, hidden_biases = [], []
    in_dim = D
    for i in range(hidden_layer_num):
        hidden_weights.append(
            jax.random.normal(keys[2 + 2 * i], (in_dim, hidden_dim),
                              dtype=jnp.float32) * 0.02)
        hidden_biases.append(
            jax.random.normal(keys[3 + 2 * i], (hidden_dim,),
                              dtype=jnp.float32) * 0.02)
        in_dim = hidden_dim
    out_weight = jax.random.normal(keys[-2], (hidden_dim, num_classes),
                                   dtype=jnp.float32) * 0.02
    out_bias = jax.random.normal(keys[-1], (num_classes,),
                                 dtype=jnp.float32) * 0.02

    y = mlp_bert_forward(token_feat, attention_mask, hidden_weights,
                         hidden_biases, out_weight, out_bias,
                         batch_tile=8, seq_tile=128)
    y = jax.block_until_ready(y)

    y_ref = _reference(token_feat, attention_mask, hidden_weights,
                       hidden_biases, out_weight, out_bias)
    assert y.shape == (B, num_classes)
    assert jnp.allclose(y, y_ref, atol=2e-3, rtol=2e-2), "mismatch vs reference"

    print("KERNEL_OK")
</pallas_src>

<mosaic_0001>
module attributes {stable_mosaic.version = 11 : i64} {
  func.func @_mlp_bert_kernel(%arg0: i32, %arg1: i32, %arg2: memref<8x128x768xbf16, #tpu.memory_space<vmem>>, %arg3: memref<8x128xf32, #tpu.memory_space<vmem>>, %arg4: memref<768x128xf32, #tpu.memory_space<vmem>>, %arg5: memref<1x128xf32, #tpu.memory_space<vmem>>, %arg6: memref<128x128xf32, #tpu.memory_space<vmem>>, %arg7: memref<1x128xf32, #tpu.memory_space<vmem>>, %arg8: memref<128x128xf32, #tpu.memory_space<vmem>>, %arg9: memref<1x128xf32, #tpu.memory_space<vmem>>, %arg10: memref<8x128xf32, #tpu.memory_space<vmem>>, %arg11: memref<8x768xf32, #tpu.memory_space<vmem>>, %arg12: memref<8x1xf32, #tpu.memory_space<vmem>>) attributes {dimension_semantics = [#tpu.dimension_semantics<parallel>, #tpu.dimension_semantics<arbitrary>], iteration_bounds = array<i64: 2, 2>, scalar_prefetch = 0 : i64, scratch_operands = 2 : i64, tpu.core_type = #tpu.core_type<tc>, window_params = [{transform_indices = @transform_0, window_bounds = array<i64: 8, 128, 768>}, {transform_indices = @transform_1, window_bounds = array<i64: 8, 128>}, {pipeline_mode = #tpu.pipeline_mode<synchronous>, transform_indices = @transform_2, window_bounds = array<i64: 768, 128>}, {pipeline_mode = #tpu.pipeline_mode<synchronous>, transform_indices = @transform_3, window_bounds = array<i64: 1, 128>}, {pipeline_mode = #tpu.pipeline_mode<synchronous>, transform_indices = @transform_4, window_bounds = array<i64: 128, 128>}, {pipeline_mode = #tpu.pipeline_mode<synchronous>, transform_indices = @transform_5, window_bounds = array<i64: 1, 128>}, {pipeline_mode = #tpu.pipeline_mode<synchronous>, transform_indices = @transform_6, window_bounds = array<i64: 128, 128>}, {pipeline_mode = #tpu.pipeline_mode<synchronous>, transform_indices = @transform_7, window_bounds = array<i64: 1, 128>}, {transform_indices = @transform_8, window_bounds = array<i64: 8, 128>}]} {
    %c0_i32 = arith.constant 0 : i32
    %0 = arith.cmpi eq, %arg1, %c0_i32 : i32
    %1 = arith.extui %0 : i1 to i32
    %c0_i32_0 = arith.constant 0 : i32
    %2 = arith.cmpi ne, %1, %c0_i32_0 : i32
    scf.if %2 {
      %cst_15 = arith.constant 0.000000e+00 : f32
      %20 = vector.broadcast %cst_15 : f32 to vector<8x768xf32>
      %c0_16 = arith.constant 0 : index
      %c0_17 = arith.constant 0 : index
      %21 = vector.load %arg11[%c0_16, %c0_17] : memref<8x768xf32, #tpu.memory_space<vmem>>, vector<8x768xf32>
      tpu.vector_store %arg11[%c0_16, %c0_17], %20 {strides = array<i32>} : memref<8x768xf32, #tpu.memory_space<vmem>>, vector<8x768xf32>,
      %cst_18 = arith.constant 0.000000e+00 : f32
      %22 = vector.broadcast %cst_18 : f32 to vector<8x1xf32>
      %c0_19 = arith.constant 0 : index
      %c0_20 = arith.constant 0 : index
      %23 = vector.load %arg12[%c0_19, %c0_20] : memref<8x1xf32, #tpu.memory_space<vmem>>, vector<8x1xf32>
      tpu.vector_store %arg12[%c0_19, %c0_20], %22 {strides = array<i32>} : memref<8x1xf32, #tpu.memory_space<vmem>>, vector<8x1xf32>,
    } else {
    }
    %c0 = arith.constant 0 : index
    %c0_1 = arith.constant 0 : index
    %c0_2 = arith.constant 0 : index
    %3 = vector.load %arg2[%c0, %c0_1, %c0_2] : memref<8x128x768xbf16, #tpu.memory_space<vmem>>, vector<8x128x768xbf16>
    %c0_3 = arith.constant 0 : index
    %c0_4 = arith.constant 0 : index
    %4 = vector.load %arg3[%c0_3, %c0_4] : memref<8x128xf32, #tpu.memory_space<vmem>>, vector<8x128xf32>
    %5 = arith.truncf %4 : vector<8x128xf32> to vector<8x128xbf16>
    %6 = vector.shape_cast %5 : vector<8x128xbf16> to vector<8x1x128xbf16>
    "tpu.trace_start"() <{level = 10 : i32, message = "bqs,bsd->bqd"}> : () -> ()
    %cst = arith.constant dense<0.000000e+00> : vector<8x1x768xf32>
    %7 = tpu.matmul %6, %3, %cst {dimension_numbers = #tpu.dot_dimension_numbers<[2], [1], [1], [2], [0, 0, 0, 1, 1, 2], [0], [0]>} : vector<8x1x128xbf16>, vector<8x128x768xbf16>, vector<8x1x768xf32> -> vector<8x1x768xf32>
    "tpu.trace_stop"() : () -> ()
    %8 = vector.shape_cast %7 : vector<8x1x768xf32> to vector<8x768xf32>
    %c0_5 = arith.constant 0 : index
    %c0_6 = arith.constant 0 : index
    %9 = vector.load %arg11[%c0_5, %c0_6] : memref<8x768xf32, #tpu.memory_space<vmem>>, vector<8x768xf32>
    %10 = arith.addf %9, %8 : vector<8x768xf32>
    %c0_7 = arith.constant 0 : index
    %c0_8 = arith.constant 0 : index
    %11 = vector.load %arg11[%c0_7, %c0_8] : memref<8x768xf32, #tpu.memory_space<vmem>>, vector<8x768xf32>
    tpu.vector_store %arg11[%c0_7, %c0_8], %10 {strides = array<i32>} : memref<8x768xf32, #tpu.memory_space<vmem>>, vector<8x768xf32>,
    %c0_9 = arith.constant 0 : index
    %c0_10 = arith.constant 0 : index
    %12 = vector.load %arg12[%c0_9, %c0_10] : memref<8x1xf32, #tpu.memory_space<vmem>>, vector<8x1xf32>
    %cst_11 = arith.constant dense<0.000000e+00> : vector<8xf32>
    %13 = vector.multi_reduction <add>, %4, %cst_11 [1] : vector<8x128xf32> to vector<8xf32>
    %14 = vector.shape_cast %13 : vector<8xf32> to vector<8x1xf32>
    %15 = arith.addf %12, %14 : vector<8x1xf32>
    %c0_12 = arith.constant 0 : index
    %c0_13 = arith.constant 0 : index
    %16 = vector.load %arg12[%c0_12, %c0_13] : memref<8x1xf32, #tpu.memory_space<vmem>>, vector<8x1xf32>
    tpu.vector_store %arg12[%c0_12, %c0_13], %15 {strides = array<i32>} : memref<8x1xf32, #tpu.memory_space<vmem>>, vector<8x1xf32>,
    %c1_i32 = arith.constant 1 : i32
    %17 = arith.cmpi eq, %arg1, %c1_i32 : i32
    %18 = arith.extui %17 : i1 to i32
    %c0_i32_14 = arith.constant 0 : i32
    %19 = arith.cmpi ne, %18, %c0_i32_14 : i32
    scf.if %19 {
      %c0_15 = arith.constant 0 : index
      %c0_16 = arith.constant 0 : index
      %20 = vector.load %arg12[%c0_15, %c0_16] : memref<8x1xf32, #tpu.memory_space<vmem>>, vector<8x1xf32>
      %cst_17 = arith.constant 9.99999997E-7 : f32
      %21 = vector.broadcast %cst_17 : f32 to vector<8x1xf32>
      %22 = arith.maximumf %20, %21 : vector<8x1xf32>
      %c0_18 = arith.constant 0 : index
      %c0_19 = arith.constant 0 : index
      %23 = vector.load %arg11[%c0_18, %c0_19] : memref<8x768xf32, #tpu.memory_space<vmem>>, vector<8x768xf32>
      %24 = tpu.reciprocal %22 {approx = true} : vector<8x1xf32> -> vector<8x1xf32>
      %25 = vector.broadcast %24 : vector<8x1xf32> to vector<8x768xf32>
      %26 = arith.mulf %23, %25 : vector<8x768xf32>
      %c0_20 = arith.constant 0 : index
      %c0_21 = arith.constant 0 : index
      %27 = vector.load %arg4[%c0_20, %c0_21] : memref<768x128xf32, #tpu.memory_space<vmem>>, vector<768x128xf32>
      %c0_22 = arith.constant 0 : index
      %c0_23 = arith.constant 0 : index
      %28 = vector.load %arg5[%c0_22, %c0_23] : memref<1x128xf32, #tpu.memory_space<vmem>>, vector<1x128xf32>
      %cst_24 = arith.constant dense<0.000000e+00> : vector<8x128xf32>
      %29 = tpu.matmul %26, %27, %cst_24 {dimension_numbers = #tpu.dot_dimension_numbers<[1], [0], [0], [1], [0, 0, 1, 1], [], []>} : vector<8x768xf32>, vector<768x128xf32>, vector<8x128xf32> -> vector<8x128xf32>
      %30 = vector.broadcast %28 : vector<1x128xf32> to vector<8x128xf32>
      %31 = arith.addf %29, %30 : vector<8x128xf32>
      %cst_25 = arith.constant 0.000000e+00 : f32
      %32 = vector.broadcast %cst_25 : f32 to vector<8x128xf32>
      %33 = arith.maximumf %31, %32 : vector<8x128xf32>
      %c0_26 = arith.constant 0 : index
      %c0_27 = arith.constant 0 : index
      %34 = vector.load %arg6[%c0_26, %c0_27] : memref<128x128xf32, #tpu.memory_space<vmem>>, vector<128x128xf32>
      %c0_28 = arith.constant 0 : index
      %c0_29 = arith.constant 0 : index
      %35 = vector.load %arg7[%c0_28, %c0_29] : memref<1x128xf32, #tpu.memory_space<vmem>>, vector<1x128xf32>
      %cst_30 = arith.constant dense<0.000000e+00> : vector<8x128xf32>
      %36 = tpu.matmul %33, %34, %cst_30 {dimension_numbers = #tpu.dot_dimension_numbers<[1], [0], [0], [1], [0, 0, 1, 1], [], []>} : vector<8x128xf32>, vector<128x128xf32>, vector<8x128xf32> -> vector<8x128xf32>
      %37 = vector.broadcast %35 : vector<1x128xf32> to vector<8x128xf32>
      %38 = arith.addf %36, %37 : vector<8x128xf32>
      %cst_31 = arith.constant 0.000000e+00 : f32
      %39 = vector.broadcast %cst_31 : f32 to vector<8x128xf32>
      %40 = arith.maximumf %38, %39 : vector<8x128xf32>
      %c0_32 = arith.constant 0 : index
      %c0_33 = arith.constant 0 : index
      %41 = vector.load %arg8[%c0_32, %c0_33] : memref<128x128xf32, #tpu.memory_space<vmem>>, vector<128x128xf32>
      %c0_34 = arith.constant 0 : index
      %c0_35 = arith.constant 0 : index
      %42 = vector.load %arg9[%c0_34, %c0_35] : memref<1x128xf32, #tpu.memory_space<vmem>>, vector<1x128xf32>
      %cst_36 = arith.constant dense<0.000000e+00> : vector<8x128xf32>
      %43 = tpu.matmul %40, %41, %cst_36 {dimension_numbers = #tpu.dot_dimension_numbers<[1], [0], [0], [1], [0, 0, 1, 1], [], []>} : vector<8x128xf32>, vector<128x128xf32>, vector<8x128xf32> -> vector<8x128xf32>
      %44 = vector.broadcast %42 : vector<1x128xf32> to vector<8x128xf32>
      %45 = arith.addf %43, %44 : vector<8x128xf32>
      %c0_37 = arith.constant 0 : index
      %c0_38 = arith.constant 0 : index
      %46 = vector.load %arg10[%c0_37, %c0_38] : memref<8x128xf32, #tpu.memory_space<vmem>>, vector<8x128xf32>
      tpu.vector_store %arg10[%c0_37, %c0_38], %45 {strides = array<i32>} : memref<8x128xf32, #tpu.memory_space<vmem>>, vector<8x128xf32>,
    } else {
    }
    return
  }
  func.func @transform_0(%arg0: i32, %arg1: i32) -> (i32, i32, i32) {
    %c0_i32 = arith.constant 0 : i32
    %c0_i32_0 = arith.constant 0 : i32
    return %arg0, %arg1, %c0_i32 : i32, i32, i32
  }
  func.func @transform_1(%arg0: i32, %arg1: i32) -> (i32, i32) {
    %c0_i32 = arith.constant 0 : i32
    return %arg0, %arg1 : i32, i32
  }
  func.func @transform_2(%arg0: i32, %arg1: i32) -> (i32, i32) {
    %c0_i32 = arith.constant 0 : i32
    %c0_i32_0 = arith.constant 0 : i32
    %c0_i32_1 = arith.constant 0 : i32
    return %c0_i32, %c0_i32_0 : i32, i32
  }
  func.func @transform_3(%arg0: i32, %arg1: i32) -> (i32, i32) {
    %c0_i32 = arith.constant 0 : i32
    %c0_i32_0 = arith.constant 0 : i32
    %c0_i32_1 = arith.constant 0 : i32
    return %c0_i32, %c0_i32_0 : i32, i32
  }
  func.func @transform_4(%arg0: i32, %arg1: i32) -> (i32, i32) {
    %c0_i32 = arith.constant 0 : i32
    %c0_i32_0 = arith.constant 0 : i32
    %c0_i32_1 = arith.constant 0 : i32
    return %c0_i32, %c0_i32_0 : i32, i32
  }
  func.func @transform_5(%arg0: i32, %arg1: i32) -> (i32, i32) {
    %c0_i32 = arith.constant 0 : i32
    %c0_i32_0 = arith.constant 0 : i32
    %c0_i32_1 = arith.constant 0 : i32
    return %c0_i32, %c0_i32_0 : i32, i32
  }
  func.func @transform_6(%arg0: i32, %arg1: i32) -> (i32, i32) {
    %c0_i32 = arith.constant 0 : i32
    %c0_i32_0 = arith.constant 0 : i32
    %c0_i32_1 = arith.constant 0 : i32
    return %c0_i32, %c0_i32_0 : i32, i32
  }
  func.func @transform_7(%arg0: i32, %arg1: i32) -> (i32, i32) {
    %c0_i32 = arith.constant 0 : i32
    %c0_i32_0 = arith.constant 0 : i32
    %c0_i32_1 = arith.constant 0 : i32
    return %c0_i32, %c0_i32_0 : i32, i32
  }
  func.func @transform_8(%arg0: i32, %arg1: i32) -> (i32, i32) {
    %c0_i32 = arith.constant 0 : i32
    %c0_i32_0 = arith.constant 0 : i32
    return %arg0, %c0_i32 : i32, i32
  }
}

</mosaic_0001>

<bundles_post_ra>
// kernel: tpu_custom_call.1
= control target key start
LH: loop header
LB: loop body
LE: loop exit
PB: predicated region body
PF: predicated region fallthrough
CT: control target
= control target key end

     0   :  { %s8016_s0 = inlined_call_operand.hbm [shape: bf16[16,256,768], index: 0, kind: input, shape index: {}]   ;;  %s8017_s1 = inlined_call_operand.hbm [shape: f32[16,256], index: 1, kind: input, shape index: {}]   ;;  %s8018_s2 = inlined_call_operand.hbm [shape: f32[768,128], index: 2, kind: input, shape index: {}]   ;;  %s8019_s3 = inlined_call_operand.hbm [shape: f32[1,128], index: 3, kind: input, shape index: {}]   ;;  %s8020_s4 = inlined_call_operand.hbm [shape: f32[128,128], index: 4, kind: input, shape index: {}]   ;;  %s8021_s5 = inlined_call_operand.hbm [shape: f32[1,128], index: 5, kind: input, shape index: {}]   ;;  %s8022_s6 = inlined_call_operand.hbm [shape: f32[128,128], index: 6, kind: input, shape index: {}]   ;;  %s8023_s7 = inlined_call_operand.hbm [shape: f32[1,128], index: 7, kind: input, shape index: {}]   ;;  %s8024_s8 = inlined_call_operand.hbm [shape: f32[16,128], index: 8, kind: output, shape index: {}]  }
   0x1   :  { %8033 = sst [smem:[#allocation39_spill]] %s8016_s0 }
   0x2   :  { %8034 = sst [smem:[#allocation40_spill]] %s8018_s2 }
   0x3   :  { %8035 = sst [smem:[#allocation41_spill]] %s8019_s3 }
   0x4   :  { %8036 = sst [smem:[#allocation42_spill]] %s8021_s5 }
   0x5   :  { %8037 = sst [smem:[#allocation43_spill]] %s8024_s8 }
   0x6   :  { %13 = vsyncpa [#allocation5], 0 }
   0x7   :  { %15 = vsyncpa [#allocation5 + $0x1], 0 }
   0x8   :  { %16 = vsyncpa [#allocation8], 0 }
   0x9   :  { %18 = vsyncpa [#allocation8 + $0x1], 0 }
   0xa   :  { %19 = vsyncpa [#allocation11], 0 }
   0xb   :  { %20 = vsyncpa [#allocation14], 0 }
   0xc   :  { %21 = vsyncpa [#allocation17], 0 }
   0xd   :  { %22 = vsyncpa [#allocation6], 0 }
   0xe   :  { %24 = vsyncpa [#allocation6 + $0x1], 0  ;;  %s6734_s27 = smov 0   ;;  %s6736_s28 = smov 0  }
   0xf   :  { %s6738_s29 = smov 0   ;;  %s6740_s30 = smov 0  }
  0x10   :  { %s6742_s9 = smov 0   ;;  %s6744_s10 = smov 0  }
  0x11   :  { %s6746_s11 = smov 0   ;;  %s6748_s12 = smov 0  }
  0x12   :  { %s6750_s13 = smov 0   ;;  %s6752_s14 = smov 0  }
  0x13   :  { %s6754_s15 = smov 0  }
  0x14 LB: > { %8038 = sst [smem:[#allocation29_spill]] %s6631_s27  ;;  %s6788_s16 = sadd.s32 4294967295, %s6671_s15   ;;  %s6671_s15 = sphi %s6754_s15, %s30_s15   ;;  %s6667_s14 = sphi %s6752_s14, %s8078_s14   ;;  %s6663_s13 = sphi %s6750_s13, %s8077_s13   ;;  %s6659_s12 = sphi %s6748_s12, %s8076_s12   ;;  %s6655_s11 = sphi %s6746_s11, %s8075_s11   ;;  %s6651_s10 = sphi %s6744_s10, %s8074_s10   ;;  %s6647_s9 = sphi %s6742_s9, %s8073_s9   ;;  %s6643_s30 = sphi %s6740_s30, %s8072_s30   ;;  %s6639_s29 = sphi %s6738_s29, %s8066_s29   ;;  %s6635_s28 = sphi %s6736_s28, %s8071_s28   ;;  %s6631_s27 = sphi %s6734_s27, %s8070_s27  }
  0x15   : > { %8039 = sst [smem:[#allocation30_spill]] %s6639_s29  ;;  %s4176_s17 = sadd.s32 4294967294, %s6671_s15  }
  0x16   : > { %8040 = sst [smem:[#allocation31_spill]] %s6655_s11  ;;  %s39_s18 = sadd.s32 1, %s6663_s13 }
  0x17   : > { %8041 = sst [smem:[#allocation32_spill]] %s6659_s12  ;;  %s42_s19 = sadd.s32 1, %s6667_s14 }
  0x18   : > { %p40_p0 = scmp.ge.s32.totalorder %s39_s18, 2  ;;  %s51_s20 = sadd.s32 1, %s6651_s10 }
  0x19   : > { %p58_p1 = scmp.ne.s32.totalorder %s6651_s10, %s6647_s9  ;;  %p59_p2 = scmp.eq.s32.totalorder %s6671_s15, 0 }
  0x1a   : > { %s8080_s18 = smov (%p40_p0, %s39_s18), 0  ;;  %s8082_s19 = smov (!%p40_p0, %s42_s19), %s6667_s14 }
  0x1b   : > { %8042 = sst [smem:[#allocation33_spill]] %s8080_s18  ;;  %s47_s21 = ssub.s32 %s6663_s13, %s8080_s18 }
  0x1c   : > { %p6802_p3 = por %p59_p2, %p58_p1  ;;  %p44_p4 = scmp.ge.s32.totalorder %s8082_s19, 2 }
  0x1d   : > { %p64_p5 = scmp.ne.s32.totalorder %s6647_s9, %s6643_s30  ;;  %p65_p6 = scmp.eq.s32.totalorder %s6788_s16, 0 }
  0x1e   : > { %s231_s23 = sadd.s32 1, %s6639_s29  ;;  %s8084_s19 = smov (%p44_p4, %s8082_s19), 0 }
  0x1f   : > { %8044 = sst [smem:[#allocation34_spill]] %s8084_s19  ;;  %p6813_p7 = por %p65_p6, %p64_p5 }
  0x20   : > { %p241_p8 = scmp.ne.s32.totalorder %s6639_s29, %s6635_s28  ;;  %s46_s25 = ssub.s32 %s6667_s14, %s8084_s19 }
  0x21   : > { %p242_p9 = scmp.eq.s32.totalorder %s6788_s16, 3  ;;  %s48_s26 = sor.u32 %s47_s21, %s46_s25 }
  0x22   : > { %p229_p10 = scmp.eq.s32.totalorder %s46_s25, 0  ;;  %p49_p11 = scmp.eq.s32.totalorder %s48_s26, 0 }
  0x23   : > { %p6822_p12 = por %p242_p9, %p241_p8  ;;  %p247_p13 = scmp.ne.s32.totalorder %s6635_s28, %s6631_s27 }
  0x24   : > { %s6827_s18 = scalar_select %p229_p10, %s6639_s29, %s231_s23  }
  0x25   : > { %s8046_s30 = scalar_select %p6822_p12, 1, 0 }
  0x26   : > { %8048 = sst [smem:[#allocation36_spill]] %s6827_s18  ;;  %p248_p0 = scmp.eq.s32.totalorder %s4176_s17, 3 }
  0x27   : > { %8047 = sst [smem:[#allocation35_spill]] %s8046_s30  ;;  %p4177_p1 = scmp.ge.s32.totalorder %s6671_s15, 1 }
  0x28   : > { %s6830_s8 = scalar_select %p49_p11, %s6651_s10, %s51_s20  }
  0x29   : > { %p255_p2 = scmp.lt.s32.totalorder %s6671_s15, 5  ;;  %p6836_p4 = por %p248_p0, %p247_p13 }
  0x2a   : > { %8049 = sst [smem:[#allocation37_spill]] %s6830_s8  ;;  %s6673_s20 = smov [#allocation10]  }
  0x2b   : > { %s8050_s12 = scalar_select %p6836_p4, 1, 0 }
  0x2c   : > { %p6840_p5 = pnand %p4177_p1, %p255_p2  ;;  %s8053_s3 = sld [smem:[#allocation41_spill]] }
  0x2d   : > { %8051 = sst [smem:[#allocation38_spill]] %s8050_s12  ;;  %s283_s17 = sshll.u32 %s6673_s20, 4  ;;  %s284_s17 = int_to_ptr.vmem [resolvable:$true] %s283_s17 }
  0x2e   : > { %p6175_p8 = pneg %p6840_p5  ;;  %s8054_s5 = sld [smem:[#allocation42_spill]] }
  0x2f   : > { %s6674_s25 = smov [#allocation13]   ;;  %s8056_s2 = sld [smem:[#allocation40_spill]] }
  0x30   : > { %p6854_p9 = pnand %p6175_p8, %p65_p6  ;;  %s309_s26 = sshll.u32 %s6674_s25, 4  ;;  %s310_s26 = int_to_ptr.vmem [resolvable:$true] %s309_s26 }
  0x31   : > { %s6675_s19 = smov [#allocation9]   ;;  %s292_s30 = sshll.u32 %s8020_s4, 4  ;;  %s293_s30 = int_to_ptr.hbm [resolvable:$true] %s292_s30 }
  0x32   : > { %s281_s23 = sshll.u32 %s8053_s3, 4  ;;  %s6676_s25 = smov 128   ;;  %s282_s23 = int_to_ptr.hbm [resolvable:$true] %s281_s23 }
  0x33   : > { %6181 = dma.hbm_to_vmem [thread:$0]  (!%p6854_p9), %s282_s23, 16, %s284_s17, [#allocation11]  }
  0x34   : > { %s307_s18 = sshll.u32 %s8054_s5, 4  ;;  %s268_s5 = sshll.u32 %s6675_s19, 4  ;;  %s308_s18 = int_to_ptr.hbm [resolvable:$true] %s307_s18  ;;  %s269_s5 = int_to_ptr.vmem [resolvable:$true] %s268_s5 }
  0x35   : > { %6187 = dma.hbm_to_vmem [thread:$0]  (!%p6854_p9), %s308_s18, 16, %s310_s26, [#allocation14]  }
  0x36   : > { %s266_s8 = sshll.u32 %s8056_s2, 4  ;;  %s6677_s11 = smov 8   ;;  %s267_s8 = int_to_ptr.hbm [resolvable:$true] %s266_s8 }
  0x37   : > { %6178 = dma.hbm_to_vmem [thread:$0]  (!%p6854_p9), %s267_s8, 12288, %s269_s5, [#allocation8], %s6676_s25, %s6676_s25, %s6677_s11  }
  0x38   : > { %s6678_s18 = smov [#allocation12]   ;;  %s318_s26 = sshll.u32 %s8022_s6, 4  ;;  %s319_s26 = int_to_ptr.hbm [resolvable:$true] %s318_s26 }
  0x39   : > { %s294_s23 = sshll.u32 %s6678_s18, 4  ;;  %s333_s12 = sshll.u32 %s8023_s7, 4  ;;  %s295_s23 = int_to_ptr.vmem [resolvable:$true] %s294_s23  ;;  %s334_s12 = int_to_ptr.hbm [resolvable:$true] %s333_s12 }
  0x3a   : > { %6184 = dma.hbm_to_vmem [thread:$0]  (!%p6854_p9), %s293_s30, 2048, %s295_s23, [#allocation11], %s6676_s25, %s6676_s25, %s6677_s11  }
  0x3b   : > { %s6679_s19 = smov [#allocation15]   ;;  %s6680_s5 = smov [#allocation16]  }
  0x3c   : > { %s320_s2 = sshll.u32 %s6679_s19, 4  ;;  %s335_s8 = sshll.u32 %s6680_s5, 4  ;;  %s321_s2 = int_to_ptr.vmem [resolvable:$true] %s320_s2  ;;  %s336_s8 = int_to_ptr.vmem [resolvable:$true] %s335_s8 }
  0x3d   : > { %6190 = dma.hbm_to_vmem [thread:$0]  (!%p6854_p9), %s319_s26, 2048, %s321_s2, [#allocation14], %s6676_s25, %s6676_s25, %s6677_s11  }
  0x3e   : > { %6193 = dma.hbm_to_vmem [thread:$0]  (!%p6854_p9), %s334_s12, 16, %s336_s8, [#allocation17]  }
  0x3f   : > { %p4184_p10 = scmp.ge.s32.totalorder %s6671_s15, 4 }
  0x41   : > { %342 = sbr.rel (%p4184_p10) target bundleno = 92 (0x5c), region = 40 }
  0x46   : > { %s6884_s30 = sand.u32 1, %s6651_s10   ;;  %s6135_s18 = smul.u32 96, %s6663_s13 }
  0x47   : > { %s6134_s2 = smul.u32 3072, %s6884_s30  ;;  %s6681_s25 = smov 12288  }
  0x48   : > { %s6136_s11 = smul.u32 1536, %s6667_s14  ;;  %6151 = sst [smem:[#allocation20]] (%p6802_p3), %s6681_s25 }
  0x49   : > { %s8057_s0 = sld [smem:[#allocation39_spill]]  ;;  %s350_s27 = scalar_lea.vmem [#allocation4], %s6134_s2 }
  0x4a   : > { %s357_s29 = sadd.s32 %s6136_s11, %s6135_s18  ;;  %s374_s12 = sshll.u32 %s350_s27, 4  ;;  %s375_s12 = int_to_ptr.vmem [resolvable:$true] %s374_s12 }
  0x4b   : > { %s4189_s23 = sshll.u32 %s357_s29, 2  ;;  %s6682_s19 = smov 6144  }
  0x4c   : > { %s6150_s20 = scalar_select %p6802_p3, [#allocation0], [#allocation21] }
  0x4d   : > { %6152 = sst [smem:[#allocation20 + $0x1]] (%p6802_p3), %s6682_s19  ;;  %s6683_s25 = smov 16  }
  0x4e   : > { %s364_s5 = sld [smem:[%s6150_s20]]   ;;  %s6684_s18 = smov 384  }
  0x4f   : > { %s359_s26 = scalar_lea.hbm %s8057_s0, %s4189_s23  ;;  %6153 = sst [smem:[#allocation20 + $0x2]] (%p6802_p3), %s6683_s25 }
  0x50   : > { %s372_s8 = sshll.u32 %s359_s26, 4  ;;  %6154 = sst [smem:[#allocation20 + $0x3]] (%p6802_p3), %s6684_s18  ;;  %s373_s8 = int_to_ptr.hbm [resolvable:$true] %s372_s8 }
  0x51   : > { %6155 = sst [smem:[#allocation20 + $0x4]] (%p6802_p3), %s6684_s18  ;;  %s6685_s11 = smov 24  }
  0x52   : > { %6156 = sst [smem:[#allocation20 + $0x5]] (%p6802_p3), %s6685_s11  ;;  %s347_s23 = scalar_lea.sflag [#allocation5], %s6884_s30 }
  0x53   : > { %s6686_s3 = smov [#allocation19]   ;;  %s4192_s17 = sshll.u32 %s6884_s30, 3 }
  0x54   : > { %s4190_s2 = sshll.u32 %s364_s5, 26  ;;  %s397_s26 = sand.u32 1, %s6671_s15  }
  0x55   : > { %s4191_s29 = sadd.s32 134217728, %s4190_s2  ;;  %s4193_s20 = sshll.u32 %s6667_s14, 1 }
  0x56   : > { %6157 = dma.general (%p6802_p3), %s373_s8, 49152, %s375_s12, %s347_s23, %s6686_s3, [#allocation20], %s4191_s29, 0  }
  0x57   : > { %s401_s27 = scalar_lea.vmem [#allocation7], %s4192_s17  ;;  %s405_s25 = sadd.s32 %s6663_s13, %s4193_s20 }
  0x58   : > { %s411_s19 = sshll.u32 %s401_s27, 4  ;;  %s4194_s18 = sshll.u32 %s405_s25, 3  ;;  %s412_s19 = int_to_ptr.vmem [resolvable:$true] %s411_s19 }
  0x59   : > { %s407_s5 = scalar_lea.hbm %s8017_s1, %s4194_s18  ;;  %s398_s12 = scalar_lea.sflag [#allocation8], %s397_s26 }
  0x5a   : > { %s409_s2 = sshll.u32 %s407_s5, 4  ;;  %s410_s2 = int_to_ptr.hbm [resolvable:$true] %s409_s2 }
  0x5b   : > { %6158 = dma.hbm_to_vmem [thread:$0]  (%p6802_p3), %s410_s2, 128, %s412_s19, %s398_s12  }
  0x5c PF: > { %420 = sbr.rel (%p6840_p5) target bundleno = 1220 (0x4c4), region = 52  ;;  %s422_s30 = sand.u32 (!%p6840_p5), 1, %s6647_s9  }
  0x5d   : > { %s6137_s8 = smul.u32 (!%p6840_p5), 3072, %s422_s30  ;;  %s423_s29 = scalar_lea.sflag (!%p6840_p5), [#allocation5], %s422_s30 }
  0x5f   : > { %s6921_s23 = scalar_lea.vmem (!%p6840_p5), [#allocation4], %s6137_s8 }
  0x61   : > { %6602 = dma.done.wait (%p6813_p7), %s423_s29, 49152  }
  0x62   : > { %6604 = vsyncadd (%p6813_p7), %s423_s29, 4294918144  ;;  %s432_s0 = sand.u32 1, %s6788_s16   ;;  %s4196_s22 = sshll.u32 %s422_s30, 3 }
  0x63   : > { %s433_s3 = scalar_lea.sflag [#allocation8], %s432_s0  ;;  %s6928_s17 = scalar_lea.vmem [#allocation7], %s4196_s22 }
  0x64   : > { %6606 = dma.done.wait (%p6813_p7), %s433_s3, 128  }
  0x65   : > { %6608 = vsyncadd (%p6813_p7), %s433_s3, 4294967168 }
  0x66   : > { %6610 = dma.done.wait (%p65_p6), [#allocation8], 12288  }
  0x67   : > { %6612 = vsyncadd (%p65_p6), [#allocation8], 4294955008 }
  0x68   : > { %6614 = dma.done.wait (%p65_p6), [#allocation11], 2064  }
  0x69   : > { %6616 = vsyncadd (%p65_p6), [#allocation11], 4294965232 }
  0x6a   : > { %6618 = dma.done.wait (%p65_p6), [#allocation14], 2064  }
  0x6b   : > { %6620 = vsyncadd (%p65_p6), [#allocation14], 4294965232 }
  0x6c   : > { %6622 = dma.done.wait (%p65_p6), [#allocation17], 16  }
  0x6d   : > { %6624 = vsyncadd (%p65_p6), [#allocation17], 4294967280  ;;  %s502_s24 = sand.u32 1, %s6635_s28   ;;  %s8058_s20 = sld [smem:[#allocation31_spill]] }
  0x6e   : > { %s6953_s21 = sshll.u32 %s502_s24, 3 }
  0x6f   : > { %s504_s26 = scalar_lea.vmem [#allocation18], %s6953_s21 }
  0x73   : > { %p4204_p3 = scmp.ne.s32.totalorder %s8058_s20, 0 }
  0x75   : > { %510 = sbr.rel (%p4204_p3) target bundleno = 130 (0x82), region = 88 }
  0x7a   : > { %v6687_v0 = vmov 0.0   ;;  %vm517_vm0 = vcmask 7168  }
  0x7b   : > { %511 = vst [vmem:[#allocation2 + $0x28] sm:$0xff] %v6687_v0 }
  0x7c   : > { %512 = vst [vmem:[#allocation2 + $0x10] sm:$0xff] %v6687_v0 }
  0x7d   : > { %513 = vst [vmem:[#allocation2 + $0x8] sm:$0xff] %v6687_v0 }
  0x7e   : > { %514 = vst [vmem:[#allocation2] sm:$0xff] %v6687_v0 }
  0x7f   : > { %515 = vst [vmem:[#allocation2 + $0x18] sm:$0xff] %v6687_v0 }
  0x80   : > { %516 = vst [vmem:[#allocation2 + $0x20] sm:$0xff] %v6687_v0 }
  0x81   : > { %518 = vst.msk [vmem:[#allocation3] sm:$0xff] %vm517_vm0, %v6687_v0 }
  0x82 PF: > { %v4376_v1 = vld [vmem:[%s6921_s23 + $0x150] sm:$0xf]  ;;  %v5795_v2 = vld [vmem:[%s6921_s23 + $0x164] sm:$0xf0]  ;;  %v5792_v3 = vld [vmem:[%s6921_s23 + $0x154] sm:$0xf] }
  0x83   : > { %v4377_v4 = vor.u32 %v5795_v2, %v4376_v1  ;;  %v4378_v5 = vld [vmem:[%s6921_s23 + $0x168] sm:$0xf0]  ;;  %v4384_v6 = vld [vmem:[%s6921_s23 + $0x158] sm:$0xf]  ;;  %v5796_v7 = vld [vmem:[%s6921_s23 + $0x16c] sm:$0xf0] }
  0x84   : > { %v4381_v8 = vor.u32 %v5792_v3, %v4378_v5  ;;  %v4385_v9 = vor.u32 %v5796_v7, %v4384_v6  ;;  %v5793_v10 = vld [vmem:[%s6921_s23 + $0x15c] sm:$0xf]  ;;  %v4386_v11 = vld [vmem:[%s6921_s23 + $0x170] sm:$0xf0]  ;;  %v4352_v12 = vld [vmem:[%s6921_s23 + $0x120] sm:$0xf] }
  0x85   : > { %1175 = vmatpush.bf16.msra.mxu0 %v4377_v4  ;;  %v4389_v13 = vor.u32 %v5793_v10, %v4386_v11  ;;  %v5789_v14 = vld [vmem:[%s6921_s23 + $0x134] sm:$0xf0]  ;;  %v5786_v15 = vld [vmem:[%s6921_s23 + $0x124] sm:$0xf]  ;;  %v4354_v16 = vld [vmem:[%s6921_s23 + $0x138] sm:$0xf0] }
  0x86   : > { %1188 = vmatpush.bf16.msra.mxu1 %v4381_v8  ;;  %1201 = vmatpush.bf16.msra.mxu2 %v4385_v9  ;;  %v4353_v17 = vor.u32 %v5789_v14, %v4352_v12  ;;  %v4357_v18 = vor.u32 %v5786_v15, %v4354_v16  ;;  %v4360_v19 = vld [vmem:[%s6921_s23 + $0x128] sm:$0xf]  ;;  %v5790_v20 = vld [vmem:[%s6921_s23 + $0x13c] sm:$0xf0]  ;;  %v5787_v21 = vld [vmem:[%s6921_s23 + $0x12c] sm:$0xf] }
  0x87   : > { %1214 = vmatpush.bf16.msra.mxu3 %v4389_v13  ;;  %v4361_v22 = vor.u32 %v5790_v20, %v4360_v19  ;;  %v4362_v23 = vld [vmem:[%s6921_s23 + $0x140] sm:$0xf0]  ;;  %v4328_v24 = vld [vmem:[%s6921_s23 + $0xf0] sm:$0xf]  ;;  %v5783_v25 = vld [vmem:[%s6921_s23 + $0x104] sm:$0xf0] }
  0x88   : > { %v4365_v26 = vor.u32 %v5787_v21, %v4362_v23  ;;  %v5780_v27 = vld [vmem:[%s6921_s23 + $0xf4] sm:$0xf]  ;;  %v4330_v28 = vld [vmem:[%s6921_s23 + $0x108] sm:$0xf0]  ;;  %v4336_v29 = vld [vmem:[%s6921_s23 + $0xf8] sm:$0xf]  ;;  %v4329_v30 = vor.u32 %v5783_v25, %v4328_v24 }
  0x89   : > { %1176 = vmatpush.bf16.msra.mxu0 %v4353_v17  ;;  %v5784_v31 = vld [vmem:[%s6921_s23 + $0x10c] sm:$0xf0]  ;;  %v5781_v32 = vld [vmem:[%s6921_s23 + $0xfc] sm:$0xf]  ;;  %v4338_v33 = vld [vmem:[%s6921_s23 + $0x110] sm:$0xf0]  ;;  %v4333_v34 = vor.u32 %v5780_v27, %v4330_v28 }
  0x8a   : > { %1189 = vmatpush.bf16.msra.mxu1 %v4357_v18  ;;  %1202 = vmatpush.bf16.msra.mxu2 %v4361_v22  ;;  %v4337_v35 = vor.u32 %v5784_v31, %v4336_v29  ;;  %v4304_v36 = vld [vmem:[%s6921_s23 + $0xc0] sm:$0xf]  ;;  %v5777_v37 = vld [vmem:[%s6921_s23 + $0xd4] sm:$0xf0]  ;;  %v5774_v38 = vld [vmem:[%s6921_s23 + $0xc4] sm:$0xf]  ;;  %v4341_v39 = vor.u32 %v5781_v32, %v4338_v33 }
  0x8b   : > { %1215 = vmatpush.bf16.msra.mxu3 %v4365_v26  ;;  %v4306_v40 = vld [vmem:[%s6921_s23 + $0xd8] sm:$0xf0]  ;;  %v4312_v41 = vld [vmem:[%s6921_s23 + $0xc8] sm:$0xf]  ;;  %v5778_v42 = vld [vmem:[%s6921_s23 + $0xdc] sm:$0xf0]  ;;  %v4305_v45 = vor.u32 %v5777_v37, %v4304_v36 }
  0x8c   : > { %v5775_v43 = vld [vmem:[%s6921_s23 + $0xcc] sm:$0xf]  ;;  %v4314_v44 = vld [vmem:[%s6921_s23 + $0xe0] sm:$0xf0]  ;;  %v4309_v46 = vor.u32 %v5774_v38, %v4306_v40  ;;  %v4313_v47 = vor.u32 %v5778_v42, %v4312_v41  ;;  %v4280_v48 = vld [vmem:[%s6921_s23 + $0x90] sm:$0xf] }
  0x8d   : > { %1177 = vmatpush.bf16.msra.mxu0 %v4329_v30  ;;  %v5771_v49 = vld [vmem:[%s6921_s23 + $0xa4] sm:$0xf0]  ;;  %v5768_v50 = vld [vmem:[%s6921_s23 + $0x94] sm:$0xf]  ;;  %v4317_v51 = vor.u32 %v5775_v43, %v4314_v44  ;;  %v4282_v52 = vld [vmem:[%s6921_s23 + $0xa8] sm:$0xf0] }
  0x8e   : > { %1190 = vmatpush.bf16.msra.mxu1 %v4333_v34  ;;  %1203 = vmatpush.bf16.msra.mxu2 %v4337_v35  ;;  %v4288_v53 = vld [vmem:[%s6921_s23 + $0x98] sm:$0xf]  ;;  %v5772_v54 = vld [vmem:[%s6921_s23 + $0xac] sm:$0xf0]  ;;  %v5769_v55 = vld [vmem:[%s6921_s23 + $0x9c] sm:$0xf]  ;;  %v4281_v57 = vor.u32 %v5771_v49, %v4280_v48  ;;  %v4285_v58 = vor.u32 %v5768_v50, %v4282_v52 }
  0x8f   : > { %1216 = vmatpush.bf16.msra.mxu3 %v4341_v39  ;;  %v4290_v56 = vld [vmem:[%s6921_s23 + $0xb0] sm:$0xf0]  ;;  %v4289_v59 = vor.u32 %v5772_v54, %v4288_v53  ;;  %v4256_v60 = vld [vmem:[%s6921_s23 + $0x60] sm:$0xf]  ;;  %v5765_v61 = vld [vmem:[%s6921_s23 + $0x74] sm:$0xf0] }
  0x90   : > { %v5762_v62 = vld [vmem:[%s6921_s23 + $0x64] sm:$0xf]  ;;  %v4293_v63 = vor.u32 %v5769_v55, %v4290_v56  ;;  %v4258_v0 = vld [vmem:[%s6921_s23 + $0x78] sm:$0xf0]  ;;  %v4264_v1 = vld [vmem:[%s6921_s23 + $0x68] sm:$0xf]  ;;  %v4257_v5 = vor.u32 %v5765_v61, %v4256_v60 }
  0x91   : > { %1178 = vmatpush.bf16.msra.mxu0 %v4305_v45  ;;  %v5766_v2 = vld [vmem:[%s6921_s23 + $0x7c] sm:$0xf0]  ;;  %v5763_v3 = vld [vmem:[%s6921_s23 + $0x6c] sm:$0xf]  ;;  %v4266_v4 = vld [vmem:[%s6921_s23 + $0x80] sm:$0xf0]  ;;  %v4261_v6 = vor.u32 %v5762_v62, %v4258_v0 }
  0x92   : > { %1191 = vmatpush.bf16.msra.mxu1 %v4309_v46  ;;  %1204 = vmatpush.bf16.msra.mxu2 %v4313_v47  ;;  %v4265_v7 = vor.u32 %v5766_v2, %v4264_v1  ;;  %v4232_v8 = vld [vmem:[%s6921_s23 + $0x30] sm:$0xf]  ;;  %v5759_v9 = vld [vmem:[%s6921_s23 + $0x44] sm:$0xf0]  ;;  %v5756_v10 = vld [vmem:[%s6921_s23 + $0x34] sm:$0xf]  ;;  %v4269_v11 = vor.u32 %v5763_v3, %v4266_v4 }
  0x93   : > { %1217 = vmatpush.bf16.msra.mxu3 %v4317_v51  ;;  %v4234_v12 = vld [vmem:[%s6921_s23 + $0x48] sm:$0xf0]  ;;  %v4240_v13 = vld [vmem:[%s6921_s23 + $0x38] sm:$0xf]  ;;  %v5760_v14 = vld [vmem:[%s6921_s23 + $0x4c] sm:$0xf0]  ;;  %v4233_v17 = vor.u32 %v5759_v9, %v4232_v8 }
  0x94   : > { %v5757_v15 = vld [vmem:[%s6921_s23 + $0x3c] sm:$0xf]  ;;  %v4242_v16 = vld [vmem:[%s6921_s23 + $0x50] sm:$0xf0]  ;;  %v4208_v18 = vld [vmem:[%s6921_s23] sm:$0xf]  ;;  %v4237_v20 = vor.u32 %v5756_v10, %v4234_v12  ;;  %v4241_v21 = vor.u32 %v5760_v14, %v4240_v13 }
  0x95   : > { %1179 = vmatpush.bf16.msra.mxu0 %v4281_v57  ;;  %v5753_v19 = vld [vmem:[%s6921_s23 + $0x14] sm:$0xf0]  ;;  %v5750_v22 = vld [vmem:[%s6921_s23 + $0x4] sm:$0xf]  ;;  %v4210_v23 = vld [vmem:[%s6921_s23 + $0x18] sm:$0xf0]  ;;  %v4245_v25 = vor.u32 %v5757_v15, %v4242_v16 }
  0x96   : > { %1192 = vmatpush.bf16.msra.mxu1 %v4285_v58  ;;  %1205 = vmatpush.bf16.msra.mxu2 %v4289_v59  ;;  %v4216_v24 = vld [vmem:[%s6921_s23 + $0x8] sm:$0xf]  ;;  %v5754_v26 = vld [vmem:[%s6921_s23 + $0x1c] sm:$0xf0]  ;;  %v5751_v27 = vld [vmem:[%s6921_s23 + $0xc] sm:$0xf]  ;;  %v4209_v32 = vor.u32 %v5753_v19, %v4208_v18  ;;  %v4213_v36 = vor.u32 %v5750_v22, %v4210_v23 }
  0x97   : > { %1218 = vmatpush.bf16.msra.mxu3 %v4293_v63  ;;  %v4218_v28 = vld [vmem:[%s6921_s23 + $0x20] sm:$0xf0]  ;;  %v4392_v29 = vld [vmem:[%s6921_s23 + $0x160] sm:$0xf]  ;;  %v5797_v30 = vld [vmem:[%s6921_s23 + $0x174] sm:$0xf0]  ;;  %v4217_v37 = vor.u32 %v5754_v26, %v4216_v24 }
  0x98   : > { %v5794_v31 = vld [vmem:[%s6921_s23 + $0x164] sm:$0xf]  ;;  %v4394_v33 = vld [vmem:[%s6921_s23 + $0x178] sm:$0xf0]  ;;  %v4568_v34 = vld [vmem:[%s6921_s23 + $0x2d0] sm:$0xf]  ;;  %v4221_v40 = vor.u32 %v5751_v27, %v4218_v28  ;;  %v4393_v41 = vor.u32 %v5797_v30, %v4392_v29 }
  0x99   : > { %1180 = vmatpush.bf16.msra.mxu0 %v4257_v5  ;;  %v5843_v35 = vld [vmem:[%s6921_s23 + $0x2e4] sm:$0xf0]  ;;  %v5840_v38 = vld [vmem:[%s6921_s23 + $0x2d4] sm:$0xf]  ;;  %v4570_v39 = vld [vmem:[%s6921_s23 + $0x2e8] sm:$0xf0]  ;;  %v4397_v42 = vor.u32 %v5794_v31, %v4394_v33 }
  0x9a   : > { %1193 = vmatpush.bf16.msra.mxu1 %v4261_v6  ;;  %1206 = vmatpush.bf16.msra.mxu2 %v4265_v7  ;;  %v4569_v43 = vor.u32 %v5843_v35, %v4568_v34  ;;  %v4368_v44 = vld [vmem:[%s6921_s23 + $0x130] sm:$0xf]  ;;  %v5791_v45 = vld [vmem:[%s6921_s23 + $0x144] sm:$0xf0]  ;;  %v5788_v46 = vld [vmem:[%s6921_s23 + $0x134] sm:$0xf]  ;;  %v4573_v47 = vor.u32 %v5840_v38, %v4570_v39 }
  0x9b   : > { %1219 = vmatpush.bf16.msra.mxu3 %v4269_v11  ;;  %v4370_v48 = vld [vmem:[%s6921_s23 + $0x148] sm:$0xf0]  ;;  %v4544_v49 = vld [vmem:[%s6921_s23 + $0x2a0] sm:$0xf]  ;;  %v5837_v50 = vld [vmem:[%s6921_s23 + $0x2b4] sm:$0xf0]  ;;  %v4369_v54 = vor.u32 %v5791_v45, %v4368_v44 }
  0x9c   : > { %v5834_v51 = vld [vmem:[%s6921_s23 + $0x2a4] sm:$0xf]  ;;  %v4546_v52 = vld [vmem:[%s6921_s23 + $0x2b8] sm:$0xf0]  ;;  %v4344_v55 = vld [vmem:[%s6921_s23 + $0x100] sm:$0xf]  ;;  %v4373_v58 = vor.u32 %v5788_v46, %v4370_v48  ;;  %v4545_v59 = vor.u32 %v5837_v50, %v4544_v49 }
  0x9d   : > { %1181 = vmatpush.bf16.msra.mxu0 %v4233_v17  ;;  %v903_v53 = vld [vmem:[%s6928_s17] sm:$0xff]  ;;  %v5785_v56 = vld [vmem:[%s6921_s23 + $0x114] sm:$0xf0]  ;;  %v4346_v61 = vld [vmem:[%s6921_s23 + $0x118] sm:$0xf0]  ;;  %vm907_vm1 = vcmask 1040384   ;;  %v4549_v62 = vor.u32 %v5834_v51, %v4546_v52 }
  0x9e   : > { %1194 = vmatpush.bf16.msra.mxu1 %v4237_v20  ;;  %1207 = vmatpush.bf16.msra.mxu2 %v4241_v21  ;;  %v7040_v57 = vpack.c.bf16 %v903_v53, %v903_v53  ;;  %v5782_v60 = vld [vmem:[%s6921_s23 + $0x104] sm:$0xf]  ;;  %v4520_v63 = vld [vmem:[%s6921_s23 + $0x270] sm:$0xf]  ;;  %v5831_v0 = vld [vmem:[%s6921_s23 + $0x284] sm:$0xf0]  ;;  %v4345_v4 = vor.u32 %v5785_v56, %v4344_v55 }
  0x9f   : > { %1220 = vmatpush.bf16.msra.mxu3 %v4245_v25  ;;  %3661 = vadd.xlane.f32.xlu0 %v903_v53  ;;  %v5828_v2 = vld [vmem:[%s6921_s23 + $0x274] sm:$0xf]  ;;  %v4522_v3 = vld [vmem:[%s6921_s23 + $0x288] sm:$0xf0]  ;;  %v4349_v6 = vor.u32 %v5782_v60, %v4346_v61  ;;  %v4521_v7 = vor.u32 %v5831_v0, %v4520_v63  ;;  %v4320_v8 = vld [vmem:[%s6921_s23 + $0xd0] sm:$0xf] }
  0xa0   : > { %v7047_v1 = vrot.slane %v7040_v57, 3  ;;  %v5779_v9 = vld [vmem:[%s6921_s23 + $0xe4] sm:$0xf0]  ;;  %v5776_v10 = vld [vmem:[%s6921_s23 + $0xd4] sm:$0xf]  ;;  %v4525_v12 = vor.u32 %v5828_v2, %v4522_v3  ;;  %vm912_vm2 = vcmask 1041409  }
  0xa1   : > { %1182 = vmatpush.bf16.msra.mxu0 %v4209_v32  ;;  %v4322_v13 = vld [vmem:[%s6921_s23 + $0xe8] sm:$0xf0]  ;;  %v4496_v14 = vld [vmem:[%s6921_s23 + $0x240] sm:$0xf]  ;;  %v5825_v15 = vld [vmem:[%s6921_s23 + $0x254] sm:$0xf0]  ;;  %v4321_v19 = vor.u32 %v5779_v9, %v4320_v8 }
  0xa2   : > { %1195 = vmatpush.bf16.msra.mxu1 %v4213_v36  ;;  %1208 = vmatpush.bf16.msra.mxu2 %v4217_v37  ;;  %v7053_v5 = vsel %vm907_vm1, %v7040_v57, %v7047_v1  ;;  %v5822_v16 = vld [vmem:[%s6921_s23 + $0x244] sm:$0xf]  ;;  %v4498_v17 = vld [vmem:[%s6921_s23 + $0x258] sm:$0xf0]  ;;  %v4325_v20 = vor.u32 %v5776_v10, %v4322_v13  ;;  %v4497_v21 = vor.u32 %v5825_v15, %v4496_v14  ;;  %v4296_v22 = vld [vmem:[%s6921_s23 + $0xa0] sm:$0xf] }
  0xa3   : > { %1221 = vmatpush.bf16.msra.mxu3 %v4221_v40  ;;  %v4205_v11 = vpack.i.b16 %v7053_v5, %v7053_v5  ;;  %v5773_v23 = vld [vmem:[%s6921_s23 + $0xb4] sm:$0xf0]  ;;  %v5770_v24 = vld [vmem:[%s6921_s23 + $0xa4] sm:$0xf]  ;;  %v4501_v25 = vor.u32 %v5822_v16, %v4498_v17  ;;  %v4298_v26 = vld [vmem:[%s6921_s23 + $0xb8] sm:$0xf0]  ;;  %v925_v53 = vunpack.i.h.s16 %v7053_v5 }
  0xa4   : > { %v4472_v27 = vld [vmem:[%s6921_s23 + $0x210] sm:$0xf]  ;;  %v5819_v28 = vld [vmem:[%s6921_s23 + $0x224] sm:$0xf0]  ;;  %v5816_v29 = vld [vmem:[%s6921_s23 + $0x214] sm:$0xf]  ;;  %v4297_v31 = vor.u32 %v5773_v23, %v4296_v22  ;;  %v4301_v32 = vor.u32 %v5770_v24, %v4298_v26 }
  0xa5   : > { %1227 = vmatpush.bf16.msrb.mxu0 %v4393_v41  ;;  %v7065_v18 = vperm.slane %v4205_v11, 0  ;;  %v4474_v30 = vld [vmem:[%s6921_s23 + $0x228] sm:$0xf0]  ;;  %v4473_v33 = vor.u32 %v5819_v28, %v4472_v27  ;;  %v4272_v34 = vld [vmem:[%s6921_s23 + $0x70] sm:$0xf]  ;;  %vm916_vm3 = vcmask 1042434  }
  0xa6   : > { %1240 = vmatpush.bf16.msrb.mxu1 %v4397_v42  ;;  %1496 = vmatpush.bf16.msrb.mxu2 %v4569_v43  ;;  %v5767_v35 = vld [vmem:[%s6921_s23 + $0x84] sm:$0xf0]  ;;  %v5764_v36 = vld [vmem:[%s6921_s23 + $0x74] sm:$0xf]  ;;  %v4477_v37 = vor.u32 %v5816_v29, %v4474_v30  ;;  %v4274_v38 = vld [vmem:[%s6921_s23 + $0x88] sm:$0xf0] }
  0xa7   : > { %1509 = vmatpush.bf16.msrb.mxu3 %v4573_v47  ;;  %1209 = vmatmul.bf16.vlgmr.msra.gmra.mxu2 %v7065_v18  ;;  %v4448_v39 = vld [vmem:[%s6921_s23 + $0x1e0] sm:$0xf]  ;;  %v5813_v40 = vld [vmem:[%s6921_s23 + $0x1f4] sm:$0xf0]  ;;  %v5810_v41 = vld [vmem:[%s6921_s23 + $0x1e4] sm:$0xf]  ;;  %v4273_v43 = vor.u32 %v5767_v35, %v4272_v34  ;;  %v4277_v44 = vor.u32 %v5764_v36, %v4274_v38 }
  0xa8   : > { %1222 = vmatmul.bf16.vlgmr.msra.gmra.mxu3 %v7065_v18  ;;  %1183 = vmatmul.bf16.vlgmr.msra.gmra.mxu0 %v7065_v18  ;;  %v4450_v42 = vld [vmem:[%s6921_s23 + $0x1f8] sm:$0xf0]  ;;  %v4449_v45 = vor.u32 %v5813_v40, %v4448_v39  ;;  %v4248_v46 = vld [vmem:[%s6921_s23 + $0x40] sm:$0xf]  ;;  %v5761_v47 = vld [vmem:[%s6921_s23 + $0x54] sm:$0xf0] }
  0xa9   : > { %1228 = vmatpush.bf16.msrb.mxu0 %v4369_v54  ;;  %1196 = vmatmul.bf16.vlgmr.msra.gmra.mxu1 %v7065_v18  ;;  %v5758_v48 = vld [vmem:[%s6921_s23 + $0x44] sm:$0xf]  ;;  %v4453_v49 = vor.u32 %v5810_v41, %v4450_v42  ;;  %v4250_v50 = vld [vmem:[%s6921_s23 + $0x58] sm:$0xf0]  ;;  %v4424_v51 = vld [vmem:[%s6921_s23 + $0x1b0] sm:$0xf]  ;;  %v4249_v56 = vor.u32 %v5761_v47, %v4248_v46 }
  0xaa   : > { %1241 = vmatpush.bf16.msrb.mxu1 %v4373_v58  ;;  %1497 = vmatpush.bf16.msrb.mxu2 %v4545_v59  ;;  %v5807_v52 = vld [vmem:[%s6921_s23 + $0x1c4] sm:$0xf0]  ;;  %v5804_v54 = vld [vmem:[%s6921_s23 + $0x1b4] sm:$0xf]  ;;  %v4426_v55 = vld [vmem:[%s6921_s23 + $0x1c8] sm:$0xf0]  ;;  %v4253_v60 = vor.u32 %v5758_v48, %v4250_v50 }
  0xab   : > { %1510 = vmatpush.bf16.msrb.mxu3 %v4549_v62  ;;  %v4224_v58 = vld [vmem:[%s6921_s23 + $0x10] sm:$0xf]  ;;  %v5755_v59 = vld [vmem:[%s6921_s23 + $0x24] sm:$0xf0]  ;;  %v4425_v61 = vor.u32 %v5807_v52, %v4424_v51  ;;  %v5752_v62 = vld [vmem:[%s6921_s23 + $0x14] sm:$0xf]  ;;  %v4429_v2 = vor.u32 %v5804_v54, %v4426_v55 }
  0xac   : > { %v4226_v63 = vld [vmem:[%s6921_s23 + $0x28] sm:$0xf0]  ;;  %v4400_v0 = vld [vmem:[%s6921_s23 + $0x180] sm:$0xf]  ;;  %v5801_v3 = vld [vmem:[%s6921_s23 + $0x194] sm:$0xf0]  ;;  %v4225_v10 = vor.u32 %v5755_v59, %v4224_v58 }
  0xad   : > { %1229 = vmatpush.bf16.msrb.mxu0 %v4345_v4  ;;  %v5798_v4 = vld [vmem:[%s6921_s23 + $0x184] sm:$0xf]  ;;  %v4402_v5 = vld [vmem:[%s6921_s23 + $0x198] sm:$0xf0]  ;;  %v5844_v8 = vld [vmem:[%s6921_s23 + $0x2ec] sm:$0xf0]  ;;  %v4229_v14 = vor.u32 %v5752_v62, %v4226_v63  ;;  %v4401_v15 = vor.u32 %v5801_v3, %v4400_v0 }
  0xae   : > { %1242 = vmatpush.bf16.msrb.mxu1 %v4349_v6  ;;  %1498 = vmatpush.bf16.msrb.mxu2 %v4521_v7  ;;  %v1253_v6 = vpack.i.b16 %v925_v53, %v925_v53  ;;  %v4576_v7 = vld [vmem:[%s6921_s23 + $0x2d8] sm:$0xf]  ;;  %v5841_v9 = vld [vmem:[%s6921_s23 + $0x2dc] sm:$0xf]  ;;  %v4578_v11 = vld [vmem:[%s6921_s23 + $0x2f0] sm:$0xf0] }
  0xaf   : > { %1511 = vmatpush.bf16.msrb.mxu3 %v4525_v12  ;;  %v4584_v12 = vld [vmem:[%s6921_s23 + $0x2e0] sm:$0xf]  ;;  %v5845_v13 = vld [vmem:[%s6921_s23 + $0x2f4] sm:$0xf0]  ;;  %v5842_v16 = vld [vmem:[%s6921_s23 + $0x2e4] sm:$0xf]  ;;  %v4581_v22 = vor.u32 %v5841_v9, %v4578_v11 }
  0xb0   : > { %v4586_v17 = vld [vmem:[%s6921_s23 + $0x2f8] sm:$0xf0]  ;;  %v4585_v23 = vor.u32 %v5845_v13, %v4584_v12  ;;  %v4552_v24 = vld [vmem:[%s6921_s23 + $0x2a8] sm:$0xf]  ;;  %v5835_v26 = vld [vmem:[%s6921_s23 + $0x2ac] sm:$0xf] }
  0xb1   : > { %1230 = vmatpush.bf16.msrb.mxu0 %v4321_v19  ;;  %v4405_v19 = vor.u32 %v5798_v4, %v4402_v5  ;;  %v4589_v27 = vor.u32 %v5842_v16, %v4586_v17  ;;  %v4554_v28 = vld [vmem:[%s6921_s23 + $0x2c0] sm:$0xf0]  ;;  %v4560_v29 = vld [vmem:[%s6921_s23 + $0x2b0] sm:$0xf]  ;;  %v5839_v30 = vld [vmem:[%s6921_s23 + $0x2c4] sm:$0xf0] }
  0xb2   : > { %1243 = vmatpush.bf16.msrb.mxu1 %v4325_v20  ;;  %1499 = vmatpush.bf16.msrb.mxu2 %v4497_v21  ;;  %v4577_v20 = vor.u32 %v5844_v8, %v4576_v7  ;;  %v7112_v21 = vperm.slane %v1253_v6, 0  ;;  %v4557_v34 = vor.u32 %v5835_v26, %v4554_v28  ;;  %v4561_v35 = vor.u32 %v5839_v30, %v4560_v29  ;;  %v4528_v36 = vld [vmem:[%s6921_s23 + $0x278] sm:$0xf]  ;;  %v5829_v38 = vld [vmem:[%s6921_s23 + $0x27c] sm:$0xf]  ;;  %s8059_s16 = sld [smem:[#allocation31_spill]] }
  0xb3   : > { %1512 = vmatpush.bf16.msrb.mxu3 %v4501_v25  ;;  %v5838_v25 = vld [vmem:[%s6921_s23 + $0x2bc] sm:$0xf0]  ;;  %v4530_v40 = vld [vmem:[%s6921_s23 + $0x290] sm:$0xf0]  ;;  %v5833_v42 = vld [vmem:[%s6921_s23 + $0x294] sm:$0xf0] }
  0xb4   : > { %v4536_v41 = vld [vmem:[%s6921_s23 + $0x280] sm:$0xf]  ;;  %v4533_v46 = vor.u32 %v5829_v38, %v4530_v40  ;;  %v4504_v48 = vld [vmem:[%s6921_s23 + $0x248] sm:$0xf]  ;;  %v5823_v50 = vld [vmem:[%s6921_s23 + $0x24c] sm:$0xf] }
  0xb5   : > { %1231 = vmatpush.bf16.msrb.mxu0 %v4297_v31  ;;  %v5836_v31 = vld [vmem:[%s6921_s23 + $0x2b4] sm:$0xf]  ;;  %v4537_v47 = vor.u32 %v5833_v42, %v4536_v41  ;;  %v4506_v52 = vld [vmem:[%s6921_s23 + $0x260] sm:$0xf0]  ;;  %v4512_v53 = vld [vmem:[%s6921_s23 + $0x250] sm:$0xf] }
  0xb6   : > { %1244 = vmatpush.bf16.msrb.mxu1 %v4301_v32  ;;  %1500 = vmatpush.bf16.msrb.mxu2 %v4473_v33  ;;  %v4562_v32 = vld [vmem:[%s6921_s23 + $0x2c8] sm:$0xf0]  ;;  %v4553_v33 = vor.u32 %v5838_v25, %v4552_v24  ;;  %v5827_v54 = vld [vmem:[%s6921_s23 + $0x264] sm:$0xf0]  ;;  %v5824_v55 = vld [vmem:[%s6921_s23 + $0x254] sm:$0xf]  ;;  %v4509_v58 = vor.u32 %v5823_v50, %v4506_v52 }
  0xb7   : > { %1513 = vmatpush.bf16.msrb.mxu3 %v4477_v37  ;;  %v5832_v37 = vld [vmem:[%s6921_s23 + $0x28c] sm:$0xf0]  ;;  %v4565_v39 = vor.u32 %v5836_v31, %v4562_v32  ;;  %v4513_v59 = vor.u32 %v5827_v54, %v4512_v53  ;;  %v5817_v62 = vld [vmem:[%s6921_s23 + $0x21c] sm:$0xf]  ;;  %v4482_v0 = vld [vmem:[%s6921_s23 + $0x230] sm:$0xf0] }
  0xb8   : > { %v5821_v3 = vld [vmem:[%s6921_s23 + $0x234] sm:$0xf0]  ;;  %v5818_v4 = vld [vmem:[%s6921_s23 + $0x224] sm:$0xf]  ;;  %v4490_v5 = vld [vmem:[%s6921_s23 + $0x238] sm:$0xf0]  ;;  %v4485_v7 = vor.u32 %v5817_v62, %v4482_v0 }
  0xb9   : > { %1232 = vmatpush.bf16.msrb.mxu0 %v4273_v43  ;;  %v5830_v43 = vld [vmem:[%s6921_s23 + $0x284] sm:$0xf]  ;;  %v4456_v9 = vld [vmem:[%s6921_s23 + $0x1e8] sm:$0xf]  ;;  %v5811_v11 = vld [vmem:[%s6921_s23 + $0x1ec] sm:$0xf]  ;;  %v4493_v12 = vor.u32 %v5818_v4, %v4490_v5 }
  0xba   : > { %1245 = vmatpush.bf16.msrb.mxu1 %v4277_v44  ;;  %1501 = vmatpush.bf16.msrb.mxu2 %v4449_v45  ;;  %v4538_v44 = vld [vmem:[%s6921_s23 + $0x298] sm:$0xf0]  ;;  %v4529_v45 = vor.u32 %v5832_v37, %v4528_v36  ;;  %v4458_v13 = vld [vmem:[%s6921_s23 + $0x200] sm:$0xf0]  ;;  %v5812_v16 = vld [vmem:[%s6921_s23 + $0x1f4] sm:$0xf] }
  0xbb   : > { %1514 = vmatpush.bf16.msrb.mxu3 %v4453_v49  ;;  %v5826_v49 = vld [vmem:[%s6921_s23 + $0x25c] sm:$0xf0]  ;;  %v4541_v51 = vor.u32 %v5830_v43, %v4538_v44  ;;  %v4466_v17 = vld [vmem:[%s6921_s23 + $0x208] sm:$0xf0]  ;;  %v5808_v24 = vld [vmem:[%s6921_s23 + $0x1cc] sm:$0xf0] }
  0xbc   : > { %v5805_v25 = vld [vmem:[%s6921_s23 + $0x1bc] sm:$0xf]  ;;  %v4469_v26 = vor.u32 %v5812_v16, %v4466_v17  ;;  %v4440_v28 = vld [vmem:[%s6921_s23 + $0x1c0] sm:$0xf]  ;;  %v5809_v29 = vld [vmem:[%s6921_s23 + $0x1d4] sm:$0xf0] }
  0xbd   : > { %1233 = vmatpush.bf16.msrb.mxu0 %v4249_v56  ;;  %v4505_v56 = vor.u32 %v5826_v49, %v4504_v48  ;;  %v5806_v30 = vld [vmem:[%s6921_s23 + $0x1c4] sm:$0xf]  ;;  %v4442_v31 = vld [vmem:[%s6921_s23 + $0x1d8] sm:$0xf0]  ;;  %v4441_v36 = vor.u32 %v5809_v29, %v4440_v28  ;;  %v5799_v37 = vld [vmem:[%s6921_s23 + $0x18c] sm:$0xf] }
  0xbe   : > { %1246 = vmatpush.bf16.msrb.mxu1 %v4253_v60  ;;  %1502 = vmatpush.bf16.msrb.mxu2 %v4425_v61  ;;  %v4480_v60 = vld [vmem:[%s6921_s23 + $0x218] sm:$0xf]  ;;  %v5820_v61 = vld [vmem:[%s6921_s23 + $0x22c] sm:$0xf0]  ;;  %v4410_v38 = vld [vmem:[%s6921_s23 + $0x1a0] sm:$0xf0]  ;;  %v4445_v40 = vor.u32 %v5806_v30, %v4442_v31 }
  0xbf   : > { %1515 = vmatpush.bf16.msrb.mxu3 %v4429_v2  ;;  %v4488_v2 = vld [vmem:[%s6921_s23 + $0x220] sm:$0xf]  ;;  %v4481_v6 = vor.u32 %v5820_v61, %v4480_v60  ;;  %v5803_v41 = vld [vmem:[%s6921_s23 + $0x1a4] sm:$0xf0]  ;;  %v5800_v42 = vld [vmem:[%s6921_s23 + $0x194] sm:$0xf] }
  0xc0   : > { %v4489_v8 = vor.u32 %v5821_v3, %v4488_v2  ;;  %v4418_v43 = vld [vmem:[%s6921_s23 + $0x1a8] sm:$0xf0]  ;;  %v4761_v44 = vld [vmem:[%s6921_s23 + $0x450] sm:$0xf]  ;;  %v4769_v49 = vld [vmem:[%s6921_s23 + $0x458] sm:$0xf] }
  0xc1   : > { %1234 = vmatpush.bf16.msrb.mxu0 %v4225_v10  ;;  %v5814_v10 = vld [vmem:[%s6921_s23 + $0x1fc] sm:$0xf0]  ;;  %v4763_v48 = vld [vmem:[%s6921_s23 + $0x468] sm:$0xf0]  ;;  %v5892_v50 = vld [vmem:[%s6921_s23 + $0x46c] sm:$0xf0] }
  0xc2   : > { %1247 = vmatpush.bf16.msrb.mxu1 %v4229_v14  ;;  %1503 = vmatpush.bf16.msrb.mxu2 %v4401_v15  ;;  %v4464_v14 = vld [vmem:[%s6921_s23 + $0x1f0] sm:$0xf]  ;;  %v5815_v15 = vld [vmem:[%s6921_s23 + $0x204] sm:$0xf0]  ;;  %v5889_v53 = vld [vmem:[%s6921_s23 + $0x45c] sm:$0xf] }
  0xc3   : > { %1516 = vmatpush.bf16.msrb.mxu3 %v4405_v19  ;;  %v4457_v19 = vor.u32 %v5814_v10, %v4456_v9  ;;  %v4771_v54 = vld [vmem:[%s6921_s23 + $0x470] sm:$0xf0]  ;;  %v5885_v60 = vld [vmem:[%s6921_s23 + $0x434] sm:$0xf0]  ;;  %v5882_v61 = vld [vmem:[%s6921_s23 + $0x424] sm:$0xf] }
  0xc4   : > { %1235 = vmatmul.bf16.vlgmr.msrb.gmra.mxu0 %v7065_v18  ;;  %v4774_v62 = vor.u32 %v5889_v53, %v4771_v54  ;;  %v4745_v0 = vld [vmem:[%s6921_s23 + $0x428] sm:$0xf]  ;;  %v5886_v2 = vld [vmem:[%s6921_s23 + $0x43c] sm:$0xf0]  ;;  %v5883_v3 = vld [vmem:[%s6921_s23 + $0x42c] sm:$0xf] }
  0xc5   : > { %1522 = vmatpush.bf16.msra.mxu0 %v4577_v20  ;;  %1504 = vmatmul.bf16.vlgmr.msrb.gmra.mxu2 %v7112_v21  ;;  %v4461_v20 = vor.u32 %v5811_v11, %v4458_v13  ;;  %v4747_v4 = vld [vmem:[%s6921_s23 + $0x440] sm:$0xf0]  ;;  %v5879_v9 = vld [vmem:[%s6921_s23 + $0x404] sm:$0xf0]  ;;  %v5876_v10 = vld [vmem:[%s6921_s23 + $0x3f4] sm:$0xf] }
  0xc6   : > { %1535 = vmatpush.bf16.msra.mxu1 %v4581_v22  ;;  %1548 = vmatpush.bf16.msra.mxu2 %v4585_v23  ;;  %v4465_v22 = vor.u32 %v5815_v15, %v4464_v14  ;;  %v4432_v23 = vld [vmem:[%s6921_s23 + $0x1b8] sm:$0xf]  ;;  %v4750_v11 = vor.u32 %v5883_v3, %v4747_v4  ;;  %v5880_v14 = vld [vmem:[%s6921_s23 + $0x40c] sm:$0xf0]  ;;  %v5877_v15 = vld [vmem:[%s6921_s23 + $0x3fc] sm:$0xf] }
  0xc7   : > { %1561 = vmatpush.bf16.msra.mxu3 %v4589_v27  ;;  %1248 = vmatmul.bf16.vlgmr.msrb.gmra.mxu1 %v7065_v18  ;;  %v4514_v18 = vld [vmem:[%s6921_s23 + $0x268] sm:$0xf0]  ;;  %v4434_v27 = vld [vmem:[%s6921_s23 + $0x1d0] sm:$0xf0]  ;;  %v4433_v32 = vor.u32 %v5808_v24, %v4432_v23  ;;  %v4721_v13 = vld [vmem:[%s6921_s23 + $0x3f8] sm:$0xf] }
  0xc8   : > { %1517 = vmatmul.bf16.vlgmr.msrb.gmra.mxu3 %v7112_v21  ;;  %v4517_v63 = vor.u32 %v5824_v55, %v4514_v18  ;;  %v4421_v55 = vor.u32 %v5800_v42, %v4418_v43  ;;  %v4723_v16 = vld [vmem:[%s6921_s23 + $0x410] sm:$0xf0]  ;;  %v5873_v23 = vld [vmem:[%s6921_s23 + $0x3d4] sm:$0xf0]  ;;  %v5870_v24 = vld [vmem:[%s6921_s23 + $0x3c4] sm:$0xf] }
  0xc9   : > { %1523 = vmatpush.bf16.msra.mxu0 %v4553_v33  ;;  %v4408_v33 = vld [vmem:[%s6921_s23 + $0x188] sm:$0xf]  ;;  %v5871_v28 = vld [vmem:[%s6921_s23 + $0x3cc] sm:$0xf]  ;;  %v4699_v29 = vld [vmem:[%s6921_s23 + $0x3e0] sm:$0xf0] }
  0xca   : > { %1536 = vmatpush.bf16.msra.mxu1 %v4557_v34  ;;  %1549 = vmatpush.bf16.msra.mxu2 %v4561_v35  ;;  %v5802_v34 = vld [vmem:[%s6921_s23 + $0x19c] sm:$0xf0]  ;;  %v4437_v35 = vor.u32 %v5805_v25, %v4434_v27  ;;  %v4726_v25 = vor.u32 %v5877_v15, %v4723_v16  ;;  %v4697_v27 = vld [vmem:[%s6921_s23 + $0x3c8] sm:$0xf]  ;;  %v4651_v53 = vld [vmem:[%s6921_s23 + $0x380] sm:$0xf0] }
  0xcb   : > { %1562 = vmatpush.bf16.msra.mxu3 %v4565_v39  ;;  %v4416_v39 = vld [vmem:[%s6921_s23 + $0x190] sm:$0xf]  ;;  %v4641_v43 = vld [vmem:[%s6921_s23 + $0x360] sm:$0xf]  ;;  %v4627_v3 = vld [vmem:[%s6921_s23 + $0x350] sm:$0xf0] }
  0xcc   : > { %v4417_v52 = vor.u32 %v5803_v41, %v4416_v39  ;;  %v5868_v39 = vld [vmem:[%s6921_s23 + $0x3ac] sm:$0xf0]  ;;  %v4675_v41 = vld [vmem:[%s6921_s23 + $0x3b0] sm:$0xf0]  ;;  %v5847_v15 = vld [vmem:[%s6921_s23 + $0x30c] sm:$0xf] }
  0xcd   : > { %1524 = vmatpush.bf16.msra.mxu0 %v4529_v45  ;;  %v5891_v45 = vld [vmem:[%s6921_s23 + $0x464] sm:$0xf0]  ;;  %v4603_v16 = vld [vmem:[%s6921_s23 + $0x320] sm:$0xf0]  ;;  %vm920_vm4 = vcmask 1043459   ;;  %vm3561_vm5 = vcmask 1044484  }
  0xce   : > { %1537 = vmatpush.bf16.msra.mxu1 %v4533_v46  ;;  %1550 = vmatpush.bf16.msra.mxu2 %v4537_v47  ;;  %v5888_v46 = vld [vmem:[%s6921_s23 + $0x454] sm:$0xf]  ;;  %v4409_v47 = vor.u32 %v5802_v34, %v4408_v33  ;;  %v4762_v18 = vor.u32 %v5891_v45, %v4761_v44  ;;  %v4665_v33 = vld [vmem:[%s6921_s23 + $0x390] sm:$0xf]  ;;  %v5867_v34 = vld [vmem:[%s6921_s23 + $0x3a4] sm:$0xf0] }
  0xcf   : > { %1563 = vmatpush.bf16.msra.mxu3 %v4541_v51  ;;  %v4413_v51 = vor.u32 %v5799_v37, %v4410_v38  ;;  %v4667_v37 = vld [vmem:[%s6921_s23 + $0x3a8] sm:$0xf0]  ;;  %v4673_v38 = vld [vmem:[%s6921_s23 + $0x398] sm:$0xf]  ;;  %v4666_v42 = vor.u32 %v5867_v34, %v4665_v33  ;;  %vm3564_vm6 = vcmask 1045509   ;;  %vm3567_vm7 = vcmask 1046534  }
  0xd0   : > { %v4674_v45 = vor.u32 %v5868_v39, %v4673_v38  ;;  %vm3570_vm8 = vcmask 1047559   ;;  %vm3664_vm9 = vcmask 7168   ;;  %p5745_p6 = scmp.ne.s32.totalorder %s8059_s16, 1 }
  0xd1   : > { %1525 = vmatpush.bf16.msra.mxu0 %v4505_v56  ;;  %v4766_v56 = vor.u32 %v5888_v46, %v4763_v48  ;;  %v5861_v46 = vld [vmem:[%s6921_s23 + $0x374] sm:$0xf0]  ;;  %v4643_v48 = vld [vmem:[%s6921_s23 + $0x378] sm:$0xf0] }
  0xd2   : > { %1538 = vmatpush.bf16.msra.mxu1 %v4509_v58  ;;  %1551 = vmatpush.bf16.msra.mxu2 %v4513_v59  ;;  %v4770_v58 = vor.u32 %v5892_v50, %v4769_v49  ;;  %v4737_v59 = vld [vmem:[%s6921_s23 + $0x420] sm:$0xf]  ;;  %v4649_v50 = vld [vmem:[%s6921_s23 + $0x368] sm:$0xf]  ;;  %v4642_v54 = vor.u32 %v5861_v46, %v4641_v43  ;;  %v4931_v43 = vld [vmem:[%s6921_s23 + $0x5b8] sm:$0xf0] }
  0xd3   : > { %1564 = vmatpush.bf16.msra.mxu3 %v4517_v63  ;;  %v4739_v63 = vld [vmem:[%s6921_s23 + $0x438] sm:$0xf0]  ;;  %v4738_v5 = vor.u32 %v5885_v60, %v4737_v59  ;;  %v5852_v59 = vld [vmem:[%s6921_s23 + $0x334] sm:$0xf]  ;;  %v913_v60 = vsel %vm912_vm2, %v7040_v57, %v7047_v1 }
  0xd5   : > { %1526 = vmatpush.bf16.msra.mxu0 %v4481_v6  ;;  %v4742_v6 = vor.u32 %v5882_v61, %v4739_v63  ;;  %v4625_v63 = vld [vmem:[%s6921_s23 + $0x338] sm:$0xf] }
  0xd6   : > { %1539 = vmatpush.bf16.msra.mxu1 %v4485_v7  ;;  %1552 = vmatpush.bf16.msra.mxu2 %v4489_v8  ;;  %v4746_v7 = vor.u32 %v5886_v2, %v4745_v0  ;;  %v4713_v8 = vld [vmem:[%s6921_s23 + $0x3f0] sm:$0xf]  ;;  %v5853_v2 = vld [vmem:[%s6921_s23 + $0x33c] sm:$0xf] }
  0xd7   : > { %1565 = vmatpush.bf16.msra.mxu3 %v4493_v12  ;;  %v4715_v12 = vld [vmem:[%s6921_s23 + $0x408] sm:$0xf0]  ;;  %v4714_v17 = vor.u32 %v5879_v9, %v4713_v8  ;;  %v5856_v0 = vld [vmem:[%s6921_s23 + $0x34c] sm:$0xf0] }
  0xd8   : > { %v4626_v9 = vor.u32 %v5856_v0, %v4625_v63  ;;  %v4707_v63 = vld [vmem:[%s6921_s23 + $0x3e8] sm:$0xf0]  ;;  %v4881_v0 = vld [vmem:[%s6921_s23 + $0x540] sm:$0xf] }
  0xd9   : > { %1527 = vmatpush.bf16.msra.mxu0 %v4457_v19  ;;  %v4718_v19 = vor.u32 %v5876_v10, %v4715_v12  ;;  %v5846_v10 = vld [vmem:[%s6921_s23 + $0x304] sm:$0xf]  ;;  %v4601_v12 = vld [vmem:[%s6921_s23 + $0x308] sm:$0xf] }
  0xda   : > { %1540 = vmatpush.bf16.msra.mxu1 %v4461_v20  ;;  %1553 = vmatpush.bf16.msra.mxu2 %v4465_v22  ;;  %v4722_v20 = vor.u32 %v5880_v14, %v4721_v13  ;;  %v4689_v22 = vld [vmem:[%s6921_s23 + $0x3c0] sm:$0xf]  ;;  %v4630_v13 = vor.u32 %v5853_v2, %v4627_v3  ;;  %v5921_v2 = vld [vmem:[%s6921_s23 + $0x554] sm:$0xf0]  ;;  %v5918_v3 = vld [vmem:[%s6921_s23 + $0x544] sm:$0xf] }
  0xdb   : > { %1566 = vmatpush.bf16.msra.mxu3 %v4469_v26  ;;  %v4691_v26 = vld [vmem:[%s6921_s23 + $0x3d8] sm:$0xf0]  ;;  %v4690_v30 = vor.u32 %v5873_v23, %v4689_v22  ;;  %v5850_v14 = vld [vmem:[%s6921_s23 + $0x31c] sm:$0xf0] }
  0xdc   : > { %v4694_v31 = vor.u32 %v5870_v24, %v4691_v26  ;;  %v4779_v23 = vld [vmem:[%s6921_s23 + $0x478] sm:$0xf0]  ;;  %v4953_v24 = vld [vmem:[%s6921_s23 + $0x5d0] sm:$0xf] }
  0xdd   : > { %1528 = vmatpush.bf16.msra.mxu0 %v4433_v32 }
  0xde   : > { %1541 = vmatpush.bf16.msra.mxu1 %v4437_v35  ;;  %1554 = vmatpush.bf16.msra.mxu2 %v4441_v36  ;;  %v5864_v35 = vld [vmem:[%s6921_s23 + $0x394] sm:$0xf]  ;;  %v4702_v36 = vor.u32 %v5871_v28, %v4699_v29  ;;  %v4955_v29 = vld [vmem:[%s6921_s23 + $0x5e8] sm:$0xf0] }
  0xdf   : > { %1567 = vmatpush.bf16.msra.mxu3 %v4445_v40  ;;  %v5865_v40 = vld [vmem:[%s6921_s23 + $0x39c] sm:$0xf]  ;;  %v4670_v44 = vor.u32 %v5864_v35, %v4667_v37  ;;  %v5936_v28 = vld [vmem:[%s6921_s23 + $0x5d4] sm:$0xf]  ;;  %v5887_v35 = vld [vmem:[%s6921_s23 + $0x444] sm:$0xf0] }
  0xe0   : > { %v4678_v49 = vor.u32 %v5865_v40, %v4675_v41  ;;  %v4755_v37 = vld [vmem:[%s6921_s23 + $0x448] sm:$0xf0]  ;;  %v4958_v38 = vor.u32 %v5936_v28, %v4955_v29  ;;  %v4929_v40 = vld [vmem:[%s6921_s23 + $0x5a0] sm:$0xf]  ;;  %v5933_v41 = vld [vmem:[%s6921_s23 + $0x5b4] sm:$0xf0] }
  0xe1   : > { %1529 = vmatpush.bf16.msra.mxu0 %v4409_v47  ;;  %v5858_v47 = vld [vmem:[%s6921_s23 + $0x364] sm:$0xf]  ;;  %v4930_v46 = vor.u32 %v5933_v41, %v4929_v40  ;;  %v5909_v28 = vld [vmem:[%s6921_s23 + $0x4f4] sm:$0xf0]  ;;  %v4809_v40 = vld [vmem:[%s6921_s23 + $0x4b0] sm:$0xf] }
  0xe2   : > { %1542 = vmatpush.bf16.msra.mxu1 %v4413_v51  ;;  %1555 = vmatpush.bf16.msra.mxu2 %v4417_v52  ;;  %v5862_v51 = vld [vmem:[%s6921_s23 + $0x37c] sm:$0xf0]  ;;  %v5859_v52 = vld [vmem:[%s6921_s23 + $0x36c] sm:$0xf]  ;;  %v5906_v29 = vld [vmem:[%s6921_s23 + $0x4e4] sm:$0xf] }
  0xe3   : > { %1568 = vmatpush.bf16.msra.mxu3 %v4421_v55  ;;  %v4646_v55 = vor.u32 %v5858_v47, %v4643_v48  ;;  %v4654_v61 = vor.u32 %v5859_v52, %v4651_v53  ;;  %v4729_v47 = vld [vmem:[%s6921_s23 + $0x400] sm:$0xf]  ;;  %v5881_v48 = vld [vmem:[%s6921_s23 + $0x414] sm:$0xf0]  ;;  %v4905_v52 = vld [vmem:[%s6921_s23 + $0x570] sm:$0xf] }
  0xe4   : > { %1530 = vmatmul.bf16.vlgmr.msra.gmra.mxu0 %v7112_v21  ;;  %v5927_v53 = vld [vmem:[%s6921_s23 + $0x584] sm:$0xf0] }
  0xe5   : > { %1817 = vmatpush.bf16.msrb.mxu0 %v4762_v18  ;;  %1543 = vmatmul.bf16.vlgmr.msra.gmra.mxu1 %v7112_v21  ;;  %v4650_v18 = vor.u32 %v5862_v51, %v4649_v50  ;;  %v4731_v51 = vld [vmem:[%s6921_s23 + $0x418] sm:$0xf0]  ;;  %v5903_v41 = vld [vmem:[%s6921_s23 + $0x4c4] sm:$0xf0] }
  0xe6   : > { %1830 = vmatpush.bf16.msrb.mxu1 %v4766_v56  ;;  %1843 = vmatpush.bf16.msrb.mxu2 %v4770_v58  ;;  %v4617_v56 = vld [vmem:[%s6921_s23 + $0x330] sm:$0xf]  ;;  %v5855_v58 = vld [vmem:[%s6921_s23 + $0x344] sm:$0xf0] }
  0xe7   : > { %1856 = vmatpush.bf16.msrb.mxu3 %v4774_v62  ;;  %1556 = vmatmul.bf16.vlgmr.msra.gmra.mxu2 %v7112_v21  ;;  %v4619_v62 = vld [vmem:[%s6921_s23 + $0x348] sm:$0xf0]  ;;  %v4618_v4 = vor.u32 %v5855_v58, %v4617_v56  ;;  %v4906_v58 = vor.u32 %v5927_v53, %v4905_v52 }
  0xe8   : > { %1569 = vmatmul.bf16.vlgmr.msra.gmra.mxu3 %v7112_v21  ;;  %v5874_v21 = vld [vmem:[%s6921_s23 + $0x3dc] sm:$0xf0]  ;;  %v4622_v8 = vor.u32 %v5852_v59, %v4619_v62  ;;  %v4705_v59 = vld [vmem:[%s6921_s23 + $0x3d0] sm:$0xf] }
  0xe9   : > { %1818 = vmatpush.bf16.msrb.mxu0 %v4738_v5  ;;  %v4698_v32 = vor.u32 %v5874_v21, %v4697_v27  ;;  %v4593_v5 = vld [vmem:[%s6921_s23 + $0x300] sm:$0xf]  ;;  %v4602_v21 = vor.u32 %v5850_v14, %v4601_v12  ;;  %v4857_v14 = vld [vmem:[%s6921_s23 + $0x510] sm:$0xf] }
  0xea   : > { %1831 = vmatpush.bf16.msrb.mxu1 %v4742_v6  ;;  %1844 = vmatpush.bf16.msrb.mxu2 %v4746_v7  ;;  %v5849_v6 = vld [vmem:[%s6921_s23 + $0x314] sm:$0xf0]  ;;  %v7239_v7 = vrot.slane %v913_v60, 1  ;;  %v5875_v60 = vld [vmem:[%s6921_s23 + $0x3e4] sm:$0xf0] }
  0xeb   : > { %1857 = vmatpush.bf16.msrb.mxu3 %v4750_v11  ;;  %v4595_v11 = vld [vmem:[%s6921_s23 + $0x318] sm:$0xf0]  ;;  %v4594_v22 = vor.u32 %v5849_v6, %v4593_v5  ;;  %v4706_v5 = vor.u32 %v5875_v60, %v4705_v59 }
  0xec   : > { %v4590_v26 = vpack.i.b16 %v7239_v7, %v7239_v7  ;;  %v4598_v27 = vor.u32 %v5846_v10, %v4595_v11  ;;  %v5869_v10 = vld [vmem:[%s6921_s23 + $0x3b4] sm:$0xf0]  ;;  %v5866_v11 = vld [vmem:[%s6921_s23 + $0x3a4] sm:$0xf]  ;;  %v927_v52 = vunpack.i.h.s16 %v7239_v7  ;;  %v5937_v59 = vld [vmem:[%s6921_s23 + $0x5dc] sm:$0xf] }
  0xed   : > { %1819 = vmatpush.bf16.msrb.mxu0 %v4714_v17  ;;  %v4777_v17 = vld [vmem:[%s6921_s23 + $0x460] sm:$0xf] }
  0xee   : > { %1832 = vmatpush.bf16.msrb.mxu1 %v4718_v19  ;;  %1845 = vmatpush.bf16.msrb.mxu2 %v4722_v20  ;;  %v5893_v19 = vld [vmem:[%s6921_s23 + $0x474] sm:$0xf0]  ;;  %v5890_v20 = vld [vmem:[%s6921_s23 + $0x464] sm:$0xf]  ;;  %v7261_v39 = vperm.slane %v4590_v26, 0 }
  0xef   : > { %1858 = vmatpush.bf16.msrb.mxu3 %v4726_v25  ;;  %v5939_v25 = vld [vmem:[%s6921_s23 + $0x5e4] sm:$0xf0]  ;;  %v4782_v33 = vor.u32 %v5890_v20, %v4779_v23  ;;  %v4657_v23 = vld [vmem:[%s6921_s23 + $0x370] sm:$0xf] }
  0xf0   : > { %v4954_v34 = vor.u32 %v5939_v25, %v4953_v24  ;;  %v5863_v24 = vld [vmem:[%s6921_s23 + $0x384] sm:$0xf0]  ;;  %v5860_v25 = vld [vmem:[%s6921_s23 + $0x374] sm:$0xf] }
  0xf1   : > { %1820 = vmatpush.bf16.msrb.mxu0 %v4690_v30  ;;  %v4606_v30 = vor.u32 %v5847_v15, %v4603_v16  ;;  %v5915_v15 = vld [vmem:[%s6921_s23 + $0x524] sm:$0xf0]  ;;  %v5912_v16 = vld [vmem:[%s6921_s23 + $0x514] sm:$0xf] }
  0xf2   : > { %1833 = vmatpush.bf16.msrb.mxu1 %v4694_v31  ;;  %1846 = vmatpush.bf16.msrb.mxu2 %v4698_v32  ;;  %v4778_v31 = vor.u32 %v5893_v19, %v4777_v17  ;;  %v4753_v32 = vld [vmem:[%s6921_s23 + $0x430] sm:$0xf]  ;;  %v4859_v17 = vld [vmem:[%s6921_s23 + $0x528] sm:$0xf0] }
  0xf3   : > { %1859 = vmatpush.bf16.msrb.mxu3 %v4702_v36  ;;  %v5884_v36 = vld [vmem:[%s6921_s23 + $0x434] sm:$0xf]  ;;  %v4862_v26 = vor.u32 %v5912_v16, %v4859_v17  ;;  %v5935_v16 = vld [vmem:[%s6921_s23 + $0x5c4] sm:$0xf0] }
  0xf5   : > { %1821 = vmatpush.bf16.msrb.mxu0 %v4666_v42  ;;  %v5930_v42 = vld [vmem:[%s6921_s23 + $0x5a4] sm:$0xf] }
  0xf6   : > { %1834 = vmatpush.bf16.msrb.mxu1 %v4670_v44  ;;  %1847 = vmatpush.bf16.msrb.mxu2 %v4674_v45  ;;  %v4754_v44 = vor.u32 %v5887_v35, %v4753_v32  ;;  %v4758_v45 = vor.u32 %v5884_v36, %v4755_v37  ;;  %v4934_v50 = vor.u32 %v5930_v42, %v4931_v43  ;;  %v5857_v35 = vld [vmem:[%s6921_s23 + $0x354] sm:$0xf0]  ;;  %v5854_v36 = vld [vmem:[%s6921_s23 + $0x344] sm:$0xf]  ;;  %v5900_v42 = vld [vmem:[%s6921_s23 + $0x4b4] sm:$0xf] }
  0xf7   : > { %1860 = vmatpush.bf16.msrb.mxu3 %v4678_v49  ;;  %v5878_v49 = vld [vmem:[%s6921_s23 + $0x404] sm:$0xf]  ;;  %v4811_v43 = vld [vmem:[%s6921_s23 + $0x4c8] sm:$0xf0] }
  0xf8   : > { %v4734_v56 = vor.u32 %v5878_v49, %v4731_v51  ;;  %v5848_v49 = vld [vmem:[%s6921_s23 + $0x314] sm:$0xf]  ;;  %v4785_v51 = vld [vmem:[%s6921_s23 + $0x480] sm:$0xf]  ;;  %v4814_v53 = vor.u32 %v5900_v42, %v4811_v43  ;;  %v5923_v42 = vld [vmem:[%s6921_s23 + $0x564] sm:$0xf0] }
  0xf9   : > { %1822 = vmatpush.bf16.msrb.mxu0 %v4642_v54  ;;  %v5924_v54 = vld [vmem:[%s6921_s23 + $0x574] sm:$0xf] }
  0xfa   : > { %1835 = vmatpush.bf16.msrb.mxu1 %v4646_v55  ;;  %1848 = vmatpush.bf16.msrb.mxu2 %v4650_v18  ;;  %v4907_v55 = vld [vmem:[%s6921_s23 + $0x588] sm:$0xf0]  ;;  %v4730_v18 = vor.u32 %v5881_v48, %v4729_v47  ;;  %v4810_v48 = vor.u32 %v5903_v41, %v4809_v40  ;;  %v4891_v40 = vld [vmem:[%s6921_s23 + $0x560] sm:$0xf0]  ;;  %v4897_v41 = vld [vmem:[%s6921_s23 + $0x550] sm:$0xf] }
  0xfb   : > { %1861 = vmatpush.bf16.msrb.mxu3 %v4654_v61  ;;  %v5872_v61 = vld [vmem:[%s6921_s23 + $0x3d4] sm:$0xf]  ;;  %v4910_v62 = vor.u32 %v5924_v54, %v4907_v55  ;;  %v5897_v54 = vld [vmem:[%s6921_s23 + $0x494] sm:$0xf0]  ;;  %v5894_v55 = vld [vmem:[%s6921_s23 + $0x484] sm:$0xf] }
  0xfc   : > { %v4710_v6 = vor.u32 %v5872_v61, %v4707_v63  ;;  %v4963_v61 = vld [vmem:[%s6921_s23 + $0x5f0] sm:$0xf0]  ;;  %v5941_v63 = vld [vmem:[%s6921_s23 + $0x5f4] sm:$0xf0] }
  0xfd   : > { %1823 = vmatpush.bf16.msrb.mxu0 %v4618_v4  ;;  %v4883_v4 = vld [vmem:[%s6921_s23 + $0x558] sm:$0xf0]  ;;  %v5920_v43 = vld [vmem:[%s6921_s23 + $0x554] sm:$0xf] }
  0xfe   : > { %1836 = vmatpush.bf16.msrb.mxu1 %v4622_v8  ;;  %1849 = vmatpush.bf16.msrb.mxu2 %v4626_v9  ;;  %v4882_v8 = vor.u32 %v5921_v2, %v4881_v0  ;;  %v4681_v9 = vld [vmem:[%s6921_s23 + $0x3a0] sm:$0xf]  ;;  %v4886_v12 = vor.u32 %v5918_v3, %v4883_v4  ;;  %v4786_v0 = vor.u32 %v5897_v54, %v4785_v51  ;;  %v5938_v2 = vld [vmem:[%s6921_s23 + $0x5e4] sm:$0xf]  ;;  %v4971_v3 = vld [vmem:[%s6921_s23 + $0x5f8] sm:$0xf0] }
  0xff   : > { %1862 = vmatpush.bf16.msrb.mxu3 %v4630_v13  ;;  %v4683_v13 = vld [vmem:[%s6921_s23 + $0x3b8] sm:$0xf0]  ;;  %v4682_v19 = vor.u32 %v5869_v10, %v4681_v9  ;;  %v1895_v4 = vpack.i.b16 %v927_v52, %v927_v52  ;;  %v4937_v10 = vld [vmem:[%s6921_s23 + $0x5a8] sm:$0xf]  ;;  %v4867_v52 = vld [vmem:[%s6921_s23 + $0x530] sm:$0xf0] }
 0x100   : > { %v4686_v20 = vor.u32 %v5866_v11, %v4683_v13  ;;  %v5934_v11 = vld [vmem:[%s6921_s23 + $0x5bc] sm:$0xf0]  ;;  %v4974_v13 = vor.u32 %v5938_v2, %v4971_v3  ;;  %v5917_v54 = vld [vmem:[%s6921_s23 + $0x534] sm:$0xf0]  ;;  %v5911_v2 = vld [vmem:[%s6921_s23 + $0x504] sm:$0xf0] }
 0x101   : > { %1824 = vmatpush.bf16.msrb.mxu0 %v4594_v22  ;;  %v4858_v22 = vor.u32 %v5915_v15, %v4857_v14  ;;  %v4939_v14 = vld [vmem:[%s6921_s23 + $0x5c0] sm:$0xf0]  ;;  %v4945_v15 = vld [vmem:[%s6921_s23 + $0x5b0] sm:$0xf]  ;;  %v7334_v17 = vperm.slane %v1895_v4, 0 }
 0x102   : > { %1837 = vmatpush.bf16.msrb.mxu1 %v4598_v27  ;;  %1850 = vmatpush.bf16.msrb.mxu2 %v4602_v21  ;;  %v4659_v27 = vld [vmem:[%s6921_s23 + $0x388] sm:$0xf0]  ;;  %v4833_v21 = vld [vmem:[%s6921_s23 + $0x4e0] sm:$0xf]  ;;  %v5908_v3 = vld [vmem:[%s6921_s23 + $0x4f4] sm:$0xf] }
 0x103   : > { %1863 = vmatpush.bf16.msrb.mxu3 %v4606_v30  ;;  %v4835_v30 = vld [vmem:[%s6921_s23 + $0x4f8] sm:$0xf0]  ;;  %v4662_v32 = vor.u32 %v5860_v25, %v4659_v27  ;;  %v4913_v25 = vld [vmem:[%s6921_s23 + $0x578] sm:$0xf]  ;;  %v4851_v4 = vld [vmem:[%s6921_s23 + $0x508] sm:$0xf0] }
 0x104   : > { %1825 = vmatmul.bf16.vlgmr.msrb.gmra.mxu0 %v7261_v39  ;;  %v4838_v37 = vor.u32 %v5906_v29, %v4835_v30  ;;  %v5925_v27 = vld [vmem:[%s6921_s23 + $0x57c] sm:$0xf]  ;;  %v4921_v29 = vld [vmem:[%s6921_s23 + $0x580] sm:$0xf]  ;;  %v5929_v30 = vld [vmem:[%s6921_s23 + $0x594] sm:$0xf0] }
 0x105   : > { %1869 = vmatpush.bf16.msra.mxu0 %v4778_v31  ;;  %1838 = vmatmul.bf16.vlgmr.msrb.gmra.mxu1 %v7261_v39  ;;  %v4658_v31 = vor.u32 %v5863_v24, %v4657_v23  ;;  %v4946_v24 = vor.u32 %v5935_v16, %v4945_v15  ;;  %v4819_v15 = vld [vmem:[%s6921_s23 + $0x4d0] sm:$0xf0]  ;;  %v4825_v16 = vld [vmem:[%s6921_s23 + $0x4c0] sm:$0xf] }
 0x106   : > { %1882 = vmatpush.bf16.msra.mxu1 %v4782_v33  ;;  %2138 = vmatpush.bf16.msra.mxu2 %v4954_v34  ;;  %v4834_v33 = vor.u32 %v5909_v28, %v4833_v21  ;;  %v4633_v34 = vld [vmem:[%s6921_s23 + $0x340] sm:$0xf]  ;;  %v4915_v28 = vld [vmem:[%s6921_s23 + $0x590] sm:$0xf0] }
 0x107   : > { %2151 = vmatpush.bf16.msra.mxu3 %v4958_v38  ;;  %1851 = vmatmul.bf16.vlgmr.msrb.gmra.mxu2 %v7261_v39  ;;  %v4635_v38 = vld [vmem:[%s6921_s23 + $0x358] sm:$0xf0] }
 0x108   : > { %1864 = vmatmul.bf16.vlgmr.msrb.gmra.mxu3 %v7261_v39  ;;  %v4638_v47 = vor.u32 %v5854_v36, %v4635_v38  ;;  %v4889_v36 = vld [vmem:[%s6921_s23 + $0x548] sm:$0xf] }
 0x109   : > { %1870 = vmatpush.bf16.msra.mxu0 %v4754_v44  ;;  %v4634_v44 = vor.u32 %v5857_v35, %v4633_v34  ;;  %v4918_v34 = vor.u32 %v5925_v27, %v4915_v28  ;;  %v4922_v35 = vor.u32 %v5929_v30, %v4921_v29  ;;  %v4795_v28 = vld [vmem:[%s6921_s23 + $0x4a0] sm:$0xf0]  ;;  %v4801_v29 = vld [vmem:[%s6921_s23 + $0x490] sm:$0xf] }
 0x10a   : > { %1883 = vmatpush.bf16.msra.mxu1 %v4758_v45  ;;  %2139 = vmatpush.bf16.msra.mxu2 %v4930_v46  ;;  %v4609_v45 = vld [vmem:[%s6921_s23 + $0x310] sm:$0xf]  ;;  %v5851_v46 = vld [vmem:[%s6921_s23 + $0x324] sm:$0xf0] }
 0x10b   : > { %2152 = vmatpush.bf16.msra.mxu3 %v4934_v50  ;;  %v4611_v50 = vld [vmem:[%s6921_s23 + $0x328] sm:$0xf0]  ;;  %v4610_v60 = vor.u32 %v5851_v46, %v4609_v45 }
 0x10c   : > { %v4614_v7 = vor.u32 %v5848_v49, %v4611_v50  ;;  %v5916_v49 = vld [vmem:[%s6921_s23 + $0x52c] sm:$0xf0]  ;;  %v5913_v50 = vld [vmem:[%s6921_s23 + $0x51c] sm:$0xf] }
 0x10d   : > { %1871 = vmatpush.bf16.msra.mxu0 %v4730_v18  ;;  %v4787_v18 = vld [vmem:[%s6921_s23 + $0x498] sm:$0xf0] }
 0x10e   : > { %1884 = vmatpush.bf16.msra.mxu1 %v4734_v56  ;;  %2140 = vmatpush.bf16.msra.mxu2 %v4906_v58  ;;  %v4961_v56 = vld [vmem:[%s6921_s23 + $0x5d8] sm:$0xf]  ;;  %v5940_v58 = vld [vmem:[%s6921_s23 + $0x5ec] sm:$0xf0] }
 0x10f   : > { %2153 = vmatpush.bf16.msra.mxu3 %v4910_v62  ;;  %v4969_v62 = vld [vmem:[%s6921_s23 + $0x5e0] sm:$0xf] }
 0x110   : > { %v4970_v9 = vor.u32 %v5941_v63, %v4969_v62  ;;  %v5907_v62 = vld [vmem:[%s6921_s23 + $0x4ec] sm:$0xf] }
 0x111   : > { %1872 = vmatpush.bf16.msra.mxu0 %v4706_v5  ;;  %v4790_v5 = vor.u32 %v5894_v55, %v4787_v18  ;;  %v5914_v55 = vld [vmem:[%s6921_s23 + $0x524] sm:$0xf]  ;;  %v4875_v18 = vld [vmem:[%s6921_s23 + $0x538] sm:$0xf0] }
 0x112   : > { %1885 = vmatpush.bf16.msra.mxu1 %v4710_v6  ;;  %2141 = vmatpush.bf16.msra.mxu2 %v4882_v8  ;;  %v4962_v6 = vor.u32 %v5940_v58, %v4961_v56  ;;  %v4966_v8 = vor.u32 %v5937_v59, %v4963_v61  ;;  %v4870_v58 = vor.u32 %v5913_v50, %v4867_v52  ;;  %v5910_v61 = vld [vmem:[%s6921_s23 + $0x4fc] sm:$0xf0] }
 0x113   : > { %2154 = vmatpush.bf16.msra.mxu3 %v4886_v12  ;;  %v5931_v12 = vld [vmem:[%s6921_s23 + $0x5ac] sm:$0xf]  ;;  %v4878_v63 = vor.u32 %v5914_v55, %v4875_v18  ;;  %v5978_v55 = vld [vmem:[%s6921_s23 + $0x724] sm:$0xf] }
 0x114   : > { %v4942_v23 = vor.u32 %v5931_v12, %v4939_v14  ;;  %v5901_v12 = vld [vmem:[%s6921_s23 + $0x4bc] sm:$0xf]  ;;  %v4854_v14 = vor.u32 %v5908_v3, %v4851_v4  ;;  %v5098_v3 = vld [vmem:[%s6921_s23 + $0x6f0] sm:$0xf]  ;;  %v5975_v4 = vld [vmem:[%s6921_s23 + $0x704] sm:$0xf0] }
 0x115   : > { %1873 = vmatpush.bf16.msra.mxu0 %v4682_v19  ;;  %v5932_v19 = vld [vmem:[%s6921_s23 + $0x5b4] sm:$0xf] }
 0x116   : > { %1886 = vmatpush.bf16.msra.mxu1 %v4686_v20  ;;  %2142 = vmatpush.bf16.msra.mxu2 %v4858_v22  ;;  %v4947_v20 = vld [vmem:[%s6921_s23 + $0x5c8] sm:$0xf0]  ;;  %v4938_v22 = vor.u32 %v5934_v11, %v4937_v10  ;;  %v4817_v10 = vld [vmem:[%s6921_s23 + $0x4b8] sm:$0xf]  ;;  %v5904_v11 = vld [vmem:[%s6921_s23 + $0x4cc] sm:$0xf0] }
 0x117   : > { %2155 = vmatpush.bf16.msra.mxu3 %v4862_v26  ;;  %v5928_v26 = vld [vmem:[%s6921_s23 + $0x58c] sm:$0xf0]  ;;  %v4950_v21 = vor.u32 %v5932_v19, %v4947_v20  ;;  %v5905_v19 = vld [vmem:[%s6921_s23 + $0x4d4] sm:$0xf0]  ;;  %v5902_v20 = vld [vmem:[%s6921_s23 + $0x4c4] sm:$0xf] }
 0x118   : > { %v4826_v27 = vor.u32 %v5905_v19, %v4825_v16 }
 0x119   : > { %1874 = vmatpush.bf16.msra.mxu0 %v4658_v31  ;;  %v5926_v31 = vld [vmem:[%s6921_s23 + $0x584] sm:$0xf] }
 0x11a   : > { %1887 = vmatpush.bf16.msra.mxu1 %v4662_v32  ;;  %2143 = vmatpush.bf16.msra.mxu2 %v4834_v33  ;;  %v4923_v32 = vld [vmem:[%s6921_s23 + $0x598] sm:$0xf0]  ;;  %v4914_v33 = vor.u32 %v5928_v26, %v4913_v25  ;;  %v5898_v25 = vld [vmem:[%s6921_s23 + $0x49c] sm:$0xf0]  ;;  %v4822_v26 = vor.u32 %v5901_v12, %v4819_v15  ;;  %v5099_v15 = vor.u32 %v5975_v4, %v5098_v3  ;;  %v5951_v3 = vld [vmem:[%s6921_s23 + $0x644] sm:$0xf0] }
 0x11b   : > { %2156 = vmatpush.bf16.msra.mxu3 %v4838_v37  ;;  %v5919_v37 = vld [vmem:[%s6921_s23 + $0x54c] sm:$0xf]  ;;  %v4926_v38 = vor.u32 %v5926_v31, %v4923_v32  ;;  %v5899_v32 = vld [vmem:[%s6921_s23 + $0x4a4] sm:$0xf0]  ;;  %v5973_v12 = vld [vmem:[%s6921_s23 + $0x6fc] sm:$0xf]  ;;  %v917_v4 = vsel %vm916_vm3, %v7040_v57, %v7047_v1 }
 0x11c   : > { %v4894_v46 = vor.u32 %v5919_v37, %v4891_v40  ;;  %v5984_v37 = vld [vmem:[%s6921_s23 + $0x754] sm:$0xf]  ;;  %v5148_v40 = vld [vmem:[%s6921_s23 + $0x768] sm:$0xf0] }
 0x11d   : > { %1875 = vmatpush.bf16.msra.mxu0 %v4634_v44  ;;  %v4899_v44 = vld [vmem:[%s6921_s23 + $0x568] sm:$0xf0] }
 0x11e   : > { %1888 = vmatpush.bf16.msra.mxu1 %v4638_v47  ;;  %2144 = vmatpush.bf16.msra.mxu2 %v4810_v48  ;;  %v4898_v47 = vor.u32 %v5923_v42, %v4897_v41  ;;  %v4865_v48 = vld [vmem:[%s6921_s23 + $0x518] sm:$0xf]  ;;  %v4902_v51 = vor.u32 %v5920_v43, %v4899_v44  ;;  %v5988_v42 = vld [vmem:[%s6921_s23 + $0x76c] sm:$0xf0] }
 0x11f   : > { %2157 = vmatpush.bf16.msra.mxu3 %v4814_v53  ;;  %v4873_v53 = vld [vmem:[%s6921_s23 + $0x520] sm:$0xf]  ;;  %v4866_v56 = vor.u32 %v5916_v49, %v4865_v48  ;;  %v5154_v41 = vld [vmem:[%s6921_s23 + $0x758] sm:$0xf] }
 0x120   : > { %v4874_v59 = vor.u32 %v5917_v54, %v4873_v53  ;;  %v5155_v52 = vor.u32 %v5988_v42, %v5154_v41  ;;  %v5122_v53 = vld [vmem:[%s6921_s23 + $0x720] sm:$0xf]  ;;  %v5981_v54 = vld [vmem:[%s6921_s23 + $0x734] sm:$0xf0]  ;;  %v5964_v41 = vld [vmem:[%s6921_s23 + $0x6ac] sm:$0xf0] }
 0x121   : > { %1876 = vmatpush.bf16.msra.mxu0 %v4610_v60  ;;  %v4841_v60 = vld [vmem:[%s6921_s23 + $0x4e8] sm:$0xf]  ;;  %v5961_v42 = vld [vmem:[%s6921_s23 + $0x69c] sm:$0xf] }
 0x122   : > { %1889 = vmatpush.bf16.msra.mxu1 %v4614_v7  ;;  %2145 = vmatpush.bf16.msra.mxu2 %v4786_v0  ;;  %v4843_v7 = vld [vmem:[%s6921_s23 + $0x500] sm:$0xf0]  ;;  %v4849_v0 = vld [vmem:[%s6921_s23 + $0x4f0] sm:$0xf] }
 0x123   : > { %2158 = vmatpush.bf16.msra.mxu3 %v4790_v5  ;;  %v4842_v5 = vor.u32 %v5910_v61, %v4841_v60  ;;  %v5979_v60 = vld [vmem:[%s6921_s23 + $0x72c] sm:$0xf]  ;;  %v5132_v61 = vld [vmem:[%s6921_s23 + $0x740] sm:$0xf0] }
 0x124   : > { %1877 = vmatmul.bf16.vlgmr.msra.gmra.mxu0 %v7261_v39 }
 0x125   : > { %2164 = vmatpush.bf16.msrb.mxu0 %v4962_v6  ;;  %1890 = vmatmul.bf16.vlgmr.msra.gmra.mxu1 %v7261_v39  ;;  %v5922_v39 = vld [vmem:[%s6921_s23 + $0x55c] sm:$0xf0]  ;;  %v7374_v6 = vpop.f32.mrf.mxu0 }
 0x126   : > { %2177 = vmatpush.bf16.msrb.mxu1 %v4966_v8  ;;  %2190 = vmatpush.bf16.msrb.mxu2 %v4970_v9  ;;  %v4890_v45 = vor.u32 %v5922_v39, %v4889_v36  ;;  %v4846_v8 = vor.u32 %v5907_v62, %v4843_v7  ;;  %v4850_v9 = vor.u32 %v5911_v2, %v4849_v0  ;;  %v5146_v36 = vld [vmem:[%s6921_s23 + $0x750] sm:$0xf]  ;;  %v5987_v39 = vld [vmem:[%s6921_s23 + $0x764] sm:$0xf0] }
 0x127   : > { %2203 = vmatpush.bf16.msrb.mxu3 %v4974_v13  ;;  %2146 = vmatmul.bf16.vlgmr.msra.gmra.mxu2 %v7334_v17  ;;  %v7379_v13 = vpop.f32.mrf.mxu1  ;;  %v5147_v50 = vor.u32 %v5987_v39, %v5146_v36  ;;  %v5960_v36 = vld [vmem:[%s6921_s23 + $0x694] sm:$0xf] }
 0x128   : > { %2159 = vmatmul.bf16.vlgmr.msra.gmra.mxu3 %v7334_v17 }
 0x129   : > { %2165 = vmatpush.bf16.msrb.mxu0 %v4938_v22  ;;  %v4827_v22 = vld [vmem:[%s6921_s23 + $0x4d8] sm:$0xf0] }
 0x12a   : > { %2178 = vmatpush.bf16.msrb.mxu1 %v4942_v23  ;;  %2191 = vmatpush.bf16.msrb.mxu2 %v4946_v24  ;;  %v4818_v23 = vor.u32 %v5904_v11, %v4817_v10  ;;  %v4793_v24 = vld [vmem:[%s6921_s23 + $0x488] sm:$0xf]  ;;  %v7391_v30 = vpop.f32.mrf.mxu2  ;;  %v4830_v31 = vor.u32 %v5902_v20, %v4827_v22  ;;  %v5106_v10 = vld [vmem:[%s6921_s23 + $0x6f8] sm:$0xf]  ;;  %v5976_v11 = vld [vmem:[%s6921_s23 + $0x70c] sm:$0xf0] }
 0x12b   : > { %2204 = vmatpush.bf16.msrb.mxu3 %v4950_v21  ;;  %v5895_v21 = vld [vmem:[%s6921_s23 + $0x48c] sm:$0xf]  ;;  %v5107_v19 = vor.u32 %v5976_v11, %v5106_v10  ;;  %v5074_v20 = vld [vmem:[%s6921_s23 + $0x6c0] sm:$0xf]  ;;  %v5969_v22 = vld [vmem:[%s6921_s23 + $0x6d4] sm:$0xf0] }
 0x12c   : > { %v4798_v44 = vor.u32 %v5895_v21, %v4795_v28  ;;  %v5084_v21 = vld [vmem:[%s6921_s23 + $0x6e0] sm:$0xf0]  ;;  %v5075_v28 = vor.u32 %v5969_v22, %v5074_v20  ;;  %v5010_v10 = vld [vmem:[%s6921_s23 + $0x638] sm:$0xf]  ;;  %v5949_v11 = vld [vmem:[%s6921_s23 + $0x63c] sm:$0xf] }
 0x12d   : > { %2166 = vmatpush.bf16.msrb.mxu0 %v4914_v33  ;;  %v5896_v33 = vld [vmem:[%s6921_s23 + $0x494] sm:$0xf]  ;;  %v1186_v43 = vpop.f32.mrf.mxu0 }
 0x12e   : > { %2179 = vmatpush.bf16.msrb.mxu1 %v4918_v34  ;;  %2192 = vmatpush.bf16.msrb.mxu2 %v4922_v35  ;;  %v4803_v34 = vld [vmem:[%s6921_s23 + $0x4a8] sm:$0xf0]  ;;  %v7396_v35 = vpop.f32.mrf.mxu3  ;;  %v5060_v43 = vld [vmem:[%s6921_s23 + $0x6b0] sm:$0xf0] }
 0x12f   : > { %2205 = vmatpush.bf16.msrb.mxu3 %v4926_v38  ;;  %v4794_v38 = vor.u32 %v5898_v25, %v4793_v24  ;;  %v1199_v48 = vpop.f32.mrf.mxu1  ;;  %v4806_v49 = vor.u32 %v5896_v33, %v4803_v34  ;;  %v5076_v25 = vld [vmem:[%s6921_s23 + $0x6d8] sm:$0xf0]  ;;  %v5050_v33 = vld [vmem:[%s6921_s23 + $0x690] sm:$0xf]  ;;  %v5963_v34 = vld [vmem:[%s6921_s23 + $0x6a4] sm:$0xf0] }
 0x131   : > { %2167 = vmatpush.bf16.msrb.mxu0 %v4890_v45  ;;  %v4802_v45 = vor.u32 %v5899_v32, %v4801_v29 }
 0x132   : > { %2180 = vmatpush.bf16.msrb.mxu1 %v4894_v46  ;;  %2193 = vmatpush.bf16.msrb.mxu2 %v4898_v47  ;;  %v5985_v46 = vld [vmem:[%s6921_s23 + $0x75c] sm:$0xf]  ;;  %v5156_v47 = vld [vmem:[%s6921_s23 + $0x770] sm:$0xf0]  ;;  %v1212_v62 = vpop.f32.mrf.mxu2 }
 0x133   : > { %2206 = vmatpush.bf16.msrb.mxu3 %v4902_v51  ;;  %v5151_v51 = vor.u32 %v5984_v37, %v5148_v40  ;;  %v5159_v18 = vor.u32 %v5985_v46, %v5156_v47  ;;  %v5058_v40 = vld [vmem:[%s6921_s23 + $0x698] sm:$0xf] }
 0x134   : > { %v5059_v47 = vor.u32 %v5964_v41, %v5058_v40  ;;  %v6035_v40 = vld [vmem:[%s6921_s23 + $0x8e4] sm:$0xf0] }
 0x135   : > { %2168 = vmatpush.bf16.msrb.mxu0 %v4866_v56  ;;  %v5124_v56 = vld [vmem:[%s6921_s23 + $0x738] sm:$0xf0] }
 0x136   : > { %2181 = vmatpush.bf16.msrb.mxu1 %v4870_v58  ;;  %2194 = vmatpush.bf16.msrb.mxu2 %v4874_v59  ;;  %v5130_v58 = vld [vmem:[%s6921_s23 + $0x728] sm:$0xf]  ;;  %v5982_v59 = vld [vmem:[%s6921_s23 + $0x73c] sm:$0xf0]  ;;  %v1225_v7 = vpop.f32.mrf.mxu3  ;;  %v5127_v0 = vor.u32 %v5978_v55, %v5124_v56 }
 0x137   : > { %2207 = vmatpush.bf16.msrb.mxu3 %v4878_v63  ;;  %v5123_v63 = vor.u32 %v5981_v54, %v5122_v53  ;;  %v5131_v2 = vor.u32 %v5982_v59, %v5130_v58  ;;  %v5034_v55 = vld [vmem:[%s6921_s23 + $0x668] sm:$0xf]  ;;  %v5955_v58 = vld [vmem:[%s6921_s23 + $0x66c] sm:$0xf]  ;;  %v5036_v59 = vld [vmem:[%s6921_s23 + $0x680] sm:$0xf0] }
 0x139   : > { %2169 = vmatpush.bf16.msrb.mxu0 %v4842_v5  ;;  %v5972_v5 = vld [vmem:[%s6921_s23 + $0x6f4] sm:$0xf] }
 0x13a   : > { %2182 = vmatpush.bf16.msrb.mxu1 %v4846_v8  ;;  %2195 = vmatpush.bf16.msrb.mxu2 %v4850_v9  ;;  %v5135_v8 = vor.u32 %v5979_v60, %v5132_v61  ;;  %v5100_v9 = vld [vmem:[%s6921_s23 + $0x708] sm:$0xf0] }
 0x13b   : > { %2208 = vmatpush.bf16.msrb.mxu3 %v4854_v14  ;;  %v5108_v14 = vld [vmem:[%s6921_s23 + $0x710] sm:$0xf0]  ;;  %v5103_v16 = vor.u32 %v5972_v5, %v5100_v9  ;;  %v5004_v9 = vld [vmem:[%s6921_s23 + $0x648] sm:$0xf0] }
 0x13c   : > { %v5111_v24 = vor.u32 %v5973_v12, %v5108_v14  ;;  %v5012_v12 = vld [vmem:[%s6921_s23 + $0x650] sm:$0xf0] }
 0x13d   : > { %2170 = vmatpush.bf16.msrb.mxu0 %v4818_v23  ;;  %v5966_v23 = vld [vmem:[%s6921_s23 + $0x6c4] sm:$0xf] }
 0x13e   : > { %2183 = vmatpush.bf16.msrb.mxu1 %v4822_v26  ;;  %2196 = vmatpush.bf16.msrb.mxu2 %v4826_v27  ;;  %v5082_v26 = vld [vmem:[%s6921_s23 + $0x6c8] sm:$0xf]  ;;  %v5970_v27 = vld [vmem:[%s6921_s23 + $0x6dc] sm:$0xf0] }
 0x13f   : > { %2209 = vmatpush.bf16.msrb.mxu3 %v4830_v31  ;;  %v5079_v31 = vor.u32 %v5966_v23, %v5076_v25  ;;  %v5083_v32 = vor.u32 %v5970_v27, %v5082_v26  ;;  %v5942_v23 = vld [vmem:[%s6921_s23 + $0x604] sm:$0xf]  ;;  %v4986_v25 = vld [vmem:[%s6921_s23 + $0x608] sm:$0xf]  ;;  %v5015_v27 = vor.u32 %v5949_v11, %v5012_v12 }
 0x141   : > { %2171 = vmatpush.bf16.msrb.mxu0 %v4794_v38  ;;  %v7434_v29 = vpop.f32.mrf.mxu0  ;;  %v5052_v38 = vld [vmem:[%s6921_s23 + $0x6a8] sm:$0xf0] }
 0x142   : > { %2184 = vmatpush.bf16.msrb.mxu1 %v4798_v44  ;;  %2197 = vmatpush.bf16.msrb.mxu2 %v4802_v45  ;;  %v5051_v44 = vor.u32 %v5963_v34, %v5050_v33  ;;  %v5026_v45 = vld [vmem:[%s6921_s23 + $0x660] sm:$0xf]  ;;  %v5055_v46 = vor.u32 %v5960_v36, %v5052_v38  ;;  %v5989_v33 = vld [vmem:[%s6921_s23 + $0x774] sm:$0xf0]  ;;  %v5986_v34 = vld [vmem:[%s6921_s23 + $0x764] sm:$0xf] }
 0x143   : > { %2210 = vmatpush.bf16.msrb.mxu3 %v4806_v49  ;;  %v5957_v49 = vld [vmem:[%s6921_s23 + $0x674] sm:$0xf0]  ;;  %v5338_v38 = vld [vmem:[%s6921_s23 + $0x8d0] sm:$0xf] }
 0x144   : > { %2172 = vmatmul.bf16.vlgmr.msrb.gmra.mxu0 %v7334_v17  ;;  %v7439_v39 = vpop.f32.mrf.mxu1  ;;  %v5027_v61 = vor.u32 %v5957_v49, %v5026_v45  ;;  %v5340_v45 = vld [vmem:[%s6921_s23 + $0x8e8] sm:$0xf0] }
 0x145   : > { %2459 = vmatpush.bf16.msra.mxu0 %v5147_v50  ;;  %2185 = vmatmul.bf16.vlgmr.msrb.gmra.mxu1 %v7334_v17  ;;  %v5954_v50 = vld [vmem:[%s6921_s23 + $0x664] sm:$0xf] }
 0x146   : > { %2472 = vmatpush.bf16.msra.mxu1 %v5151_v51  ;;  %2485 = vmatpush.bf16.msra.mxu2 %v5155_v52  ;;  %v5028_v51 = vld [vmem:[%s6921_s23 + $0x678] sm:$0xf0]  ;;  %v5063_v52 = vor.u32 %v5961_v42, %v5060_v43 }
 0x147   : > { %2498 = vmatpush.bf16.msra.mxu3 %v5159_v18  ;;  %2198 = vmatmul.bf16.vlgmr.msrb.gmra.mxu2 %v7334_v17  ;;  %v5958_v18 = vld [vmem:[%s6921_s23 + $0x67c] sm:$0xf0]  ;;  %v5031_v62 = vor.u32 %v5954_v50, %v5028_v51  ;;  %v5339_v50 = vor.u32 %v6035_v40, %v5338_v38  ;;  %v5983_v51 = vld [vmem:[%s6921_s23 + $0x744] sm:$0xf0] }
 0x148   : > { %2211 = vmatmul.bf16.vlgmr.msrb.gmra.mxu3 %v7334_v17  ;;  %v5967_v17 = vld [vmem:[%s6921_s23 + $0x6cc] sm:$0xf]  ;;  %v1505_v48 = vpop.f32.mrf.mxu2 }
 0x149   : > { %2460 = vmatpush.bf16.msra.mxu0 %v5123_v63  ;;  %v5087_v37 = vor.u32 %v5967_v17, %v5084_v21  ;;  %v3554_v53 = vrot.slane %v1505_v48, 7  ;;  %v1238_v63 = vpop.f32.mrf.mxu0  ;;  %v5946_v17 = vld [vmem:[%s6921_s23 + $0x61c] sm:$0xf0]  ;;  %v5943_v21 = vld [vmem:[%s6921_s23 + $0x60c] sm:$0xf] }
 0x14a   : > { %2473 = vmatpush.bf16.msra.mxu1 %v5127_v0  ;;  %2486 = vmatpush.bf16.msra.mxu2 %v5131_v2  ;;  %v5035_v0 = vor.u32 %v5958_v18, %v5034_v55  ;;  %v5002_v2 = vld [vmem:[%s6921_s23 + $0x630] sm:$0xf]  ;;  %v4987_v43 = vor.u32 %v5946_v17, %v4986_v25  ;;  %v5314_v18 = vld [vmem:[%s6921_s23 + $0x8a0] sm:$0xf] }
 0x14b   : > { %2499 = vmatpush.bf16.msra.mxu3 %v5135_v8  ;;  %v1518_v54 = vpop.f32.mrf.mxu3  ;;  %v7456_v60 = vsel %vm912_vm2, %v3554_v53, %v7374_v6  ;;  %v5948_v6 = vld [vmem:[%s6921_s23 + $0x634] sm:$0xf]  ;;  %v5039_v8 = vor.u32 %v5955_v58, %v5036_v59  ;;  %v5003_v14 = vor.u32 %v5951_v3, %v5002_v2  ;;  %v5138_v48 = vld [vmem:[%s6921_s23 + $0x730] sm:$0xf]  ;;  %v5140_v53 = vld [vmem:[%s6921_s23 + $0x748] sm:$0xf0] }
 0x14c   : > { %v3572_v56 = vrot.slane %v1518_v54, 7  ;;  %v1251_v5 = vpop.f32.mrf.mxu1  ;;  %v5007_v20 = vor.u32 %v5948_v6, %v5004_v9  ;;  %v6026_v58 = vld [vmem:[%s6921_s23 + $0x8a4] sm:$0xf]  ;;  %v5316_v59 = vld [vmem:[%s6921_s23 + $0x8b8] sm:$0xf0] }
 0x14d   : > { %2461 = vmatpush.bf16.msra.mxu0 %v5099_v15  ;;  %v4978_v15 = vld [vmem:[%s6921_s23 + $0x600] sm:$0xf]  ;;  %v5977_v2 = vld [vmem:[%s6921_s23 + $0x714] sm:$0xf0]  ;;  %v5974_v3 = vld [vmem:[%s6921_s23 + $0x704] sm:$0xf]  ;;  %v5319_v6 = vor.u32 %v6026_v58, %v5316_v59 }
 0x14e   : > { %2474 = vmatpush.bf16.msra.mxu1 %v5103_v16  ;;  %2487 = vmatpush.bf16.msra.mxu2 %v5107_v19  ;;  %v7460_v7 = vsel %vm912_vm2, %v3572_v56, %v7379_v13  ;;  %v5952_v13 = vld [vmem:[%s6921_s23 + $0x64c] sm:$0xf0]  ;;  %v5945_v16 = vld [vmem:[%s6921_s23 + $0x614] sm:$0xf0]  ;;  %v7475_v19 = vrot.slane %v917_v4, 2 }
 0x14f   : > { %2500 = vmatpush.bf16.msra.mxu3 %v5111_v24  ;;  %v5011_v22 = vor.u32 %v5952_v13, %v5010_v10  ;;  %v4980_v24 = vld [vmem:[%s6921_s23 + $0x618] sm:$0xf0]  ;;  %v4979_v36 = vor.u32 %v5945_v16, %v4978_v15  ;;  %v6029_v56 = vld [vmem:[%s6921_s23 + $0x8b4] sm:$0xf0]  ;;  %v5290_v5 = vld [vmem:[%s6921_s23 + $0x870] sm:$0xf] }
 0x150   : > { %v1507_v26 = vpop.f32.mrf.mxu2  ;;  %v4975_v41 = vpack.i.b16 %v7475_v19, %v7475_v19  ;;  %v4983_v42 = vor.u32 %v5942_v23, %v4980_v24  ;;  %v5315_v63 = vor.u32 %v6029_v56, %v5314_v18  ;;  %v5116_v4 = vld [vmem:[%s6921_s23 + $0x718] sm:$0xf0]  ;;  %v6020_v9 = vld [vmem:[%s6921_s23 + $0x874] sm:$0xf]  ;;  %v5292_v10 = vld [vmem:[%s6921_s23 + $0x888] sm:$0xf0] }
 0x151   : > { %2462 = vmatpush.bf16.msra.mxu0 %v5075_v28  ;;  %v4988_v28 = vld [vmem:[%s6921_s23 + $0x620] sm:$0xf0]  ;;  %v5119_v11 = vor.u32 %v5974_v3, %v5116_v4  ;;  %v5971_v15 = vld [vmem:[%s6921_s23 + $0x6e4] sm:$0xf0]  ;;  %v5968_v16 = vld [vmem:[%s6921_s23 + $0x6d4] sm:$0xf] }
 0x152   : > { %2475 = vmatpush.bf16.msra.mxu1 %v5079_v31  ;;  %2488 = vmatpush.bf16.msra.mxu2 %v5083_v32  ;;  %v5162_v32 = vld [vmem:[%s6921_s23 + $0x760] sm:$0xf]  ;;  %v7497_v55 = vperm.slane %v4975_v41, 0  ;;  %v6017_v24 = vld [vmem:[%s6921_s23 + $0x854] sm:$0xf0] }
 0x153   : > { %2501 = vmatpush.bf16.msra.mxu3 %v5087_v37  ;;  %v1520_v31 = vpop.f32.mrf.mxu3  ;;  %v5164_v37 = vld [vmem:[%s6921_s23 + $0x778] sm:$0xf0]  ;;  %v5266_v23 = vld [vmem:[%s6921_s23 + $0x840] sm:$0xf]  ;;  %v6014_v26 = vld [vmem:[%s6921_s23 + $0x844] sm:$0xf] }
 0x154   : > { %v5167_v49 = vor.u32 %v5986_v34, %v5164_v37  ;;  %v5066_v31 = vld [vmem:[%s6921_s23 + $0x6a0] sm:$0xf]  ;;  %v5267_v34 = vor.u32 %v6017_v24, %v5266_v23  ;;  %v5962_v37 = vld [vmem:[%s6921_s23 + $0x6a4] sm:$0xf]  ;;  %v5068_v41 = vld [vmem:[%s6921_s23 + $0x6b8] sm:$0xf0] }
 0x155   : > { %2463 = vmatpush.bf16.msra.mxu0 %v5051_v44  ;;  %v6032_v44 = vld [vmem:[%s6921_s23 + $0x8d4] sm:$0xf]  ;;  %v6005_v18 = vld [vmem:[%s6921_s23 + $0x7f4] sm:$0xf0]  ;;  %v6002_v59 = vld [vmem:[%s6921_s23 + $0x7e4] sm:$0xf] }
 0x156   : > { %2476 = vmatpush.bf16.msra.mxu1 %v5055_v46  ;;  %2489 = vmatpush.bf16.msra.mxu2 %v5059_v47  ;;  %v4991_v46 = vor.u32 %v5943_v21, %v4988_v28  ;;  %v5163_v47 = vor.u32 %v5989_v33, %v5162_v32  ;;  %v5343_v54 = vor.u32 %v6032_v44, %v5340_v45  ;;  %v6008_v45 = vld [vmem:[%s6921_s23 + $0x814] sm:$0xf] }
 0x157   : > { %2502 = vmatpush.bf16.msra.mxu3 %v5063_v52  ;;  %v5980_v52 = vld [vmem:[%s6921_s23 + $0x734] sm:$0xf] }
 0x158   : > { %v5944_v24 = vld [vmem:[%s6921_s23 + $0x614] sm:$0xf] }
 0x159   : > { %2464 = vmatpush.bf16.msra.mxu0 %v5027_v61  ;;  %v5139_v61 = vor.u32 %v5983_v51, %v5138_v48  ;;  %v5956_v51 = vld [vmem:[%s6921_s23 + $0x674] sm:$0xf] }
 0x15a   : > { %2477 = vmatpush.bf16.msra.mxu1 %v5031_v62  ;;  %2490 = vmatpush.bf16.msra.mxu2 %v5035_v0  ;;  %v5143_v62 = vor.u32 %v5980_v52, %v5140_v53  ;;  %v5114_v0 = vld [vmem:[%s6921_s23 + $0x700] sm:$0xf] }
 0x15b   : > { %2503 = vmatpush.bf16.msra.mxu3 %v5039_v8  ;;  %v6023_v8 = vld [vmem:[%s6921_s23 + $0x884] sm:$0xf0]  ;;  %v5115_v13 = vor.u32 %v5977_v2, %v5114_v0 }
 0x15c   : > { %v5291_v12 = vor.u32 %v6023_v8, %v5290_v5  ;;  %v5018_v5 = vld [vmem:[%s6921_s23 + $0x640] sm:$0xf]  ;;  %v5953_v8 = vld [vmem:[%s6921_s23 + $0x654] sm:$0xf0] }
 0x15d   : > { %2465 = vmatpush.bf16.msra.mxu0 %v5003_v14  ;;  %v5090_v14 = vld [vmem:[%s6921_s23 + $0x6d0] sm:$0xf] }
 0x15e   : > { %2478 = vmatpush.bf16.msra.mxu1 %v5007_v20  ;;  %2491 = vmatpush.bf16.msra.mxu2 %v5011_v22  ;;  %v5295_v20 = vor.u32 %v6020_v9, %v5292_v10  ;;  %v5092_v22 = vld [vmem:[%s6921_s23 + $0x6e8] sm:$0xf0]  ;;  %v5091_v28 = vor.u32 %v5971_v15, %v5090_v14  ;;  %v5950_v9 = vld [vmem:[%s6921_s23 + $0x644] sm:$0xf]  ;;  %v5996_v14 = vld [vmem:[%s6921_s23 + $0x7b4] sm:$0xf] }
 0x15f   : > { %2504 = vmatpush.bf16.msra.mxu3 %v5015_v27  ;;  %v5268_v27 = vld [vmem:[%s6921_s23 + $0x858] sm:$0xf0]  ;;  %v5095_v33 = vor.u32 %v5968_v16, %v5092_v22  ;;  %v5196_v15 = vld [vmem:[%s6921_s23 + $0x7c8] sm:$0xf0]  ;;  %v5019_v16 = vor.u32 %v5953_v8, %v5018_v5  ;;  %v5947_v22 = vld [vmem:[%s6921_s23 + $0x624] sm:$0xf0] }
 0x160   : > { %v5271_v40 = vor.u32 %v6014_v26, %v5268_v27  ;;  %v5170_v26 = vld [vmem:[%s6921_s23 + $0x780] sm:$0xf]  ;;  %v929_v27 = vunpack.i.h.s16 %v7475_v19  ;;  %v6037_v19 = vld [vmem:[%s6921_s23 + $0x8f4] sm:$0xf0]  ;;  %v6021_v5 = vld [vmem:[%s6921_s23 + $0x87c] sm:$0xf] }
 0x161   : > { %2466 = vmatpush.bf16.msra.mxu0 %v4979_v36  ;;  %v1531_v25 = vpop.f32.mrf.mxu0  ;;  %v5965_v36 = vld [vmem:[%s6921_s23 + $0x6b4] sm:$0xf0] }
 0x162   : > { %2479 = vmatpush.bf16.msra.mxu1 %v4983_v42  ;;  %2492 = vmatpush.bf16.msra.mxu2 %v4987_v43  ;;  %v3586_v17 = vrot.slane %v1531_v25, 7  ;;  %v1544_v21 = vpop.f32.mrf.mxu1  ;;  %v5242_v42 = vld [vmem:[%s6921_s23 + $0x810] sm:$0xf]  ;;  %v6011_v43 = vld [vmem:[%s6921_s23 + $0x824] sm:$0xf0] }
 0x163   : > { %2505 = vmatpush.bf16.msra.mxu3 %v4991_v46  ;;  %v3600_v32 = vrot.slane %v1544_v21, 7  ;;  %v5244_v46 = vld [vmem:[%s6921_s23 + $0x828] sm:$0xf0]  ;;  %v5243_v48 = vor.u32 %v6011_v43, %v5242_v42  ;;  %v5993_v21 = vld [vmem:[%s6921_s23 + $0x794] sm:$0xf0] }
 0x164   : > { %2467 = vmatmul.bf16.vlgmr.msra.gmra.mxu0 %v7497_v55  ;;  %v7528_v38 = vsel %vm912_vm2, %v3586_v17, %v7391_v30  ;;  %v5071_v30 = vor.u32 %v5962_v37, %v5068_v41  ;;  %v5247_v52 = vor.u32 %v6008_v45, %v5244_v46  ;;  %v4996_v25 = vld [vmem:[%s6921_s23 + $0x628] sm:$0xf0]  ;;  %v5199_v17 = vor.u32 %v5996_v14, %v5196_v15  ;;  %v5348_v41 = vld [vmem:[%s6921_s23 + $0x8f0] sm:$0xf0]  ;;  %v5354_v42 = vld [vmem:[%s6921_s23 + $0x8e0] sm:$0xf] }
 0x165   : > { %2511 = vmatpush.bf16.msrb.mxu0 %v5163_v47  ;;  %2480 = vmatmul.bf16.vlgmr.msra.gmra.mxu1 %v7497_v55  ;;  %v7535_v44 = vsel %vm912_vm2, %v3600_v32, %v7396_v35  ;;  %v5067_v47 = vor.u32 %v5965_v36, %v5066_v31  ;;  %v5044_v35 = vld [vmem:[%s6921_s23 + $0x688] sm:$0xf0]  ;;  %v5172_v31 = vld [vmem:[%s6921_s23 + $0x798] sm:$0xf0]  ;;  %v4999_v43 = vor.u32 %v5944_v24, %v4996_v25  ;;  %v6034_v46 = vld [vmem:[%s6921_s23 + $0x8e4] sm:$0xf] }
 0x166   : > { %2524 = vmatpush.bf16.msrb.mxu1 %v5167_v49  ;;  %2780 = vmatpush.bf16.msrb.mxu2 %v5339_v50  ;;  %v5042_v49 = vld [vmem:[%s6921_s23 + $0x670] sm:$0xf]  ;;  %v5959_v50 = vld [vmem:[%s6921_s23 + $0x684] sm:$0xf0]  ;;  %v6033_v36 = vld [vmem:[%s6921_s23 + $0x8dc] sm:$0xf]  ;;  %v5171_v45 = vor.u32 %v5993_v21, %v5170_v26 }
 0x167   : > { %2793 = vmatpush.bf16.msrb.mxu3 %v5343_v54  ;;  %2493 = vmatmul.bf16.vlgmr.msra.gmra.mxu2 %v7497_v55  ;;  %v5218_v54 = vld [vmem:[%s6921_s23 + $0x7e0] sm:$0xf]  ;;  %v5043_v0 = vor.u32 %v5959_v50, %v5042_v49  ;;  %v5351_v50 = vor.u32 %v6033_v36, %v5348_v41  ;;  %v5282_v24 = vld [vmem:[%s6921_s23 + $0x850] sm:$0xf]  ;;  %v6019_v25 = vld [vmem:[%s6921_s23 + $0x864] sm:$0xf0] }
 0x168   : > { %2506 = vmatmul.bf16.vlgmr.msra.gmra.mxu3 %v7497_v55  ;;  %v5219_v4 = vor.u32 %v6005_v18, %v5218_v54  ;;  %v5324_v18 = vld [vmem:[%s6921_s23 + $0x8c0] sm:$0xf0]  ;;  %v5283_v36 = vor.u32 %v6019_v25, %v5282_v24  ;;  %v5991_v24 = vld [vmem:[%s6921_s23 + $0x78c] sm:$0xf] }
 0x169   : > { %2512 = vmatpush.bf16.msrb.mxu0 %v5139_v61  ;;  %v5220_v61 = vld [vmem:[%s6921_s23 + $0x7f8] sm:$0xf0]  ;;  %v5180_v25 = vld [vmem:[%s6921_s23 + $0x7a0] sm:$0xf0] }
 0x16a   : > { %2525 = vmatpush.bf16.msrb.mxu1 %v5143_v62  ;;  %2781 = vmatpush.bf16.msrb.mxu2 %v5315_v63  ;;  %v1557_v53 = vpop.f32.mrf.mxu2  ;;  %v1533_v62 = vpop.f32.mrf.mxu0 }
 0x16b   : > { %2794 = vmatpush.bf16.msrb.mxu3 %v5319_v6  ;;  %v3614_v56 = vrot.slane %v1557_v53, 7  ;;  %v1570_v58 = vpop.f32.mrf.mxu3  ;;  %v1546_v2 = vpop.f32.mrf.mxu1  ;;  %v5047_v6 = vor.u32 %v5956_v51, %v5044_v35  ;;  %v5355_v51 = vor.u32 %v6037_v19, %v5354_v42  ;;  %v6030_v53 = vld [vmem:[%s6921_s23 + $0x8bc] sm:$0xf0]  ;;  %v6027_v35 = vld [vmem:[%s6921_s23 + $0x8ac] sm:$0xf] }
 0x16c   : > { %v3628_v63 = vrot.slane %v1570_v58, 7  ;;  %v6031_v58 = vld [vmem:[%s6921_s23 + $0x8c4] sm:$0xf0]  ;;  %v5332_v62 = vld [vmem:[%s6921_s23 + $0x8c8] sm:$0xf0] }
 0x16d   : > { %2513 = vmatpush.bf16.msrb.mxu0 %v5115_v13  ;;  %v7549_v3 = vsel %vm912_vm2, %v3614_v56, %v7434_v29  ;;  %v5223_v13 = vor.u32 %v6002_v59, %v5220_v61  ;;  %v5999_v29 = vld [vmem:[%s6921_s23 + $0x7c4] sm:$0xf0]  ;;  %v5330_v56 = vld [vmem:[%s6921_s23 + $0x8b0] sm:$0xf]  ;;  %v6028_v61 = vld [vmem:[%s6921_s23 + $0x8b4] sm:$0xf] }
 0x16e   : > { %2526 = vmatpush.bf16.msrb.mxu1 %v5119_v11  ;;  %2782 = vmatpush.bf16.msrb.mxu2 %v5291_v12  ;;  %v7556_v10 = vsel %vm912_vm2, %v3628_v63, %v7439_v39  ;;  %v5020_v11 = vld [vmem:[%s6921_s23 + $0x658] sm:$0xf0]  ;;  %v5194_v12 = vld [vmem:[%s6921_s23 + $0x7b0] sm:$0xf]  ;;  %v5331_v2 = vor.u32 %v6031_v58, %v5330_v56  ;;  %v5335_v8 = vor.u32 %v6028_v61, %v5332_v62  ;;  %v5252_v19 = vld [vmem:[%s6921_s23 + $0x830] sm:$0xf0] }
 0x16f   : > { %2795 = vmatpush.bf16.msrb.mxu3 %v5295_v20  ;;  %v4994_v20 = vld [vmem:[%s6921_s23 + $0x610] sm:$0xf]  ;;  %v5023_v39 = vor.u32 %v5950_v9, %v5020_v11  ;;  %v5195_v23 = vor.u32 %v5999_v29, %v5194_v12  ;;  %v5300_v9 = vld [vmem:[%s6921_s23 + $0x890] sm:$0xf0]  ;;  %v6025_v11 = vld [vmem:[%s6921_s23 + $0x894] sm:$0xf0] }
 0x170   : > { %v6022_v12 = vld [vmem:[%s6921_s23 + $0x884] sm:$0xf]  ;;  %v5308_v29 = vld [vmem:[%s6921_s23 + $0x898] sm:$0xf0]  ;;  %v5303_v15 = vor.u32 %v6021_v5, %v5300_v9  ;;  %v6004_v61 = vld [vmem:[%s6921_s23 + $0x7f4] sm:$0xf] }
 0x171   : > { %2514 = vmatpush.bf16.msrb.mxu0 %v5091_v28  ;;  %v5990_v28 = vld [vmem:[%s6921_s23 + $0x784] sm:$0xf]  ;;  %v5236_v62 = vld [vmem:[%s6921_s23 + $0x808] sm:$0xf0]  ;;  %v5202_v9 = vld [vmem:[%s6921_s23 + $0x7b8] sm:$0xf] }
 0x172   : > { %2527 = vmatpush.bf16.msrb.mxu1 %v5095_v33  ;;  %2783 = vmatpush.bf16.msrb.mxu2 %v5267_v34  ;;  %v1559_v32 = vpop.f32.mrf.mxu2  ;;  %v5346_v33 = vld [vmem:[%s6921_s23 + $0x8d8] sm:$0xf]  ;;  %v6036_v34 = vld [vmem:[%s6921_s23 + $0x8ec] sm:$0xf0] }
 0x173   : > { %2796 = vmatpush.bf16.msrb.mxu3 %v5271_v40  ;;  %v1572_v37 = vpop.f32.mrf.mxu3  ;;  %v4995_v40 = vor.u32 %v5947_v22, %v4994_v20  ;;  %v5347_v49 = vor.u32 %v6036_v34, %v5346_v33  ;;  %v5274_v20 = vld [vmem:[%s6921_s23 + $0x848] sm:$0xf]  ;;  %v6015_v22 = vld [vmem:[%s6921_s23 + $0x84c] sm:$0xf]  ;;  %v5250_v32 = vld [vmem:[%s6921_s23 + $0x818] sm:$0xf] }
 0x174   : > { %v6012_v37 = vld [vmem:[%s6921_s23 + $0x82c] sm:$0xf0] }
 0x175   : > { %2515 = vmatpush.bf16.msrb.mxu0 %v5067_v47  ;;  %v5356_v47 = vld [vmem:[%s6921_s23 + $0x8f8] sm:$0xf0] }
 0x176   : > { %2528 = vmatpush.bf16.msrb.mxu1 %v5071_v30  ;;  %2784 = vmatpush.bf16.msrb.mxu2 %v5243_v48  ;;  %v2537_v30 = vpack.i.b16 %v929_v27, %v929_v27  ;;  %v5175_v48 = vor.u32 %v5990_v28, %v5172_v31  ;;  %v5359_v54 = vor.u32 %v6034_v46, %v5356_v47  ;;  %v6016_v27 = vld [vmem:[%s6921_s23 + $0x854] sm:$0xf]  ;;  %v6010_v47 = vld [vmem:[%s6921_s23 + $0x824] sm:$0xf] }
 0x177   : > { %2797 = vmatpush.bf16.msrb.mxu3 %v5247_v52  ;;  %v5322_v52 = vld [vmem:[%s6921_s23 + $0x8a8] sm:$0xf] }
 0x178   : > { %v7586_v59 = vperm.slane %v2537_v30, 0  ;;  %v5323_v63 = vor.u32 %v6030_v53, %v5322_v52  ;;  %v5260_v30 = vld [vmem:[%s6921_s23 + $0x838] sm:$0xf0]  ;;  %v6003_v52 = vld [vmem:[%s6921_s23 + $0x7ec] sm:$0xf] }
 0x179   : > { %2516 = vmatpush.bf16.msrb.mxu0 %v5043_v0  ;;  %v5327_v0 = vor.u32 %v6027_v35, %v5324_v18  ;;  %v5263_v53 = vor.u32 %v6010_v47, %v5260_v30  ;;  %v6007_v18 = vld [vmem:[%s6921_s23 + $0x804] sm:$0xf0]  ;;  %v6081_v47 = vld [vmem:[%s6921_s23 + $0xa5c] sm:$0xf]  ;;  %v5541_v30 = vld [vmem:[%s6921_s23 + $0xa70] sm:$0xf0] }
 0x17a   : > { %2529 = vmatpush.bf16.msrb.mxu1 %v5047_v6  ;;  %2785 = vmatpush.bf16.msrb.mxu2 %v5219_v4  ;;  %v5298_v6 = vld [vmem:[%s6921_s23 + $0x878] sm:$0xf]  ;;  %v6024_v4 = vld [vmem:[%s6921_s23 + $0x88c] sm:$0xf0] }
 0x17b   : > { %2798 = vmatpush.bf16.msrb.mxu3 %v5223_v13  ;;  %v5306_v13 = vld [vmem:[%s6921_s23 + $0x880] sm:$0xf]  ;;  %v5299_v14 = vor.u32 %v6024_v4, %v5298_v6 }
 0x17d   : > { %2517 = vmatpush.bf16.msrb.mxu0 %v5019_v16  ;;  %v5307_v16 = vor.u32 %v6025_v11, %v5306_v13  ;;  %v6000_v13 = vld [vmem:[%s6921_s23 + $0x7cc] sm:$0xf0]  ;;  %v5997_v11 = vld [vmem:[%s6921_s23 + $0x7bc] sm:$0xf] }
 0x17e   : > { %2530 = vmatpush.bf16.msrb.mxu1 %v5023_v39  ;;  %2786 = vmatpush.bf16.msrb.mxu2 %v5195_v23  ;;  %v5311_v39 = vor.u32 %v6022_v12, %v5308_v29  ;;  %v5276_v23 = vld [vmem:[%s6921_s23 + $0x860] sm:$0xf0]  ;;  %v5239_v29 = vor.u32 %v6004_v61, %v5236_v62 }
 0x17f   : > { %2799 = vmatpush.bf16.msrb.mxu3 %v5199_v17  ;;  %v5284_v17 = vld [vmem:[%s6921_s23 + $0x868] sm:$0xf0]  ;;  %v5279_v34 = vor.u32 %v6015_v22, %v5276_v23  ;;  %v5178_v22 = vld [vmem:[%s6921_s23 + $0x788] sm:$0xf] }
 0x180   : > { %v5287_v42 = vor.u32 %v6016_v27, %v5284_v17  ;;  %v5995_v17 = vld [vmem:[%s6921_s23 + $0x7a4] sm:$0xf0] }
 0x181   : > { %2518 = vmatpush.bf16.msrb.mxu0 %v4995_v40  ;;  %v1826_v26 = vpop.f32.mrf.mxu0  ;;  %v6009_v40 = vld [vmem:[%s6921_s23 + $0x81c] sm:$0xf] }
 0x182   : > { %2531 = vmatpush.bf16.msrb.mxu1 %v4999_v43  ;;  %2787 = vmatpush.bf16.msrb.mxu2 %v5171_v45  ;;  %v3556_v21 = vrot.slane %v1826_v26, 6  ;;  %v1839_v28 = vpop.f32.mrf.mxu1  ;;  %v5258_v43 = vld [vmem:[%s6921_s23 + $0x820] sm:$0xf]  ;;  %v6013_v45 = vld [vmem:[%s6921_s23 + $0x834] sm:$0xf0] }
 0x183   : > { %2800 = vmatpush.bf16.msrb.mxu3 %v5175_v48  ;;  %v3574_v33 = vrot.slane %v1839_v28, 6  ;;  %v5251_v48 = vor.u32 %v6012_v37, %v5250_v32  ;;  %v5186_v26 = vld [vmem:[%s6921_s23 + $0x790] sm:$0xf]  ;;  %v5188_v28 = vld [vmem:[%s6921_s23 + $0x7a8] sm:$0xf0] }
 0x184   : > { %2519 = vmatmul.bf16.vlgmr.msrb.gmra.mxu0 %v7497_v55  ;;  %v7615_v41 = vsel %vm916_vm3, %v3556_v21, %v7456_v60  ;;  %v5255_v60 = vor.u32 %v6009_v40, %v5252_v19  ;;  %v5992_v21 = vld [vmem:[%s6921_s23 + $0x794] sm:$0xf]  ;;  %v5531_v32 = vld [vmem:[%s6921_s23 + $0xa50] sm:$0xf]  ;;  %v5533_v40 = vld [vmem:[%s6921_s23 + $0xa68] sm:$0xf0] }
 0x185   : > { %2806 = vmatpush.bf16.msra.mxu0 %v5347_v49  ;;  %2532 = vmatmul.bf16.vlgmr.msrb.gmra.mxu1 %v7497_v55  ;;  %v6018_v55 = vld [vmem:[%s6921_s23 + $0x85c] sm:$0xf0]  ;;  %v7622_v46 = vsel %vm916_vm3, %v3574_v33, %v7460_v7  ;;  %v5259_v49 = vor.u32 %v6013_v45, %v5258_v43  ;;  %v5228_v7 = vld [vmem:[%s6921_s23 + $0x800] sm:$0xf0]  ;;  %v6083_v33 = vld [vmem:[%s6921_s23 + $0xa64] sm:$0xf0]  ;;  %v5183_v43 = vor.u32 %v5991_v24, %v5180_v25 }
 0x186   : > { %2819 = vmatpush.bf16.msra.mxu1 %v5351_v50  ;;  %2832 = vmatpush.bf16.msra.mxu2 %v5355_v51  ;;  %v5275_v31 = vor.u32 %v6018_v55, %v5274_v20  ;;  %v5226_v50 = vld [vmem:[%s6921_s23 + $0x7e8] sm:$0xf]  ;;  %v6006_v51 = vld [vmem:[%s6921_s23 + $0x7fc] sm:$0xf0]  ;;  %v5231_v5 = vor.u32 %v6003_v52, %v5228_v7  ;;  %v5212_v20 = vld [vmem:[%s6921_s23 + $0x7d8] sm:$0xf0]  ;;  %v5203_v55 = vor.u32 %v6000_v13, %v5202_v9 }
 0x187   : > { %2845 = vmatpush.bf16.msra.mxu3 %v5359_v54  ;;  %2788 = vmatmul.bf16.vlgmr.msrb.gmra.mxu2 %v7586_v59  ;;  %v5234_v54 = vld [vmem:[%s6921_s23 + $0x7f0] sm:$0xf]  ;;  %v5187_v45 = vor.u32 %v5995_v17, %v5186_v26  ;;  %v6077_v52 = vld [vmem:[%s6921_s23 + $0xa34] sm:$0xf0]  ;;  %v5509_v7 = vld [vmem:[%s6921_s23 + $0xa38] sm:$0xf0] }
 0x188   : > { %2801 = vmatmul.bf16.vlgmr.msrb.gmra.mxu3 %v7586_v59  ;;  %v6084_v19 = vld [vmem:[%s6921_s23 + $0xa6c] sm:$0xf0]  ;;  %v5491_v9 = vld [vmem:[%s6921_s23 + $0x9f8] sm:$0xf]  ;;  %v6063_v24 = vld [vmem:[%s6921_s23 + $0x9cc] sm:$0xf] }
 0x189   : > { %2807 = vmatpush.bf16.msra.mxu0 %v5323_v63  ;;  %v1828_v63 = vpop.f32.mrf.mxu0  ;;  %v6072_v13 = vld [vmem:[%s6921_s23 + $0xa0c] sm:$0xf0]  ;;  %v5469_v25 = vld [vmem:[%s6921_s23 + $0x9e0] sm:$0xf0] }
 0x18a   : > { %2820 = vmatpush.bf16.msra.mxu1 %v5327_v0  ;;  %2833 = vmatpush.bf16.msra.mxu2 %v5331_v2  ;;  %v1852_v35 = vpop.f32.mrf.mxu2  ;;  %v5227_v2 = vor.u32 %v6006_v51, %v5226_v50  ;;  %v1841_v6 = vpop.f32.mrf.mxu1  ;;  %v5507_v51 = vld [vmem:[%s6921_s23 + $0xa20] sm:$0xf] }
 0x18b   : > { %2846 = vmatpush.bf16.msra.mxu3 %v5335_v8  ;;  %v3588_v56 = vrot.slane %v1852_v35, 6  ;;  %v1865_v58 = vpop.f32.mrf.mxu3  ;;  %v5235_v8 = vor.u32 %v6007_v18, %v5234_v54  ;;  %v5544_v35 = vor.u32 %v6081_v47, %v5541_v30  ;;  %v5515_v54 = vld [vmem:[%s6921_s23 + $0xa28] sm:$0xf]  ;;  %v6078_v18 = vld [vmem:[%s6921_s23 + $0xa3c] sm:$0xf0]  ;;  %v5508_v61 = vor.u32 %v6077_v52, %v5507_v51 }
 0x18c   : > { %v3602_v0 = vrot.slane %v1865_v58, 6  ;;  %v5517_v58 = vld [vmem:[%s6921_s23 + $0xa40] sm:$0xf0]  ;;  %v5516_v63 = vor.u32 %v6078_v18, %v5515_v54  ;;  %v6068_v6 = vld [vmem:[%s6921_s23 + $0x9f4] sm:$0xf] }
 0x18d   : > { %2808 = vmatpush.bf16.msra.mxu0 %v5299_v14  ;;  %v7636_v4 = vsel %vm916_vm3, %v3588_v56, %v7528_v38  ;;  %v5204_v14 = vld [vmem:[%s6921_s23 + $0x7d0] sm:$0xf0]  ;;  %v6001_v38 = vld [vmem:[%s6921_s23 + $0x7d4] sm:$0xf0]  ;;  %v6075_v56 = vld [vmem:[%s6921_s23 + $0xa2c] sm:$0xf] }
 0x18e   : > { %2821 = vmatpush.bf16.msra.mxu1 %v5303_v15  ;;  %2834 = vmatpush.bf16.msra.mxu2 %v5307_v16  ;;  %v7643_v12 = vsel %vm916_vm3, %v3602_v0, %v7535_v44  ;;  %v5210_v15 = vld [vmem:[%s6921_s23 + $0x7c0] sm:$0xf]  ;;  %v5998_v16 = vld [vmem:[%s6921_s23 + $0x7c4] sm:$0xf]  ;;  %v5207_v44 = vor.u32 %v5997_v11, %v5204_v14  ;;  %v5483_v0 = vld [vmem:[%s6921_s23 + $0x9f0] sm:$0xf] }
 0x18f   : > { %2847 = vmatpush.bf16.msra.mxu3 %v5311_v39  ;;  %v5994_v39 = vld [vmem:[%s6921_s23 + $0x79c] sm:$0xf0]  ;;  %v5211_v23 = vor.u32 %v6001_v38, %v5210_v15  ;;  %v5215_v27 = vor.u32 %v5998_v16, %v5212_v20  ;;  %v6069_v11 = vld [vmem:[%s6921_s23 + $0x9fc] sm:$0xf]  ;;  %v5492_v38 = vor.u32 %v6072_v13, %v5491_v9  ;;  %v6065_v20 = vld [vmem:[%s6921_s23 + $0x9d4] sm:$0xf0]  ;;  %v921_v13 = vsel %vm920_vm4, %v7040_v57, %v7047_v1 }
 0x190   : > { %v5179_v37 = vor.u32 %v5994_v39, %v5178_v22  ;;  %v5459_v16 = vld [vmem:[%s6921_s23 + $0x9c0] sm:$0xf]  ;;  %v5461_v39 = vld [vmem:[%s6921_s23 + $0x9d8] sm:$0xf0]  ;;  %v5445_v47 = vld [vmem:[%s6921_s23 + $0x9b0] sm:$0xf0] }
 0x191   : > { %2809 = vmatpush.bf16.msra.mxu0 %v5275_v31  ;;  %v5460_v17 = vor.u32 %v6065_v20, %v5459_v16  ;;  %v5413_v51 = vld [vmem:[%s6921_s23 + $0x978] sm:$0xf0]  ;;  %v6051_v18 = vld [vmem:[%s6921_s23 + $0x96c] sm:$0xf]  ;;  %v6044_v9 = vld [vmem:[%s6921_s23 + $0x934] sm:$0xf] }
 0x192   : > { %2822 = vmatpush.bf16.msra.mxu1 %v5279_v34  ;;  %2835 = vmatpush.bf16.msra.mxu2 %v5283_v36  ;;  %v1854_v31 = vpop.f32.mrf.mxu2  ;;  %v6080_v34 = vld [vmem:[%s6921_s23 + $0xa54] sm:$0xf]  ;;  %v5363_v57 = vld [vmem:[%s6921_s23 + $0x900] sm:$0xf]  ;;  %v6041_v1 = vld [vmem:[%s6921_s23 + $0x914] sm:$0xf0] }
 0x193   : > { %2848 = vmatpush.bf16.msra.mxu3 %v5287_v42  ;;  %v1867_v36 = vpop.f32.mrf.mxu3  ;;  %v5539_v42 = vld [vmem:[%s6921_s23 + $0xa58] sm:$0xf]  ;;  %v5397_v16 = vld [vmem:[%s6921_s23 + $0x950] sm:$0xf0] }
 0x194   : > { %v5540_v50 = vor.u32 %v6084_v19, %v5539_v42  ;;  %v5443_v42 = vld [vmem:[%s6921_s23 + $0x998] sm:$0xf]  ;;  %v6060_v19 = vld [vmem:[%s6921_s23 + $0x9ac] sm:$0xf0] }
 0x195   : > { %2810 = vmatpush.bf16.msra.mxu0 %v5251_v48  ;;  %v5191_v48 = vor.u32 %v5992_v21, %v5188_v28  ;;  %v5435_v21 = vld [vmem:[%s6921_s23 + $0x990] sm:$0xf] }
 0x196   : > { %2823 = vmatpush.bf16.msra.mxu1 %v5255_v60  ;;  %2836 = vmatpush.bf16.msra.mxu2 %v5259_v49  ;;  %v5532_v60 = vor.u32 %v6083_v33, %v5531_v32  ;;  %v5536_v49 = vor.u32 %v6080_v34, %v5533_v40  ;;  %v6059_v33 = vld [vmem:[%s6921_s23 + $0x9a4] sm:$0xf0]  ;;  %v6056_v34 = vld [vmem:[%s6921_s23 + $0x994] sm:$0xf]  ;;  %v5437_v40 = vld [vmem:[%s6921_s23 + $0x9a8] sm:$0xf0] }
 0x197   : > { %2849 = vmatpush.bf16.msra.mxu3 %v5263_v53  ;;  %v6074_v53 = vld [vmem:[%s6921_s23 + $0xa24] sm:$0xf]  ;;  %v5436_v30 = vor.u32 %v6059_v33, %v5435_v21  ;;  %v6085_v21 = vld [vmem:[%s6921_s23 + $0xa74] sm:$0xf0]  ;;  %v5549_v33 = vld [vmem:[%s6921_s23 + $0xa78] sm:$0xf0] }
 0x198   : > { %v5512_v62 = vor.u32 %v6074_v53, %v5509_v7  ;;  %v5419_v53 = vld [vmem:[%s6921_s23 + $0x968] sm:$0xf] }
 0x199   : > { %2811 = vmatpush.bf16.msra.mxu0 %v5227_v2  ;;  %v6071_v2 = vld [vmem:[%s6921_s23 + $0xa04] sm:$0xf0] }
 0x19a   : > { %2824 = vmatpush.bf16.msra.mxu1 %v5231_v5  ;;  %2837 = vmatpush.bf16.msra.mxu2 %v5235_v8  ;;  %v5520_v5 = vor.u32 %v6075_v56, %v5517_v58  ;;  %v5485_v8 = vld [vmem:[%s6921_s23 + $0xa08] sm:$0xf0]  ;;  %v5484_v14 = vor.u32 %v6071_v2, %v5483_v0  ;;  %v5421_v56 = vld [vmem:[%s6921_s23 + $0x980] sm:$0xf0] }
 0x19b   : > { %2850 = vmatpush.bf16.msra.mxu3 %v5239_v29  ;;  %v5493_v29 = vld [vmem:[%s6921_s23 + $0xa10] sm:$0xf0]  ;;  %v5488_v15 = vor.u32 %v6068_v6, %v5485_v8  ;;  %v6047_v8 = vld [vmem:[%s6921_s23 + $0x944] sm:$0xf0] }
 0x19c   : > { %v5496_v22 = vor.u32 %v6069_v11, %v5493_v29  ;;  %v5424_v29 = vor.u32 %v6051_v18, %v5421_v56  ;;  %v5701_v18 = vld [vmem:[%s6921_s23 + $0xbb8] sm:$0xf0] }
 0x19d   : > { %2812 = vmatpush.bf16.msra.mxu0 %v5203_v55  ;;  %v6062_v55 = vld [vmem:[%s6921_s23 + $0x9c4] sm:$0xf] }
 0x19e   : > { %2825 = vmatpush.bf16.msra.mxu1 %v5207_v44  ;;  %2838 = vmatpush.bf16.msra.mxu2 %v5211_v23  ;;  %v5467_v44 = vld [vmem:[%s6921_s23 + $0x9c8] sm:$0xf]  ;;  %v6066_v23 = vld [vmem:[%s6921_s23 + $0x9dc] sm:$0xf0]  ;;  %v5464_v31 = vor.u32 %v6062_v55, %v5461_v39  ;;  %v6038_v39 = vld [vmem:[%s6921_s23 + $0x904] sm:$0xf] }
 0x19f   : > { %2851 = vmatpush.bf16.msra.mxu3 %v5215_v27  ;;  %v5468_v32 = vor.u32 %v6066_v23, %v5467_v44  ;;  %v5365_v44 = vld [vmem:[%s6921_s23 + $0x918] sm:$0xf0]  ;;  %v5371_v23 = vld [vmem:[%s6921_s23 + $0x908] sm:$0xf] }
 0x1a1   : > { %2813 = vmatpush.bf16.msra.mxu0 %v5179_v37  ;;  %v5472_v37 = vor.u32 %v6063_v24, %v5469_v25  ;;  %v6042_v24 = vld [vmem:[%s6921_s23 + $0x91c] sm:$0xf0]  ;;  %v6039_v25 = vld [vmem:[%s6921_s23 + $0x90c] sm:$0xf] }
 0x1a2   : > { %2826 = vmatpush.bf16.msra.mxu1 %v5183_v43  ;;  %2839 = vmatpush.bf16.msra.mxu2 %v5187_v45  ;;  %v1891_v27 = vpop.f32.mrf.mxu1  ;;  %v6057_v45 = vld [vmem:[%s6921_s23 + $0x99c] sm:$0xf] }
 0x1a3   : > { %2852 = vmatpush.bf16.msra.mxu3 %v5191_v48  ;;  %v3630_v28 = vrot.slane %v1891_v27, 6  ;;  %v5411_v48 = vld [vmem:[%s6921_s23 + $0x960] sm:$0xf]  ;;  %v5448_v52 = vor.u32 %v6057_v45, %v5445_v47  ;;  %v6128_v45 = vld [vmem:[%s6921_s23 + $0xbd4] sm:$0xf] }
 0x1a4   : > { %2814 = vmatmul.bf16.vlgmr.msra.gmra.mxu0 %v7586_v59  ;;  %v5725_v47 = vld [vmem:[%s6921_s23 + $0xbe8] sm:$0xf0] }
 0x1a5   : > { %3101 = vmatpush.bf16.msrb.mxu0 %v5532_v60  ;;  %2827 = vmatmul.bf16.vlgmr.msra.gmra.mxu1 %v7586_v59  ;;  %v7706_v43 = vsel %vm916_vm3, %v3630_v28, %v7556_v10  ;;  %v5444_v60 = vor.u32 %v6060_v19, %v5443_v42  ;;  %v6082_v28 = vld [vmem:[%s6921_s23 + $0xa64] sm:$0xf]  ;;  %v5368_v42 = vor.u32 %v6038_v39, %v5365_v44 }
 0x1a6   : > { %3114 = vmatpush.bf16.msrb.mxu1 %v5536_v49  ;;  %3127 = vmatpush.bf16.msrb.mxu2 %v5540_v50  ;;  %v6053_v49 = vld [vmem:[%s6921_s23 + $0x974] sm:$0xf0]  ;;  %v6050_v50 = vld [vmem:[%s6921_s23 + $0x964] sm:$0xf]  ;;  %v5372_v19 = vor.u32 %v6042_v24, %v5371_v23  ;;  %v5653_v23 = vld [vmem:[%s6921_s23 + $0xb58] sm:$0xf0] }
 0x1a7   : > { %3140 = vmatpush.bf16.msrb.mxu3 %v5544_v35  ;;  %2840 = vmatmul.bf16.vlgmr.msra.gmra.mxu2 %v7586_v59  ;;  %v6054_v35 = vld [vmem:[%s6921_s23 + $0x97c] sm:$0xf0]  ;;  %v6110_v44 = vld [vmem:[%s6921_s23 + $0xb44] sm:$0xf] }
 0x1a8   : > { %2853 = vmatmul.bf16.vlgmr.msra.gmra.mxu3 %v7586_v59  ;;  %v1878_v59 = vpop.f32.mrf.mxu0  ;;  %v5420_v6 = vor.u32 %v6054_v35, %v5419_v53  ;;  %v5699_v35 = vld [vmem:[%s6921_s23 + $0xba0] sm:$0xf] }
 0x1a9   : > { %3102 = vmatpush.bf16.msrb.mxu0 %v5508_v61  ;;  %v3616_v26 = vrot.slane %v1878_v59, 6 }
 0x1aa   : > { %3115 = vmatpush.bf16.msrb.mxu1 %v5512_v62  ;;  %3128 = vmatpush.bf16.msrb.mxu2 %v5516_v63  ;;  %v2147_v10 = vpop.f32.mrf.mxu2  ;;  %v5412_v62 = vor.u32 %v6053_v49, %v5411_v48  ;;  %v5416_v63 = vor.u32 %v6050_v50, %v5413_v51  ;;  %v1893_v0 = vpop.f32.mrf.mxu1  ;;  %v6079_v50 = vld [vmem:[%s6921_s23 + $0xa44] sm:$0xf0]  ;;  %v6076_v51 = vld [vmem:[%s6921_s23 + $0xa34] sm:$0xf] }
 0x1ab   : > { %3141 = vmatpush.bf16.msrb.mxu3 %v5520_v5  ;;  %v7699_v36 = vsel %vm916_vm3, %v3616_v26, %v7549_v3  ;;  %v5440_v3 = vor.u32 %v6056_v34, %v5437_v40  ;;  %v3558_v7 = vrot.slane %v2147_v10, 5  ;;  %v2160_v54 = vpop.f32.mrf.mxu3  ;;  %v5387_v5 = vld [vmem:[%s6921_s23 + $0x930] sm:$0xf]  ;;  %v5373_v26 = vld [vmem:[%s6921_s23 + $0x920] sm:$0xf0]  ;;  %v5728_v10 = vor.u32 %v6128_v45, %v5725_v47 }
 0x1ac   : > { %v3576_v61 = vrot.slane %v2160_v54, 5  ;;  %v5388_v20 = vor.u32 %v6047_v8, %v5387_v5  ;;  %v5723_v34 = vld [vmem:[%s6921_s23 + $0xbd0] sm:$0xf]  ;;  %v6122_v54 = vld [vmem:[%s6921_s23 + $0xba4] sm:$0xf] }
 0x1ad   : > { %3103 = vmatpush.bf16.msrb.mxu0 %v5484_v14  ;;  %v7720_v2 = vsel %vm920_vm4, %v3558_v7, %v7615_v41  ;;  %v5389_v41 = vld [vmem:[%s6921_s23 + $0x948] sm:$0xf0]  ;;  %v5395_v14 = vld [vmem:[%s6921_s23 + $0x938] sm:$0xf]  ;;  %v6070_v0 = vld [vmem:[%s6921_s23 + $0xa04] sm:$0xf] }
 0x1ae   : > { %3116 = vmatpush.bf16.msrb.mxu1 %v5488_v15  ;;  %3129 = vmatpush.bf16.msrb.mxu2 %v5492_v38  ;;  %v7730_v11 = vsel %vm920_vm4, %v3576_v61, %v7622_v46  ;;  %v6048_v15 = vld [vmem:[%s6921_s23 + $0x94c] sm:$0xf0]  ;;  %v6045_v38 = vld [vmem:[%s6921_s23 + $0x93c] sm:$0xf]  ;;  %v7739_v46 = vrot.slane %v921_v13, 3  ;;  %v5392_v55 = vor.u32 %v6044_v9, %v5389_v41 }
 0x1af   : > { %3142 = vmatpush.bf16.msrb.mxu3 %v5496_v22  ;;  %v5396_v22 = vor.u32 %v6048_v15, %v5395_v14  ;;  %v5400_v59 = vor.u32 %v6045_v38, %v5397_v16  ;;  %v6125_v7 = vld [vmem:[%s6921_s23 + $0xbb4] sm:$0xf0]  ;;  %v5501_v5 = vld [vmem:[%s6921_s23 + $0xa18] sm:$0xf0]  ;;  %v5675_v8 = vld [vmem:[%s6921_s23 + $0xb70] sm:$0xf] }
 0x1b0   : > { %v1880_v58 = vpop.f32.mrf.mxu0  ;;  %v5360_v40 = vpack.i.b16 %v7739_v46, %v7739_v46  ;;  %v5700_v61 = vor.u32 %v6125_v7, %v5699_v35  ;;  %v6119_v9 = vld [vmem:[%s6921_s23 + $0xb84] sm:$0xf0]  ;;  %v6116_v13 = vld [vmem:[%s6921_s23 + $0xb74] sm:$0xf]  ;;  %v5504_v14 = vor.u32 %v6070_v0, %v5501_v5  ;;  %v5475_v38 = vld [vmem:[%s6921_s23 + $0x9d0] sm:$0xf] }
 0x1b1   : > { %3104 = vmatpush.bf16.msrb.mxu0 %v5460_v17  ;;  %v5547_v17 = vld [vmem:[%s6921_s23 + $0xa60] sm:$0xf]  ;;  %v5676_v15 = vor.u32 %v6119_v9, %v5675_v8  ;;  %v6067_v16 = vld [vmem:[%s6921_s23 + $0x9e4] sm:$0xf0]  ;;  %v5629_v45 = vld [vmem:[%s6921_s23 + $0xb28] sm:$0xf0] }
 0x1b2   : > { %3117 = vmatpush.bf16.msrb.mxu1 %v5464_v31  ;;  %3130 = vmatpush.bf16.msrb.mxu2 %v5468_v32  ;;  %v2149_v27 = vpop.f32.mrf.mxu2  ;;  %v5364_v32 = vor.u32 %v6041_v1, %v5363_v57  ;;  %v5548_v48 = vor.u32 %v6085_v21, %v5547_v17  ;;  %v7761_v53 = vperm.slane %v5360_v40, 0  ;;  %v5477_v1 = vld [vmem:[%s6921_s23 + $0x9e8] sm:$0xf0]  ;;  %v6107_v40 = vld [vmem:[%s6921_s23 + $0xb24] sm:$0xf0] }
 0x1b3   : > { %3143 = vmatpush.bf16.msrb.mxu3 %v5472_v37  ;;  %v2162_v31 = vpop.f32.mrf.mxu3  ;;  %v6131_v37 = vld [vmem:[%s6921_s23 + $0xbe4] sm:$0xf0]  ;;  %v6098_v7 = vld [vmem:[%s6921_s23 + $0xae4] sm:$0xf]  ;;  %v6049_v5 = vld [vmem:[%s6921_s23 + $0x954] sm:$0xf0] }
 0x1b4   : > { %v5724_v49 = vor.u32 %v6131_v37, %v5723_v34  ;;  %v6058_v31 = vld [vmem:[%s6921_s23 + $0x9a4] sm:$0xf]  ;;  %v5453_v34 = vld [vmem:[%s6921_s23 + $0x9b8] sm:$0xf0]  ;;  %v5627_v37 = vld [vmem:[%s6921_s23 + $0xb10] sm:$0xf] }
 0x1b5   : > { %3105 = vmatpush.bf16.msrb.mxu0 %v5436_v30  ;;  %v5376_v30 = vor.u32 %v6039_v25, %v5373_v26  ;;  %v5476_v25 = vor.u32 %v6067_v16, %v5475_v38  ;;  %v5451_v26 = vld [vmem:[%s6921_s23 + $0x9a0] sm:$0xf]  ;;  %v6046_v8 = vld [vmem:[%s6921_s23 + $0x944] sm:$0xf]  ;;  %v5379_v16 = vld [vmem:[%s6921_s23 + $0x910] sm:$0xf] }
 0x1b6   : > { %3118 = vmatpush.bf16.msrb.mxu1 %v5440_v3  ;;  %3131 = vmatpush.bf16.msrb.mxu2 %v5444_v60  ;;  %v5523_v3 = vld [vmem:[%s6921_s23 + $0xa30] sm:$0xf]  ;;  %v5552_v60 = vor.u32 %v6082_v28, %v5549_v33  ;;  %v6061_v28 = vld [vmem:[%s6921_s23 + $0x9b4] sm:$0xf0]  ;;  %v5656_v33 = vor.u32 %v6110_v44, %v5653_v23 }
 0x1b7   : > { %3144 = vmatpush.bf16.msrb.mxu3 %v5448_v52  ;;  %v5525_v52 = vld [vmem:[%s6921_s23 + $0xa48] sm:$0xf0]  ;;  %v5524_v56 = vor.u32 %v6079_v50, %v5523_v3  ;;  %v5452_v47 = vor.u32 %v6061_v28, %v5451_v26  ;;  %v6055_v3 = vld [vmem:[%s6921_s23 + $0x984] sm:$0xf0]  ;;  %v6089_v23 = vld [vmem:[%s6921_s23 + $0xa94] sm:$0xf0] }
 0x1b8   : > { %v5528_v58 = vor.u32 %v6076_v51, %v5525_v52  ;;  %v5603_v51 = vld [vmem:[%s6921_s23 + $0xae0] sm:$0xf]  ;;  %v6101_v52 = vld [vmem:[%s6921_s23 + $0xaf4] sm:$0xf0] }
 0x1b9   : > { %3106 = vmatpush.bf16.msrb.mxu0 %v5412_v62  ;;  %v5499_v62 = vld [vmem:[%s6921_s23 + $0xa00] sm:$0xf]  ;;  %v5604_v0 = vor.u32 %v6101_v52, %v5603_v51  ;;  %v5731_v26 = vld [vmem:[%s6921_s23 + $0xbd8] sm:$0xf]  ;;  %v5715_v51 = vld [vmem:[%s6921_s23 + $0xbb0] sm:$0xf] }
 0x1ba   : > { %3119 = vmatpush.bf16.msrb.mxu1 %v5416_v63  ;;  %3132 = vmatpush.bf16.msrb.mxu2 %v5420_v6  ;;  %v6073_v63 = vld [vmem:[%s6921_s23 + $0xa14] sm:$0xf0]  ;;  %v5704_v6 = vor.u32 %v6122_v54, %v5701_v18  ;;  %v5605_v54 = vld [vmem:[%s6921_s23 + $0xaf8] sm:$0xf0]  ;;  %v6127_v52 = vld [vmem:[%s6921_s23 + $0xbc4] sm:$0xf0] }
 0x1bb   : > { %3145 = vmatpush.bf16.msrb.mxu3 %v5424_v29  ;;  %v5677_v29 = vld [vmem:[%s6921_s23 + $0xb88] sm:$0xf0]  ;;  %v5500_v41 = vor.u32 %v6073_v63, %v5499_v62 }
 0x1bc   : > { %v5680_v57 = vor.u32 %v6116_v13, %v5677_v29  ;;  %v5608_v13 = vor.u32 %v6098_v7, %v5605_v54  ;;  %v5405_v29 = vld [vmem:[%s6921_s23 + $0x958] sm:$0xf0]  ;;  %v5717_v7 = vld [vmem:[%s6921_s23 + $0xbc8] sm:$0xf0] }
 0x1bd   : > { %3107 = vmatpush.bf16.msrb.mxu0 %v5388_v20  ;;  %v6064_v20 = vld [vmem:[%s6921_s23 + $0x9d4] sm:$0xf] }
 0x1be   : > { %3120 = vmatpush.bf16.msrb.mxu1 %v5392_v55  ;;  %3133 = vmatpush.bf16.msrb.mxu2 %v5396_v22  ;;  %v5651_v55 = vld [vmem:[%s6921_s23 + $0xb40] sm:$0xf]  ;;  %v6113_v22 = vld [vmem:[%s6921_s23 + $0xb54] sm:$0xf0]  ;;  %v5480_v17 = vor.u32 %v6064_v20, %v5477_v1  ;;  %v6043_v20 = vld [vmem:[%s6921_s23 + $0x924] sm:$0xf0] }
 0x1bf   : > { %3146 = vmatpush.bf16.msrb.mxu3 %v5400_v59  ;;  %v5652_v21 = vor.u32 %v6113_v22, %v5651_v55  ;;  %v6040_v1 = vld [vmem:[%s6921_s23 + $0x914] sm:$0xf]  ;;  %v5381_v55 = vld [vmem:[%s6921_s23 + $0x928] sm:$0xf0]  ;;  %v5555_v22 = vld [vmem:[%s6921_s23 + $0xa80] sm:$0xf]  ;;  %v5380_v28 = vor.u32 %v6043_v20, %v5379_v16 }
 0x1c0   : > { %v5661_v20 = vld [vmem:[%s6921_s23 + $0xb60] sm:$0xf0] }
 0x1c1   : > { %3108 = vmatpush.bf16.msrb.mxu0 %v5364_v32  ;;  %v2173_v39 = vpop.f32.mrf.mxu0 }
 0x1c2   : > { %3121 = vmatpush.bf16.msrb.mxu1 %v5368_v42  ;;  %3134 = vmatpush.bf16.msrb.mxu2 %v5372_v19  ;;  %v3590_v59 = vrot.slane %v2173_v39, 5  ;;  %v2186_v24 = vpop.f32.mrf.mxu1  ;;  %v6104_v19 = vld [vmem:[%s6921_s23 + $0xb14] sm:$0xf]  ;;  %v931_v39 = vunpack.i.h.s16 %v7739_v46  ;;  %v6133_v46 = vld [vmem:[%s6921_s23 + $0xbf4] sm:$0xf0] }
 0x1c3   : > { %3147 = vmatpush.bf16.msrb.mxu3 %v5376_v30  ;;  %v3604_v27 = vrot.slane %v2186_v24, 5  ;;  %v5628_v30 = vor.u32 %v6107_v40, %v5627_v37  ;;  %v5557_v24 = vld [vmem:[%s6921_s23 + $0xa98] sm:$0xf0]  ;;  %v5556_v37 = vor.u32 %v6089_v23, %v5555_v22  ;;  %v6130_v40 = vld [vmem:[%s6921_s23 + $0xbe4] sm:$0xf] }
 0x1c4   : > { %3109 = vmatmul.bf16.vlgmr.msrb.gmra.mxu0 %v7761_v53  ;;  %v7792_v32 = vsel %vm920_vm4, %v3590_v59, %v7636_v4  ;;  %v5456_v4 = vor.u32 %v6058_v31, %v5453_v34  ;;  %v6086_v59 = vld [vmem:[%s6921_s23 + $0xa84] sm:$0xf]  ;;  %v5733_v31 = vld [vmem:[%s6921_s23 + $0xbf0] sm:$0xf0]  ;;  %v5384_v34 = vor.u32 %v6040_v1, %v5381_v55  ;;  %v5669_v22 = vld [vmem:[%s6921_s23 + $0xb68] sm:$0xf0] }
 0x1c5   : > { %3153 = vmatpush.bf16.msra.mxu0 %v5548_v48  ;;  %3122 = vmatmul.bf16.vlgmr.msrb.gmra.mxu1 %v7761_v53  ;;  %v7799_v42 = vsel %vm920_vm4, %v3604_v27, %v7643_v12  ;;  %v5427_v48 = vld [vmem:[%s6921_s23 + $0x970] sm:$0xf]  ;;  %v5429_v12 = vld [vmem:[%s6921_s23 + $0x988] sm:$0xf0]  ;;  %v6112_v55 = vld [vmem:[%s6921_s23 + $0xb54] sm:$0xf] }
 0x1c6   : > { %3166 = vmatpush.bf16.msra.mxu1 %v5552_v60  ;;  %3422 = vmatpush.bf16.msra.mxu2 %v5724_v49  ;;  %v6052_v60 = vld [vmem:[%s6921_s23 + $0x974] sm:$0xf]  ;;  %v5632_v49 = vor.u32 %v6104_v19, %v5629_v45  ;;  %v6132_v27 = vld [vmem:[%s6921_s23 + $0xbec] sm:$0xf0]  ;;  %v5741_v19 = vld [vmem:[%s6921_s23 + $0xbf8] sm:$0xf0]  ;;  %v3179_v45 = vpack.i.b16 %v931_v39, %v931_v39 }
 0x1c7   : > { %3435 = vmatpush.bf16.msra.mxu3 %v5728_v10  ;;  %3135 = vmatmul.bf16.vlgmr.msrb.gmra.mxu2 %v7761_v53  ;;  %v5432_v63 = vor.u32 %v6052_v60, %v5429_v12  ;;  %v6126_v60 = vld [vmem:[%s6921_s23 + $0xbbc] sm:$0xf0]  ;;  %v5709_v12 = vld [vmem:[%s6921_s23 + $0xbc0] sm:$0xf0] }
 0x1c8   : > { %3148 = vmatmul.bf16.vlgmr.msrb.gmra.mxu3 %v7761_v53 }
 0x1c9   : > { %3154 = vmatpush.bf16.msra.mxu0 %v5524_v56  ;;  %v2175_v18 = vpop.f32.mrf.mxu0 }
 0x1ca   : > { %3167 = vmatpush.bf16.msra.mxu1 %v5528_v58  ;;  %3423 = vmatpush.bf16.msra.mxu2 %v5700_v61  ;;  %v2199_v50 = vpop.f32.mrf.mxu2  ;;  %v5428_v58 = vor.u32 %v6055_v3, %v5427_v48  ;;  %v2188_v61 = vpop.f32.mrf.mxu1  ;;  %v5707_v3 = vld [vmem:[%s6921_s23 + $0xba8] sm:$0xf] }
 0x1cb   : > { %3436 = vmatpush.bf16.msra.mxu3 %v5704_v6  ;;  %v3618_v10 = vrot.slane %v2199_v50, 5  ;;  %v2212_v35 = vpop.f32.mrf.mxu3  ;;  %v5403_v6 = vld [vmem:[%s6921_s23 + $0x940] sm:$0xf]  ;;  %v5744_v50 = vor.u32 %v6130_v40, %v5741_v19  ;;  %v5708_v54 = vor.u32 %v6126_v60, %v5707_v3  ;;  %v6120_v61 = vld [vmem:[%s6921_s23 + $0xb8c] sm:$0xf0] }
 0x1cc   : > { %v3632_v56 = vrot.slane %v2212_v35, 5  ;;  %v5404_v38 = vor.u32 %v6049_v5, %v5403_v6  ;;  %v6124_v35 = vld [vmem:[%s6921_s23 + $0xbb4] sm:$0xf]  ;;  %v5691_v5 = vld [vmem:[%s6921_s23 + $0xb80] sm:$0xf] }
 0x1cd   : > { %3155 = vmatpush.bf16.msra.mxu0 %v5500_v41  ;;  %v7813_v62 = vsel %vm920_vm4, %v3618_v10, %v7699_v36  ;;  %v5579_v41 = vld [vmem:[%s6921_s23 + $0xab0] sm:$0xf]  ;;  %v6095_v36 = vld [vmem:[%s6921_s23 + $0xac4] sm:$0xf0]  ;;  %v7850_v10 = vperm.slane %v3179_v45, 0 }
 0x1ce   : > { %3168 = vmatpush.bf16.msra.mxu1 %v5504_v14  ;;  %3424 = vmatpush.bf16.msra.mxu2 %v5676_v15  ;;  %v7820_v9 = vsel %vm920_vm4, %v3632_v56, %v7706_v43  ;;  %v6092_v14 = vld [vmem:[%s6921_s23 + $0xab4] sm:$0xf]  ;;  %v5581_v15 = vld [vmem:[%s6921_s23 + $0xac8] sm:$0xf0]  ;;  %v5408_v43 = vor.u32 %v6046_v8, %v5405_v29  ;;  %v5716_v56 = vor.u32 %v6127_v52, %v5715_v51  ;;  %v6121_v8 = vld [vmem:[%s6921_s23 + $0xb94] sm:$0xf0] }
 0x1cf   : > { %3437 = vmatpush.bf16.msra.mxu3 %v5680_v57  ;;  %v5580_v57 = vor.u32 %v6095_v36, %v5579_v41  ;;  %v5584_v44 = vor.u32 %v6092_v14, %v5581_v15  ;;  %v5685_v6 = vld [vmem:[%s6921_s23 + $0xb90] sm:$0xf0]  ;;  %v5693_v29 = vld [vmem:[%s6921_s23 + $0xb98] sm:$0xf0]  ;;  %v5692_v14 = vor.u32 %v6121_v8, %v5691_v5  ;;  %v5659_v15 = vld [vmem:[%s6921_s23 + $0xb48] sm:$0xf] }
 0x1d0   : > { %v5645_v40 = vld [vmem:[%s6921_s23 + $0xb38] sm:$0xf0]  ;;  %v5619_v60 = vld [vmem:[%s6921_s23 + $0xaf0] sm:$0xf]  ;;  %v6100_v51 = vld [vmem:[%s6921_s23 + $0xaf4] sm:$0xf] }
 0x1d1   : > { %3156 = vmatpush.bf16.msra.mxu0 %v5476_v25  ;;  %v5621_v52 = vld [vmem:[%s6921_s23 + $0xb08] sm:$0xf0] }
 0x1d2   : > { %3169 = vmatpush.bf16.msra.mxu1 %v5480_v17  ;;  %3425 = vmatpush.bf16.msra.mxu2 %v5652_v21  ;;  %v2201_v25 = vpop.f32.mrf.mxu2  ;;  %v6129_v17 = vld [vmem:[%s6921_s23 + $0xbdc] sm:$0xf]  ;;  %v5624_v8 = vor.u32 %v6100_v51, %v5621_v52 }
 0x1d3   : > { %3438 = vmatpush.bf16.msra.mxu3 %v5656_v33  ;;  %v2214_v21 = vpop.f32.mrf.mxu3  ;;  %v5739_v33 = vld [vmem:[%s6921_s23 + $0xbe0] sm:$0xf] }
 0x1d4   : > { %v5740_v48 = vor.u32 %v6133_v46, %v5739_v33  ;;  %v5643_v33 = vld [vmem:[%s6921_s23 + $0xb20] sm:$0xf]  ;;  %v6109_v46 = vld [vmem:[%s6921_s23 + $0xb34] sm:$0xf0] }
 0x1d5   : > { %3157 = vmatpush.bf16.msra.mxu0 %v5452_v47  ;;  %v5560_v47 = vor.u32 %v6086_v59, %v5557_v24  ;;  %v5635_v59 = vld [vmem:[%s6921_s23 + $0xb18] sm:$0xf]  ;;  %v5644_v45 = vor.u32 %v6109_v46, %v5643_v33 }
 0x1d6   : > { %3170 = vmatpush.bf16.msra.mxu1 %v5456_v4  ;;  %3426 = vmatpush.bf16.msra.mxu2 %v5628_v30  ;;  %v5732_v4 = vor.u32 %v6132_v27, %v5731_v26  ;;  %v5736_v30 = vor.u32 %v6129_v17, %v5733_v31  ;;  %v6108_v27 = vld [vmem:[%s6921_s23 + $0xb2c] sm:$0xf0]  ;;  %v6105_v17 = vld [vmem:[%s6921_s23 + $0xb1c] sm:$0xf]  ;;  %v5637_v31 = vld [vmem:[%s6921_s23 + $0xb30] sm:$0xf0] }
 0x1d7   : > { %3439 = vmatpush.bf16.msra.mxu3 %v5632_v49  ;;  %v6123_v49 = vld [vmem:[%s6921_s23 + $0xbac] sm:$0xf]  ;;  %v5636_v19 = vor.u32 %v6108_v27, %v5635_v59 }
 0x1d8   : > { %v5712_v18 = vor.u32 %v6123_v49, %v5709_v12  ;;  %v6103_v49 = vld [vmem:[%s6921_s23 + $0xb04] sm:$0xf0] }
 0x1d9   : > { %3158 = vmatpush.bf16.msra.mxu0 %v5428_v58  ;;  %v5683_v58 = vld [vmem:[%s6921_s23 + $0xb78] sm:$0xf] }
 0x1da   : > { %3171 = vmatpush.bf16.msra.mxu1 %v5432_v63  ;;  %3427 = vmatpush.bf16.msra.mxu2 %v5604_v0  ;;  %v6117_v63 = vld [vmem:[%s6921_s23 + $0xb7c] sm:$0xf]  ;;  %v5720_v0 = vor.u32 %v6124_v35, %v5717_v7  ;;  %v5684_v41 = vor.u32 %v6120_v61, %v5683_v58  ;;  %v5620_v61 = vor.u32 %v6103_v49, %v5619_v60 }
 0x1db   : > { %3440 = vmatpush.bf16.msra.mxu3 %v5608_v13  ;;  %v6118_v13 = vld [vmem:[%s6921_s23 + $0xb84] sm:$0xf]  ;;  %v5688_v36 = vor.u32 %v6117_v63, %v5685_v6  ;;  %v5587_v63 = vld [vmem:[%s6921_s23 + $0xab8] sm:$0xf]  ;;  %v6093_v6 = vld [vmem:[%s6921_s23 + $0xabc] sm:$0xf] }
 0x1dc   : > { %v5696_v16 = vor.u32 %v6118_v13, %v5693_v29  ;;  %v5589_v13 = vld [vmem:[%s6921_s23 + $0xad0] sm:$0xf0]  ;;  %v5595_v29 = vld [vmem:[%s6921_s23 + $0xac0] sm:$0xf] }
 0x1dd   : > { %3159 = vmatpush.bf16.msra.mxu0 %v5404_v38  ;;  %v6111_v38 = vld [vmem:[%s6921_s23 + $0xb4c] sm:$0xf] }
 0x1de   : > { %3172 = vmatpush.bf16.msra.mxu1 %v5408_v43  ;;  %3428 = vmatpush.bf16.msra.mxu2 %v5580_v57  ;;  %v5667_v43 = vld [vmem:[%s6921_s23 + $0xb50] sm:$0xf]  ;;  %v6115_v57 = vld [vmem:[%s6921_s23 + $0xb64] sm:$0xf0]  ;;  %v5664_v25 = vor.u32 %v6111_v38, %v5661_v20 }
 0x1df   : > { %3441 = vmatpush.bf16.msra.mxu3 %v5584_v44  ;;  %v5668_v26 = vor.u32 %v6115_v57, %v5667_v43  ;;  %v5563_v38 = vld [vmem:[%s6921_s23 + $0xa88] sm:$0xf]  ;;  %v5565_v43 = vld [vmem:[%s6921_s23 + $0xaa0] sm:$0xf0]  ;;  %v5571_v57 = vld [vmem:[%s6921_s23 + $0xa90] sm:$0xf] }
 0x1e1   : > { %3160 = vmatpush.bf16.msra.mxu0 %v5380_v28  ;;  %v2468_v1 = vpop.f32.mrf.mxu0  ;;  %v5672_v28 = vor.u32 %v6112_v55, %v5669_v22  ;;  %v6088_v22 = vld [vmem:[%s6921_s23 + $0xa94] sm:$0xf] }
 0x1e2   : > { %3173 = vmatpush.bf16.msra.mxu1 %v5384_v34  ;;  %3429 = vmatpush.bf16.msra.mxu2 %v5556_v37  ;;  %v3560_v39 = vrot.slane %v2468_v1, 4  ;;  %v2481_v44 = vpop.f32.mrf.mxu1  ;;  %v6106_v37 = vld [vmem:[%s6921_s23 + $0xb24] sm:$0xf]  ;;  %v6091_v1 = vld [vmem:[%s6921_s23 + $0xaa4] sm:$0xf0] }
 0x1e3   : > { %3442 = vmatpush.bf16.msra.mxu3 %v5560_v47  ;;  %v3578_v24 = vrot.slane %v2481_v44, 4  ;;  %v5611_v47 = vld [vmem:[%s6921_s23 + $0xae8] sm:$0xf] }
 0x1e4   : > { %3161 = vmatmul.bf16.vlgmr.msra.gmra.mxu0 %v7761_v53  ;;  %v7879_v21 = vsel %vm3561_vm5, %v3560_v39, %v7720_v2  ;;  %v5640_v2 = vor.u32 %v6105_v17, %v5637_v31  ;;  %v5573_v39 = vld [vmem:[%s6921_s23 + $0xaa8] sm:$0xf0] }
 0x1e5   : > { %3448 = vmatpush.bf16.msrb.mxu0 %v5732_v4  ;;  %3174 = vmatmul.bf16.vlgmr.msra.gmra.mxu1 %v7761_v53  ;;  %v6114_v53 = vld [vmem:[%s6921_s23 + $0xb5c] sm:$0xf0]  ;;  %v7886_v34 = vsel %vm3561_vm5, %v3578_v24, %v7730_v11  ;;  %v5613_v11 = vld [vmem:[%s6921_s23 + $0xb00] sm:$0xf0]  ;;  %v5572_v24 = vor.u32 %v6091_v1, %v5571_v57  ;;  %v3660_v1 = vld [vmem:[#allocation3] sm:$0xff] }
 0x1e6   : > { %3461 = vmatpush.bf16.msrb.mxu1 %v5736_v30  ;;  %3474 = vmatpush.bf16.msrb.mxu2 %v5740_v48  ;;  %v5660_v23 = vor.u32 %v6114_v53, %v5659_v15  ;;  %v6102_v4 = vld [vmem:[%s6921_s23 + $0xafc] sm:$0xf0]  ;;  %v6099_v30 = vld [vmem:[%s6921_s23 + $0xaec] sm:$0xf]  ;;  %v5648_v48 = vor.u32 %v6106_v37, %v5645_v40  ;;  %v5592_v15 = vor.u32 %v6093_v6, %v5589_v13 }
 0x1e7   : > { %3487 = vmatpush.bf16.msrb.mxu3 %v5744_v50  ;;  %3430 = vmatmul.bf16.vlgmr.msra.gmra.mxu2 %v7850_v10  ;;  %v5616_v58 = vor.u32 %v6099_v30, %v5613_v11 }
 0x1e8   : > { %3443 = vmatmul.bf16.vlgmr.msra.gmra.mxu3 %v7850_v10 }
 0x1e9   : > { %3449 = vmatpush.bf16.msrb.mxu0 %v5708_v54  ;;  %v2470_v35 = vpop.f32.mrf.mxu0  ;;  %v5612_v54 = vor.u32 %v6102_v4, %v5611_v47 }
 0x1ea   : > { %3462 = vmatpush.bf16.msrb.mxu1 %v5712_v18  ;;  %3475 = vmatpush.bf16.msrb.mxu2 %v5716_v56  ;;  %v2494_v3 = vpop.f32.mrf.mxu2  ;;  %v2483_v18 = vpop.f32.mrf.mxu1 }
 0x1eb   : > { %3488 = vmatpush.bf16.msrb.mxu3 %v5720_v0  ;;  %v3592_v50 = vrot.slane %v2494_v3, 4  ;;  %v2507_v12 = vpop.f32.mrf.mxu3  ;;  %v6096_v0 = vld [vmem:[%s6921_s23 + $0xacc] sm:$0xf0] }
 0x1ec   : > { %v3606_v7 = vrot.slane %v2507_v12, 4 }
 0x1ed   : > { %3450 = vmatpush.bf16.msrb.mxu0 %v5684_v41  ;;  %v7900_v56 = vsel %vm3561_vm5, %v3592_v50, %v7792_v32  ;;  %v6097_v32 = vld [vmem:[%s6921_s23 + $0xad4] sm:$0xf0]  ;;  %v6094_v41 = vld [vmem:[%s6921_s23 + $0xac4] sm:$0xf] }
 0x1ee   : > { %3463 = vmatpush.bf16.msrb.mxu1 %v5688_v36  ;;  %3476 = vmatpush.bf16.msrb.mxu2 %v5692_v14  ;;  %v7907_v5 = vsel %vm3561_vm5, %v3606_v7, %v7799_v42  ;;  %v5597_v36 = vld [vmem:[%s6921_s23 + $0xad8] sm:$0xf0]  ;;  %v5588_v14 = vor.u32 %v6096_v0, %v5587_v63  ;;  %v5596_v53 = vor.u32 %v6097_v32, %v5595_v29  ;;  %v6090_v42 = vld [vmem:[%s6921_s23 + $0xa9c] sm:$0xf0] }
 0x1ef   : > { %3489 = vmatpush.bf16.msrb.mxu3 %v5696_v16  ;;  %v6087_v16 = vld [vmem:[%s6921_s23 + $0xa8c] sm:$0xf]  ;;  %v5600_v20 = vor.u32 %v6094_v41, %v5597_v36  ;;  %v3500_v36 = vld [vmem:[#allocation2 + $0x28] sm:$0xff] }
 0x1f0   : > { %v5568_v59 = vor.u32 %v6087_v16, %v5565_v43 }
 0x1f1   : > { %3451 = vmatpush.bf16.msrb.mxu0 %v5660_v23  ;;  %v5564_v23 = vor.u32 %v6090_v42, %v5563_v38  ;;  %v3501_v42 = vld [vmem:[#allocation2 + $0x10] sm:$0xff] }
 0x1f2   : > { %3464 = vmatpush.bf16.msrb.mxu1 %v5664_v25  ;;  %3477 = vmatpush.bf16.msrb.mxu2 %v5668_v26  ;;  %v2496_v55 = vpop.f32.mrf.mxu2  ;;  %v5576_v25 = vor.u32 %v6088_v22, %v5573_v39 }
 0x1f3   : > { %3490 = vmatpush.bf16.msrb.mxu3 %v5672_v28  ;;  %v2509_v44 = vpop.f32.mrf.mxu3  ;;  %v3662_v55 = vpop.xlane.xlu0 %3661 }
 0x1f4   : > { %v3663_v44 = vadd.f32 %v3662_v55, %v3660_v1 }
 0x1f5   : > { %3452 = vmatpush.bf16.msrb.mxu0 %v5636_v19 }
 0x1f6   : > { %3465 = vmatpush.bf16.msrb.mxu1 %v5640_v2  ;;  %3478 = vmatpush.bf16.msrb.mxu2 %v5644_v45  ;;  %3665 = vst.msk [vmem:[#allocation3] sm:$0xff] %vm3664_vm9, %v3663_v44 }
 0x1f7   : > { %3491 = vmatpush.bf16.msrb.mxu3 %v5648_v48 }
 0x1f9   : > { %3453 = vmatpush.bf16.msrb.mxu0 %v5612_v54 }
 0x1fa   : > { %3466 = vmatpush.bf16.msrb.mxu1 %v5616_v58  ;;  %3479 = vmatpush.bf16.msrb.mxu2 %v5620_v61 }
 0x1fb   : > { %3492 = vmatpush.bf16.msrb.mxu3 %v5624_v8 }
 0x1fd   : > { %3454 = vmatpush.bf16.msrb.mxu0 %v5588_v14 }
 0x1fe   : > { %3467 = vmatpush.bf16.msrb.mxu1 %v5592_v15  ;;  %3480 = vmatpush.bf16.msrb.mxu2 %v5596_v53 }
 0x1ff   : > { %3493 = vmatpush.bf16.msrb.mxu3 %v5600_v20 }
 0x201   : > { %3455 = vmatpush.bf16.msrb.mxu0 %v5564_v23  ;;  %v2520_v26 = vpop.f32.mrf.mxu0 }
 0x202   : > { %3468 = vmatpush.bf16.msrb.mxu1 %v5568_v59  ;;  %3481 = vmatpush.bf16.msrb.mxu2 %v5572_v24  ;;  %v3620_v27 = vrot.slane %v2520_v26, 4  ;;  %v2533_v17 = vpop.f32.mrf.mxu1 }
 0x203   : > { %3494 = vmatpush.bf16.msrb.mxu3 %v5576_v25  ;;  %v3634_v28 = vrot.slane %v2533_v17, 4  ;;  %v3502_v17 = vld [vmem:[#allocation2 + $0x8] sm:$0xff] }
 0x204   : > { %3456 = vmatmul.bf16.vlgmr.msrb.gmra.mxu0 %v7850_v10  ;;  %v3621_v31 = vsel %vm3561_vm5, %v3620_v27, %v7813_v62 }
 0x205   : > { %3469 = vmatmul.bf16.vlgmr.msrb.gmra.mxu1 %v7850_v10  ;;  %3482 = vmatmul.bf16.vlgmr.msrb.gmra.mxu2 %v7850_v10  ;;  %v3635_v33 = vsel %vm3561_vm5, %v3634_v28, %v7820_v9 }
 0x206   : > { %3495 = vmatmul.bf16.vlgmr.msrb.gmra.mxu3 %v7850_v10 }
 0x209   : > { %v2522_v19 = vpop.f32.mrf.mxu0 }
 0x20a   : > { %v2789_v46 = vpop.f32.mrf.mxu2  ;;  %v2535_v45 = vpop.f32.mrf.mxu1 }
 0x20b   : > { %v3563_v37 = vrot.slane %v2789_v46, 3  ;;  %v2802_v40 = vpop.f32.mrf.mxu3  ;;  %v3503_v46 = vld [vmem:[#allocation2] sm:$0xff] }
 0x20c   : > { %v3580_v2 = vrot.slane %v2802_v40, 3 }
 0x20d   : > { %v3565_v10 = vsel %vm3564_vm6, %v3563_v37, %v7879_v21 }
 0x20e   : > { %v3581_v47 = vsel %vm3564_vm6, %v3580_v2, %v7886_v34 }
 0x212   : > { %v2791_v4 = vpop.f32.mrf.mxu2 }
 0x213   : > { %v2804_v30 = vpop.f32.mrf.mxu3 }
 0x221   : > { %v2815_v48 = vpop.f32.mrf.mxu0 }
 0x222   : > { %v3594_v62 = vrot.slane %v2815_v48, 3  ;;  %v2828_v3 = vpop.f32.mrf.mxu1  ;;  %v3504_v48 = vld [vmem:[#allocation2 + $0x18] sm:$0xff] }
 0x223   : > { %v3608_v11 = vrot.slane %v2828_v3, 3 }
 0x224   : > { %v3595_v9 = vsel %vm3564_vm6, %v3594_v62, %v7900_v56 }
 0x225   : > { %v3609_v60 = vsel %vm3564_vm6, %v3608_v11, %v7907_v5 }
 0x229   : > { %v2817_v51 = vpop.f32.mrf.mxu0 }
 0x22a   : > { %v2841_v49 = vpop.f32.mrf.mxu2  ;;  %v2830_v52 = vpop.f32.mrf.mxu1 }
 0x22b   : > { %v3622_v50 = vrot.slane %v2841_v49, 3  ;;  %v2854_v12 = vpop.f32.mrf.mxu3  ;;  %v3505_v49 = vld [vmem:[#allocation2 + $0x20] sm:$0xff] }
 0x22c   : > { %v3636_v21 = vrot.slane %v2854_v12, 3 }
 0x22d   : > { %v7939_v34 = vsel %vm3564_vm6, %v3622_v50, %v3621_v31 }
 0x22e   : > { %v7942_v35 = vsel %vm3564_vm6, %v3636_v21, %v3635_v33 }
 0x232   : > { %v2843_v7 = vpop.f32.mrf.mxu2 }
 0x233   : > { %v2856_v54 = vpop.f32.mrf.mxu3 }
 0x241   : > { %v3110_v18 = vpop.f32.mrf.mxu0 }
 0x242   : > { %v3123_v58 = vpop.f32.mrf.mxu1  ;;  %v3566_v29 = vrot.slane %v3110_v18, 2 }
 0x243   : > { %v3582_v32 = vrot.slane %v3123_v58, 2 }
 0x244   : > { %v3568_v38 = vsel %vm3567_vm7, %v3566_v29, %v3565_v10 }
 0x245   : > { %v3583_v43 = vsel %vm3567_vm7, %v3582_v32, %v3581_v47 }
 0x249   : > { %v3112_v63 = vpop.f32.mrf.mxu0 }
 0x24a   : > { %v3136_v56 = vpop.f32.mrf.mxu2  ;;  %v3125_v0 = vpop.f32.mrf.mxu1 }
 0x24b   : > { %v3149_v61 = vpop.f32.mrf.mxu3  ;;  %v3596_v25 = vrot.slane %v3136_v56, 2 }
 0x24c   : > { %v3610_v26 = vrot.slane %v3149_v61, 2 }
 0x24d   : > { %v3597_v33 = vsel %vm3567_vm7, %v3596_v25, %v3595_v9 }
 0x24e   : > { %v3611_v40 = vsel %vm3567_vm7, %v3610_v26, %v3609_v60 }
 0x252   : > { %v3138_v6 = vpop.f32.mrf.mxu2 }
 0x253   : > { %v3151_v5 = vpop.f32.mrf.mxu3 }
 0x261   : > { %v3162_v8 = vpop.f32.mrf.mxu0 }
 0x262   : > { %v3175_v13 = vpop.f32.mrf.mxu1  ;;  %v3624_v10 = vrot.slane %v3162_v8, 2 }
 0x263   : > { %v3638_v4 = vrot.slane %v3175_v13, 2 }
 0x264   : > { %v3625_v9 = vsel %vm3567_vm7, %v3624_v10, %v7939_v34 }
 0x265   : > { %v3639_v12 = vsel %vm3567_vm7, %v3638_v4, %v7942_v35 }
 0x269   : > { %v3164_v53 = vpop.f32.mrf.mxu0 }
 0x26a   : > { %v3431_v41 = vpop.f32.mrf.mxu2  ;;  %v3177_v20 = vpop.f32.mrf.mxu1 }
 0x26b   : > { %v3569_v14 = vrot.slane %v3431_v41, 1  ;;  %v3444_v15 = vpop.f32.mrf.mxu3 }
 0x26c   : > { %v3584_v16 = vrot.slane %v3444_v15, 1 }
 0x26d   : > { %v3571_v57 = vsel %vm3570_vm8, %v3569_v14, %v3568_v38 }
 0x26e   : > { %v3648_v22 = vadd.f32 %v3571_v57, %v3500_v36  ;;  %v3585_v39 = vsel %vm3570_vm8, %v3584_v16, %v3583_v43 }
 0x26f   : > { %v3649_v23 = vadd.f32 %v3585_v39, %v3501_v42 }
 0x270   : > { %3654 = vst [vmem:[#allocation2 + $0x28] sm:$0xff] %v3648_v22 }
 0x271   : > { %3655 = vst [vmem:[#allocation2 + $0x10] sm:$0xff] %v3649_v23 }
 0x272   : > { %v3433_v59 = vpop.f32.mrf.mxu2 }
 0x273   : > { %v3446_v24 = vpop.f32.mrf.mxu3 }
 0x281   : > { %v3457_v27 = vpop.f32.mrf.mxu0 }
 0x282   : > { %v3598_v28 = vrot.slane %v3457_v27, 1  ;;  %v3470_v31 = vpop.f32.mrf.mxu1 }
 0x283   : > { %v3612_v37 = vrot.slane %v3470_v31, 1 }
 0x284   : > { %v3599_v19 = vsel %vm3570_vm8, %v3598_v28, %v3597_v33 }
 0x285   : > { %v3650_v2 = vadd.f32 %v3599_v19, %v3502_v17  ;;  %v3613_v45 = vsel %vm3570_vm8, %v3612_v37, %v3611_v40 }
 0x286   : > { %v3651_v47 = vadd.f32 %v3613_v45, %v3503_v46 }
 0x287   : > { %3656 = vst [vmem:[#allocation2 + $0x8] sm:$0xff] %v3650_v2 }
 0x288   : > { %3657 = vst [vmem:[#allocation2] sm:$0xff] %v3651_v47  ;;  %v3483_v30 = vpop.f32.mrf.mxu2 }
 0x289   : > { %v3626_v62 = vrot.slane %v3483_v30, 1  ;;  %v3496_v3 = vpop.f32.mrf.mxu3  ;;  %v3459_v11 = vpop.f32.mrf.mxu0 }
 0x28a   : > { %v3640_v60 = vrot.slane %v3496_v3, 1  ;;  %v3472_v50 = vpop.f32.mrf.mxu1 }
 0x28b   : > { %v3627_v51 = vsel %vm3570_vm8, %v3626_v62, %v3625_v9 }
 0x28c   : > { %v3652_v21 = vadd.f32 %v3627_v51, %v3504_v48  ;;  %v3641_v52 = vsel %vm3570_vm8, %v3640_v60, %v3639_v12 }
 0x28d   : > { %v3653_v7 = vadd.f32 %v3641_v52, %v3505_v49  ;;  %3669 = sbr.rel (%p5745_p6) target bundleno = 1199 (0x4af), region = 92 }
 0x28e   : > { %3658 = vst [vmem:[#allocation2 + $0x18] sm:$0xff] %v3652_v21 }
 0x28f   : > { %3659 = vst [vmem:[#allocation2 + $0x20] sm:$0xff] %v3653_v7 }
 0x290   : > { %v3485_v54 = vpop.f32.mrf.mxu2 }
 0x291   : > { %v3498_v18 = vpop.f32.mrf.mxu3 }
 0x292   : > { %v3670_v34 = vld [vmem:[#allocation3] sm:$0xff]  ;;  %v3705_v58 = vld [vmem:[#allocation9 + $0x78] sm:$0xff]  ;;  %v6688_v61 = vmov 0   ;;  %v3704_v35 = vld [vmem:[#allocation9 + $0x70] sm:$0xff] }
 0x293   : > { %v3721_v56 = vld [vmem:[#allocation9 + $0xf8] sm:$0xff]  ;;  %6315 = vset.pattern.permute.xlu0 %v6688_v61  ;;  %v3671_v63 = vmax.f32 %v3670_v34, 1e-06  ;;  %3790 = vmatpush.msra.mxu0 %v3705_v58  ;;  %v3720_v0 = vld [vmem:[#allocation9 + $0xf0] sm:$0xff]  ;;  %v3703_v6 = vld [vmem:[#allocation9 + $0x68] sm:$0xff] }
 0x294   : > { %3810 = vmatpush.msra.mxu1 %v3721_v56  ;;  %v3719_v5 = vld [vmem:[#allocation9 + $0xe8] sm:$0xff]  ;;  %v3702_v8 = vld [vmem:[#allocation9 + $0x60] sm:$0xff]  ;;  %v3701_v29 = vld [vmem:[#allocation9 + $0x58] sm:$0xff] }
 0x295   : > { %6319 = vrcp.f32 %v3671_v63  ;;  %3791 = vmatpush.msra.mxu0 %v3704_v35  ;;  %v3718_v13 = vld [vmem:[#allocation9 + $0xe0] sm:$0xff]  ;;  %v3717_v32 = vld [vmem:[#allocation9 + $0xd8] sm:$0xff]  ;;  %v3700_v41 = vld [vmem:[#allocation9 + $0x50] sm:$0xff] }
 0x296   : > { %3811 = vmatpush.msra.mxu1 %v3720_v0  ;;  %v3737_v36 = vld [vmem:[#allocation9 + $0x178] sm:$0xff]  ;;  %v3716_v53 = vld [vmem:[#allocation9 + $0xd0] sm:$0xff]  ;;  %v3699_v42 = vld [vmem:[#allocation9 + $0x48] sm:$0xff] }
 0x297   : > { %3792 = vmatpush.msra.mxu0 %v3703_v6  ;;  %v3753_v14 = vld [vmem:[#allocation9 + $0x1f8] sm:$0xff]  ;;  %3830 = vmatpush.msra.mxu2 %v3737_v36  ;;  %v3736_v38 = vld [vmem:[#allocation9 + $0x170] sm:$0xff]  ;;  %v3715_v20 = vld [vmem:[#allocation9 + $0xc8] sm:$0xff] }
 0x298   : > { %3812 = vmatpush.msra.mxu1 %v3719_v5  ;;  %v3752_v16 = vld [vmem:[#allocation9 + $0x1f0] sm:$0xff]  ;;  %3850 = vmatpush.msra.mxu3 %v3753_v14  ;;  %v3735_v43 = vld [vmem:[#allocation9 + $0x168] sm:$0xff]  ;;  %v3698_v57 = vld [vmem:[#allocation9 + $0x40] sm:$0xff] }
 0x299   : > { %3793 = vmatpush.msra.mxu0 %v3702_v8  ;;  %3831 = vmatpush.msra.mxu2 %v3736_v38  ;;  %v3751_v1 = vld [vmem:[#allocation9 + $0x1e8] sm:$0xff]  ;;  %v3714_v55 = vld [vmem:[#allocation9 + $0xc0] sm:$0xff]  ;;  %v3697_v39 = vld [vmem:[#allocation9 + $0x38] sm:$0xff] }
 0x29a   : > { %3813 = vmatpush.msra.mxu1 %v3718_v13  ;;  %3851 = vmatpush.msra.mxu3 %v3752_v16  ;;  %v3734_v22 = vld [vmem:[#allocation9 + $0x160] sm:$0xff]  ;;  %v3713_v23 = vld [vmem:[#allocation9 + $0xb8] sm:$0xff]  ;;  %v3696_v24 = vld [vmem:[#allocation9 + $0x30] sm:$0xff] }
 0x29b   : > { %v6320_v15 = vpop.eup %6319  ;;  %3794 = vmatpush.msra.mxu0 %v3701_v29  ;;  %3832 = vmatpush.msra.mxu2 %v3735_v43  ;;  %v3750_v44 = vld [vmem:[#allocation9 + $0x1e0] sm:$0xff]  ;;  %v3733_v59 = vld [vmem:[#allocation9 + $0x158] sm:$0xff]  ;;  %v3712_v26 = vld [vmem:[#allocation9 + $0xb0] sm:$0xff] }
 0x29c   : > { %3681 = vperm.xlu0 %6315, %v6320_v15   ;;  %3814 = vmatpush.msra.mxu1 %v3717_v32  ;;  %v3749_v25 = vld [vmem:[#allocation9 + $0x1d8] sm:$0xff]  ;;  %v3732_v27 = vld [vmem:[#allocation9 + $0x150] sm:$0xff]  ;;  %v3695_v17 = vld [vmem:[#allocation9 + $0x28] sm:$0xff] }
 0x29d   : > { %3795 = vmatpush.msra.mxu0 %v3700_v41  ;;  %3852 = vmatpush.msra.mxu3 %v3751_v1  ;;  %v3748_v28 = vld [vmem:[#allocation9 + $0x1d0] sm:$0xff]  ;;  %v3711_v31 = vld [vmem:[#allocation9 + $0xa8] sm:$0xff]  ;;  %v3694_v46 = vld [vmem:[#allocation9 + $0x20] sm:$0xff] }
 0x29e   : > { %3815 = vmatpush.msra.mxu1 %v3716_v53  ;;  %3833 = vmatpush.msra.mxu2 %v3734_v22  ;;  %v3731_v33 = vld [vmem:[#allocation9 + $0x148] sm:$0xff]  ;;  %v3710_v40 = vld [vmem:[#allocation9 + $0xa0] sm:$0xff]  ;;  %v3693_v2 = vld [vmem:[#allocation9 + $0x18] sm:$0xff] }
 0x29f   : > { %3796 = vmatpush.msra.mxu0 %v3699_v42  ;;  %3853 = vmatpush.msra.mxu3 %v3750_v44  ;;  %v3747_v37 = vld [vmem:[#allocation9 + $0x1c8] sm:$0xff]  ;;  %v3730_v19 = vld [vmem:[#allocation9 + $0x140] sm:$0xff]  ;;  %v3709_v10 = vld [vmem:[#allocation9 + $0x98] sm:$0xff] }
 0x2a0   : > { %3816 = vmatpush.msra.mxu1 %v3715_v20  ;;  %3834 = vmatpush.msra.mxu2 %v3733_v59  ;;  %v3746_v45 = vld [vmem:[#allocation9 + $0x1c0] sm:$0xff]  ;;  %v3729_v47 = vld [vmem:[#allocation9 + $0x138] sm:$0xff]  ;;  %v3692_v4 = vld [vmem:[#allocation9 + $0x10] sm:$0xff] }
 0x2a1   : > { %3797 = vmatpush.msra.mxu0 %v3698_v57  ;;  %3854 = vmatpush.msra.mxu3 %v3749_v25  ;;  %v3745_v30 = vld [vmem:[#allocation9 + $0x1b8] sm:$0xff]  ;;  %v3708_v48 = vld [vmem:[#allocation9 + $0x90] sm:$0xff]  ;;  %v3691_v3 = vld [vmem:[#allocation9 + $0x8] sm:$0xff] }
 0x2a2   : > { %3817 = vmatpush.msra.mxu1 %v3714_v55  ;;  %3835 = vmatpush.msra.mxu2 %v3732_v27  ;;  %v3728_v62 = vld [vmem:[#allocation9 + $0x130] sm:$0xff]  ;;  %v3707_v9 = vld [vmem:[#allocation9 + $0x88] sm:$0xff]  ;;  %v3690_v49 = vld [vmem:[#allocation9] sm:$0xff] }
 0x2a3   : > { %3798 = vmatpush.msra.mxu0 %v3697_v39  ;;  %3855 = vmatpush.msra.mxu3 %v3748_v28  ;;  %v3744_v11 = vld [vmem:[#allocation9 + $0x1b0] sm:$0xff]  ;;  %v3727_v60 = vld [vmem:[#allocation9 + $0x128] sm:$0xff]  ;;  %v3706_v12 = vld [vmem:[#allocation9 + $0x80] sm:$0xff] }
 0x2a4   : > { %3818 = vmatpush.msra.mxu1 %v3713_v23  ;;  %3836 = vmatpush.msra.mxu2 %v3731_v33  ;;  %v3743_v50 = vld [vmem:[#allocation9 + $0x1a8] sm:$0xff]  ;;  %v3769_v51 = vld [vmem:[#allocation9 + $0x278] sm:$0xff]  ;;  %v3726_v52 = vld [vmem:[#allocation9 + $0x120] sm:$0xff] }
 0x2a5   : > { %3799 = vmatpush.msra.mxu0 %v3696_v24  ;;  %3856 = vmatpush.msra.mxu3 %v3747_v37  ;;  %v3785_v21 = vld [vmem:[#allocation9 + $0x2f8] sm:$0xff]  ;;  %v3768_v7 = vld [vmem:[#allocation9 + $0x270] sm:$0xff]  ;;  %v3742_v54 = vld [vmem:[#allocation9 + $0x1a0] sm:$0xff] }
 0x2a6   : > { %3819 = vmatpush.msra.mxu1 %v3712_v26  ;;  %3837 = vmatpush.msra.mxu2 %v3730_v19  ;;  %v3784_v18 = vld [vmem:[#allocation9 + $0x2f0] sm:$0xff]  ;;  %v3725_v34 = vld [vmem:[#allocation9 + $0x118] sm:$0xff]  ;;  %v3767_v58 = vld [vmem:[#allocation9 + $0x268] sm:$0xff] }
 0x2a7   : > { %3800 = vmatpush.msra.mxu0 %v3695_v17  ;;  %3857 = vmatpush.msra.mxu3 %v3746_v45  ;;  %v3741_v56 = vld [vmem:[#allocation9 + $0x198] sm:$0xff]  ;;  %v3783_v61 = vld [vmem:[#allocation9 + $0x2e8] sm:$0xff]  ;;  %v3724_v63 = vld [vmem:[#allocation9 + $0x110] sm:$0xff] }
 0x2a8   : > { %3820 = vmatpush.msra.mxu1 %v3711_v31  ;;  %3838 = vmatpush.msra.mxu2 %v3729_v47  ;;  %v3766_v35 = vld [vmem:[#allocation9 + $0x260] sm:$0xff]  ;;  %v3740_v0 = vld [vmem:[#allocation9 + $0x190] sm:$0xff]  ;;  %v3723_v5 = vld [vmem:[#allocation9 + $0x108] sm:$0xff] }
 0x2a9   : > { %3801 = vmatpush.msra.mxu0 %v3694_v46  ;;  %3858 = vmatpush.msra.mxu3 %v3745_v30  ;;  %v3782_v6 = vld [vmem:[#allocation9 + $0x2e0] sm:$0xff]  ;;  %v3765_v8 = vld [vmem:[#allocation9 + $0x258] sm:$0xff]  ;;  %v3739_v13 = vld [vmem:[#allocation9 + $0x188] sm:$0xff] }
 0x2aa   : > { %3821 = vmatpush.msra.mxu1 %v3710_v40  ;;  %3839 = vmatpush.msra.mxu2 %v3728_v62  ;;  %v3781_v29 = vld [vmem:[#allocation9 + $0x2d8] sm:$0xff]  ;;  %v3764_v32 = vld [vmem:[#allocation9 + $0x250] sm:$0xff]  ;;  %v3763_v36 = vld [vmem:[#allocation9 + $0x248] sm:$0xff] }
 0x2ab   : > { %3802 = vmatpush.msra.mxu0 %v3693_v2  ;;  %3859 = vmatpush.msra.mxu3 %v3744_v11  ;;  %v3780_v41 = vld [vmem:[#allocation9 + $0x2d0] sm:$0xff]  ;;  %v3779_v14 = vld [vmem:[#allocation9 + $0x2c8] sm:$0xff]  ;;  %v3762_v15 = vld [vmem:[#allocation9 + $0x240] sm:$0xff] }
 0x2ac   : > { %3822 = vmatpush.msra.mxu1 %v3709_v10  ;;  %3840 = vmatpush.msra.mxu2 %v3727_v60  ;;  %v3778_v53 = vld [vmem:[#allocation9 + $0x2c0] sm:$0xff]  ;;  %v3761_v38 = vld [vmem:[#allocation9 + $0x238] sm:$0xff]  ;;  %v3760_v16 = vld [vmem:[#allocation9 + $0x230] sm:$0xff] }
 0x2ad   : > { %3803 = vmatpush.msra.mxu0 %v3692_v4  ;;  %3860 = vmatpush.msra.mxu3 %v3743_v50  ;;  %v3777_v42 = vld [vmem:[#allocation9 + $0x2b8] sm:$0xff]  ;;  %v3776_v20 = vld [vmem:[#allocation9 + $0x2b0] sm:$0xff]  ;;  %v3759_v43 = vld [vmem:[#allocation9 + $0x228] sm:$0xff] }
 0x2ae   : > { %3823 = vmatpush.msra.mxu1 %v3708_v48  ;;  %3841 = vmatpush.msra.mxu2 %v3726_v52  ;;  %v3775_v57 = vld [vmem:[#allocation9 + $0x2a8] sm:$0xff]  ;;  %v3722_v1 = vld [vmem:[#allocation9 + $0x100] sm:$0xff]  ;;  %v3757_v44 = vld [vmem:[#allocation9 + $0x218] sm:$0xff] }
 0x2af   : > { %3804 = vmatpush.msra.mxu0 %v3691_v3  ;;  %3861 = vmatpush.msra.mxu3 %v3742_v54  ;;  %v3738_v55 = vld [vmem:[#allocation9 + $0x180] sm:$0xff]  ;;  %v3773_v23 = vld [vmem:[#allocation9 + $0x298] sm:$0xff]  ;;  %v3756_v59 = vld [vmem:[#allocation9 + $0x210] sm:$0xff] }
 0x2b0   : > { %3824 = vmatpush.msra.mxu1 %v3707_v9  ;;  %3842 = vmatpush.msra.mxu2 %v3725_v34  ;;  %v3758_v22 = vld [vmem:[#allocation9 + $0x220] sm:$0xff]  ;;  %v3772_v24 = vld [vmem:[#allocation9 + $0x290] sm:$0xff]  ;;  %v3755_v25 = vld [vmem:[#allocation9 + $0x208] sm:$0xff] }
 0x2b1   : > { %3805 = vmatpush.msra.mxu0 %v3690_v49  ;;  %3862 = vmatpush.msra.mxu3 %v3741_v56  ;;  %v3774_v39 = vld [vmem:[#allocation9 + $0x2a0] sm:$0xff]  ;;  %v3771_v26 = vld [vmem:[#allocation9 + $0x288] sm:$0xff]  ;;  %v3925_v31 = vld [vmem:[#allocation12 + $0x70] sm:$0xff] }
 0x2b2   : > { %3825 = vmatpush.msra.mxu1 %v3706_v12  ;;  %3843 = vmatpush.msra.mxu2 %v3724_v63  ;;  %v3754_v27 = vld [vmem:[#allocation9 + $0x200] sm:$0xff]  ;;  %v3924_v33 = vld [vmem:[#allocation12 + $0x68] sm:$0xff]  ;;  %v3921_v40 = vld [vmem:[#allocation12 + $0x50] sm:$0xff] }
 0x2b3   : > { %3870 = vmatpush.msrb.mxu0 %v3769_v51  ;;  %3863 = vmatpush.msra.mxu3 %v3740_v0  ;;  %v3770_v17 = vld [vmem:[#allocation9 + $0x280] sm:$0xff]  ;;  %v3920_v19 = vld [vmem:[#allocation12 + $0x48] sm:$0xff]  ;;  %v3675_v47 = vld [vmem:[#allocation2] sm:$0xff] }
 0x2b4   : > { %3890 = vmatpush.msrb.mxu1 %v3785_v21  ;;  %3844 = vmatpush.msra.mxu2 %v3723_v5  ;;  %v3926_v28 = vld [vmem:[#allocation12 + $0x78] sm:$0xff]  ;;  %v3923_v46 = vld [vmem:[#allocation12 + $0x60] sm:$0xff]  ;;  %v3676_v11 = vld [vmem:[#allocation2 + $0x18] sm:$0xff] }
 0x2b5   : > { %3871 = vmatpush.msrb.mxu0 %v3768_v7  ;;  %3864 = vmatpush.msra.mxu3 %v3739_v13  ;;  %v3922_v37 = vld [vmem:[#allocation12 + $0x58] sm:$0xff]  ;;  %v3673_v45 = vld [vmem:[#allocation2 + $0x10] sm:$0xff]  ;;  %v3917_v51 = vld [vmem:[#allocation12 + $0x30] sm:$0xff] }
 0x2b6   : > { %3891 = vmatpush.msrb.mxu1 %v3784_v18  ;;  %3845 = vmatpush.msra.mxu2 %v3722_v1  ;;  %v3672_v2 = vld [vmem:[#allocation2 + $0x28] sm:$0xff]  ;;  %v3677_v9 = vld [vmem:[#allocation2 + $0x20] sm:$0xff]  ;;  %v3916_v21 = vld [vmem:[#allocation12 + $0x28] sm:$0xff] }
 0x2b7   : > { %3872 = vmatpush.msrb.mxu0 %v3767_v58  ;;  %3865 = vmatpush.msra.mxu3 %v3738_v55  ;;  %v3674_v10 = vld [vmem:[#allocation2 + $0x8] sm:$0xff]  ;;  %v3913_v54 = vld [vmem:[#allocation12 + $0x10] sm:$0xff]  ;;  %v3912_v18 = vld [vmem:[#allocation12 + $0x8] sm:$0xff] }
 0x2b8   : > { %3892 = vmatpush.msrb.mxu1 %v3783_v61  ;;  %3931 = vmatpush.msrb.mxu2 %v3926_v28  ;;  %v3919_v50 = vld [vmem:[#allocation12 + $0x40] sm:$0xff]  ;;  %v3918_v12 = vld [vmem:[#allocation12 + $0x38] sm:$0xff]  ;;  %v3965_v61 = vld [vmem:[#allocation15 + $0x68] sm:$0xff] }
 0x2b9   : > { %3873 = vmatpush.msrb.mxu0 %v3766_v35  ;;  %v3915_v52 = vld [vmem:[#allocation12 + $0x20] sm:$0xff]  ;;  %v3914_v7 = vld [vmem:[#allocation12 + $0x18] sm:$0xff] }
 0x2ba   : > { %3893 = vmatpush.msrb.mxu1 %v3782_v6  ;;  %3932 = vmatpush.msrb.mxu2 %v3925_v31  ;;  %v3911_v34 = vld [vmem:[#allocation12] sm:$0xff]  ;;  %v3966_v56 = vld [vmem:[#allocation15 + $0x70] sm:$0xff]  ;;  %v3961_v6 = vld [vmem:[#allocation15 + $0x48] sm:$0xff] }
 0x2bb   : > { %3874 = vmatpush.msrb.mxu0 %v3765_v8  ;;  %v3967_v58 = vld [vmem:[#allocation15 + $0x78] sm:$0xff]  ;;  %v3964_v63 = vld [vmem:[#allocation15 + $0x60] sm:$0xff]  ;;  %v3962_v0 = vld [vmem:[#allocation15 + $0x50] sm:$0xff] }
 0x2bc   : > { %3894 = vmatpush.msrb.mxu1 %v3781_v29  ;;  %3933 = vmatpush.msrb.mxu2 %v3924_v33  ;;  %v3963_v35 = vld [vmem:[#allocation15 + $0x58] sm:$0xff]  ;;  %v3960_v8 = vld [vmem:[#allocation15 + $0x40] sm:$0xff] }
 0x2bd   : > { %3875 = vmatpush.msrb.mxu0 %v3764_v32  ;;  %3972 = vmatpush.msrb.mxu3 %v3967_v58  ;;  %v6316_v5 = vld [vmem:[#allocation10] ss:$0 sm:$0xff] }
 0x2be   : > { %3895 = vmatpush.msrb.mxu1 %v3780_v41  ;;  %3934 = vmatpush.msrb.mxu2 %v3923_v46  ;;  %v3959_v29 = vld [vmem:[#allocation15 + $0x38] sm:$0xff]  ;;  %v3958_v41 = vld [vmem:[#allocation15 + $0x30] sm:$0xff] }
 0x2bf   : > { %3876 = vmatpush.msrb.mxu0 %v3763_v36  ;;  %3973 = vmatpush.msrb.mxu3 %v3966_v56 }
 0x2c0   : > { %3896 = vmatpush.msrb.mxu1 %v3779_v14  ;;  %3935 = vmatpush.msrb.mxu2 %v3922_v37  ;;  %v3957_v14 = vld [vmem:[#allocation15 + $0x28] sm:$0xff] }
 0x2c1   : > { %3877 = vmatpush.msrb.mxu0 %v3762_v15  ;;  %3974 = vmatpush.msrb.mxu3 %v3965_v61 }
 0x2c2   : > { %3897 = vmatpush.msrb.mxu1 %v3778_v53  ;;  %3936 = vmatpush.msrb.mxu2 %v3921_v40  ;;  %v3956_v53 = vld [vmem:[#allocation15 + $0x20] sm:$0xff] }
 0x2c3   : > { %3878 = vmatpush.msrb.mxu0 %v3761_v38  ;;  %3975 = vmatpush.msrb.mxu3 %v3964_v63 }
 0x2c4   : > { %3898 = vmatpush.msrb.mxu1 %v3777_v42  ;;  %3937 = vmatpush.msrb.mxu2 %v3920_v19 }
 0x2c5   : > { %3879 = vmatpush.msrb.mxu0 %v3760_v16  ;;  %3976 = vmatpush.msrb.mxu3 %v3963_v35  ;;  %v3955_v16 = vld [vmem:[#allocation15 + $0x18] sm:$0xff] }
 0x2c6   : > { %3899 = vmatpush.msrb.mxu1 %v3776_v20  ;;  %3938 = vmatpush.msrb.mxu2 %v3919_v50 }
 0x2c7   : > { %3880 = vmatpush.msrb.mxu0 %v3759_v43  ;;  %3977 = vmatpush.msrb.mxu3 %v3962_v0 }
 0x2c8   : > { %3900 = vmatpush.msrb.mxu1 %v3775_v57  ;;  %3939 = vmatpush.msrb.mxu2 %v3918_v12 }
 0x2c9   : > { %3881 = vmatpush.msrb.mxu0 %v3758_v22  ;;  %3978 = vmatpush.msrb.mxu3 %v3961_v6 }
 0x2ca   : > { %3901 = vmatpush.msrb.mxu1 %v3774_v39  ;;  %3940 = vmatpush.msrb.mxu2 %v3917_v51 }
 0x2cb   : > { %3882 = vmatpush.msrb.mxu0 %v3757_v44  ;;  %3979 = vmatpush.msrb.mxu3 %v3960_v8  ;;  %v3954_v44 = vld [vmem:[#allocation15 + $0x10] sm:$0xff] }
 0x2cc   : > { %3902 = vmatpush.msrb.mxu1 %v3773_v23  ;;  %3941 = vmatpush.msrb.mxu2 %v3916_v21  ;;  %v3953_v23 = vld [vmem:[#allocation15 + $0x8] sm:$0xff] }
 0x2cd   : > { %3883 = vmatpush.msrb.mxu0 %v3756_v59  ;;  %3980 = vmatpush.msrb.mxu3 %v3959_v29  ;;  %v3952_v59 = vld [vmem:[#allocation15] sm:$0xff] }
 0x2ce   : > { %3903 = vmatpush.msrb.mxu1 %v3772_v24  ;;  %3942 = vmatpush.msrb.mxu2 %v3915_v52  ;;  %v6317_v24 = vld [vmem:[#allocation13] ss:$0 sm:$0xff] }
 0x2cf   : > { %3884 = vmatpush.msrb.mxu0 %v3755_v25  ;;  %3981 = vmatpush.msrb.mxu3 %v3958_v41 }
 0x2d0   : > { %3904 = vmatpush.msrb.mxu1 %v3771_v26  ;;  %3943 = vmatpush.msrb.mxu2 %v3914_v7 }
 0x2d1   : > { %3885 = vmatpush.msrb.mxu0 %v3754_v27  ;;  %3982 = vmatpush.msrb.mxu3 %v3957_v14 }
 0x2d2   : > { %3905 = vmatpush.msrb.mxu1 %v3770_v17  ;;  %3944 = vmatpush.msrb.mxu2 %v3913_v54  ;;  %v6318_v17 = vld [vmem:[#allocation16] ss:$0 sm:$0xff] }
 0x2d3   : > { %3983 = vmatpush.msrb.mxu3 %v3956_v53 }
 0x2d4   : > { %3945 = vmatpush.msrb.mxu2 %v3912_v18 }
 0x2d5   : > { %3984 = vmatpush.msrb.mxu3 %v3955_v16 }
 0x2d6   : > { %3946 = vmatpush.msrb.mxu2 %v3911_v34 }
 0x2d7   : > { %3985 = vmatpush.msrb.mxu3 %v3954_v44 }
 0x2d9   : > { %3986 = vmatpush.msrb.mxu3 %v3953_v23 }
 0x2db   : > { %3987 = vmatpush.msrb.mxu3 %v3952_v59 }
 0x30e   : > { %v3682_v4 = vpop.permute.xlu0 %3681 }
 0x30f   : > { %v3684_v30 = vmul.f32 %v3682_v4, %v3672_v2  ;;  %v3685_v48 = vmul.f32 %v3682_v4, %v3673_v45  ;;  %v3686_v62 = vmul.f32 %v3682_v4, %v3674_v10  ;;  %v3687_v3 = vmul.f32 %v3682_v4, %v3675_v47 }
 0x310   : > { %v3688_v49 = vmul.f32 %v3682_v4, %v3676_v11  ;;  %v3689_v60 = vmul.f32 %v3682_v4, %v3677_v9 }
 0x311   : > { %3806 = vmatmul.f32.vlgmr.msra.gmra.mxu0 %v3684_v30  ;;  %3826 = vmatmul.f32.vlgmr.msra.gmra.mxu1 %v3685_v48 }
 0x312   : > { %3846 = vmatmul.f32.vlgmr.msra.gmra.mxu2 %v3686_v62  ;;  %3866 = vmatmul.f32.vlgmr.msra.gmra.mxu3 %v3687_v3 }
 0x319   : > { %3886 = vmatmul.f32.vlgmr.msrb.gmra.mxu0 %v3688_v49  ;;  %3906 = vmatmul.f32.vlgmr.msrb.gmra.mxu1 %v3689_v60 }
 0x38e   : > { %v3807_v13 = vpop.f32.mrf.mxu0  ;;  %v3827_v36 = vpop.f32.mrf.mxu1 }
 0x38f   : > { %v3808_v32 = vadd.f32 %v6316_v5, %v3807_v13 }
 0x391   : > { %v3828_v15 = vadd.f32 %v3827_v36, %v3808_v32 }
 0x395   : > { %v3847_v38 = vpop.f32.mrf.mxu2  ;;  %v3867_v20 = vpop.f32.mrf.mxu3 }
 0x396   : > { %v3848_v42 = vadd.f32 %v3847_v38, %v3828_v15  ;;  %v3887_v57 = vpop.f32.mrf.mxu0  ;;  %v3907_v55 = vpop.f32.mrf.mxu1 }
 0x398   : > { %v3868_v43 = vadd.f32 %v3867_v20, %v3848_v42 }
 0x39a   : > { %v3888_v1 = vadd.f32 %v3887_v57, %v3868_v43 }
 0x39c   : > { %v3908_v22 = vadd.f32 %v3907_v55, %v3888_v1 }
 0x39e   : > { %v3910_v39 = vmax.f32 %v3908_v22, 0.0 }
 0x3a0   : > { %3947 = vmatmul.f32.vlgmr.msrb.gmra.mxu2 %v3910_v39 }
 0x423   : > { %v3948_v25 = vpop.f32.mrf.mxu2 }
 0x424   : > { %v3949_v26 = vadd.f32 %v6317_v24, %v3948_v25 }
 0x426   : > { %v3951_v27 = vmax.f32 %v3949_v26, 0.0 }
 0x428   : > { %3988 = vmatmul.f32.vlgmr.msrb.gmra.mxu3 %v3951_v27 }
 0x4ab   : > { %v3989_v28 = vpop.f32.mrf.mxu3 }
 0x4ac   : > { %v3990_v31 = vadd.f32 %v6318_v17, %v3989_v28 }
 0x4ae   : > { %3992 = vst [vmem:[%s504_s26] sm:$0xff] %v3990_v31 }
 0x4af PF: > { %s8060_s27 = sld [smem:[#allocation32_spill]]  ;;  %s4006_s12 = sshll.u32 %s504_s26, 4  ;;  %s4007_s12 = int_to_ptr.vmem [resolvable:$true] %s4006_s12 }
 0x4b0   : > { %s8062_s5 = sld [smem:[#allocation43_spill]]  ;;  %s3994_s8 = scalar_lea.sflag [#allocation6], %s502_s24 }
 0x4b5   : > { %s5747_s25 = sshll.u32 %s8060_s27, 3 }
 0x4b6   : > { %s4004_s2 = scalar_lea.hbm %s8062_s5, %s5747_s25  ;;  %s6549_s3 = scalar_lea.hbm %s8062_s5, 16 }
 0x4b7   : > { %s4008_s30 = sshll.u32 %s4004_s2, 4  ;;  %s4009_s30 = int_to_ptr.hbm [resolvable:$true] %s4008_s30 }
 0x4b8   : > { %s6543_s29 = sshra.s32 %s4009_s30, 4  ;;  %s6544_s29 = int_to_ptr.hbm [resolvable:$true] %s6543_s29 }
 0x4b9   : > { %s6545_s23 = scalar_lea.hbm %s6544_s29, 8  ;;  %p6550_p0 = scmp.lt.s32.totalorder %s6544_s29, %s8062_s5 }
 0x4ba   : > { %p6546_p7 = scmp.ne.s32.totalorder %s6544_s29, %s6545_s23  ;;  %p6551_p1 = scmp.lt.s32.totalorder %s6549_s3, %s6545_s23 }
 0x4bc   : > { %p6547_p11 = pnand %p6546_p7, %p6822_p12  ;;  %p6552_p2 = por %p6551_p1, %p6550_p0 }
 0x4be   : > { %p6548_p13 = pneg %p6547_p11 }
 0x4c0   : > { %p6553_p5 = pnand %p6552_p2, %p6548_p13 }
 0x4c2   : > { %6556 = shalt.err (!%p6553_p5)
}
 0x4c3   : > { %6173 = dma.vmem_to_hbm [thread:$0]  (%p6822_p12), %s4007_s12, 128, %s4009_s30, %s3994_s8  }
 0x4c4 PF: > { %s8063_s24 = sld [smem:[#allocation29_spill]]  ;;  %p6210_p8 = scmp.ge.s32.totalorder %s6671_s15, 2 }
 0x4c6   : > { %p6195_p9 = pnand %p6210_p8, %p6836_p4 }
 0x4c8   : > { %p6196_p10 = pneg %p6195_p9 }
 0x4ca   : > { %s4020_s26 = sand.u32 1, %s8063_s24  }
 0x4cb   : > { %s4021_s16 = scalar_lea.sflag [#allocation6], %s4020_s26 }
 0x4cc   : > { %6626 = dma.done.wait (%p6196_p10), %s4021_s16, 128  }
 0x4cd   : > { %6628 = vsyncadd (%p6196_p10), %s4021_s16, 4294967168  ;;  %s30_s15 = sadd.s32 1, %s6671_s15   ;;  %s8065_s25 = sld [smem:[#allocation30_spill]] }
 0x4ce   : > { %p27_p3 = scmp.ge.s32.totalorder %s30_s15, 6   ;;  %s8066_s29 = sld [smem:[#allocation36_spill]] }
 0x4cf   : > { %s8067_s19 = sld [smem:[#allocation37_spill]]  ;;  %s8070_s27 = smov %s6635_s28 }
 0x4d0   : > { %s8068_s18 = sld [smem:[#allocation33_spill]]  ;;  %s8072_s30 = smov %s6647_s9 }
 0x4d1   : > { %s8069_s2 = sld [smem:[#allocation34_spill]]  ;;  %s8073_s9 = smov %s6651_s10 }
 0x4d2   : > { %s8075_s11 = smov %s6663_s13  ;;  %s8076_s12 = smov %s6667_s14 }
 0x4d3   : > { %s8071_s28 = smov %s8065_s25  ;;  %29 = sbr.rel (!%p27_p3) target bundleno = 20 (0x14), region = 147 }
 0x4d5   : > { %s8074_s10 = smov %s8067_s19 }
 0x4d6   : > { %s8077_s13 = smov %s8068_s18 }
 0x4d7   : > { %s8078_s14 = smov %s8069_s2 }
 0x4d8   :  { %4027 = vsyncpa [#allocation5], 1 }
 0x4d9   :  { %4029 = vsyncpa [#allocation5 + $0x1], 1 }
 0x4da   :  { %4030 = vsyncpa [#allocation8], 1 }
 0x4db   :  { %4032 = vsyncpa [#allocation8 + $0x1], 1 }
 0x4dc   :  { %4033 = vsyncpa [#allocation11], 1 }
 0x4dd   :  { %4034 = vsyncpa [#allocation14], 1 }
 0x4de   :  { %4035 = vsyncpa [#allocation17], 1 }
 0x4df   :  { %4036 = vsyncpa [#allocation6], 1 }
 0x4e0   :  { %4038 = vsyncpa [#allocation6 + $0x1], 1 }

</bundles_post_ra>
